<compile_context>
chip_gen: v7x
topology: tpu7x:2x2x1
jax: 0.10.0
libtpu: 0.0.40
codegen_flags: <defaults>
</compile_context>

<pallas_src>
import jax
import jax.numpy as jnp
from jax.experimental import pallas as pl
from jax.experimental.pallas import tpu as pltpu


# Linear counts per sequential block, in module declaration order:
# text, feature, fusion, fusion_res, fusion_2, cls, res, cls_2, fc
_BLOCK_LINEARS = (3, 3, 3, 2, 2, 3, 2, 3, 1)
# feature_block (index 1) is mathematically dead in the module's forward
# (only xs[:, 0] of the stacked views is ever read), so the kernel skips it.
_USED_BLOCKS = (0, 2, 3, 4, 5, 6, 7, 8)
_SPLIT = 7  # the module's forward hardcodes x[:, 7:] / x[:, :7]

_NUM_KERNEL_LINEARS = sum(_BLOCK_LINEARS[i] for i in _USED_BLOCKS)          # 19
_NUM_KERNEL_PRELU = sum(_BLOCK_LINEARS[i] - 1 for i in _USED_BLOCKS)        # 11


def _mv_kernel(prelu_ref, x_ref, *rest):
    """rest = (w0, b0, ..., w18, b18, out_ref).

    Weights: bf16 (in_features, out_features), pre-transposed (x @ W + b).
    Biases:  f32 (1, out).  prelu_ref: SMEM f32 vector of the 11 live slopes.

    Live-linear / PReLU index layout:
      0-2   text_block     (prelu 0,1)   [w0 zero-padded over the full input]
      3-5   fusion_block   (prelu 2,3)
      6-7   fusion_res     (prelu 4)
      8-9   fusion_2       (prelu 5)
      10-12 cls_block      (prelu 6,7)
      13-14 res_block      (prelu 8)
      15-17 cls_block_2    (prelu 9,10)
      18    fc_layer
    """
    out_ref = rest[-1]
    wb = rest[:-1]

    def lin(i, x):
        w = wb[2 * i][...]                         # bf16 (K, N)
        b = wb[2 * i + 1][...]                     # f32 (1, N)
        # astype is a no-op when x is already bf16 (all inter-layer activations).
        return jnp.dot(x.astype(jnp.bfloat16), w,
                       preferred_element_type=jnp.float32) + b

    def pr(i, y):                                  # f32 accumulator in, bf16 out
        a = prelu_ref[i]                           # scalar read from SMEM
        return jnp.where(y >= 0.0, y, a * y).astype(jnp.bfloat16)

    def block3(l, p, x):                           # Linear,PReLU,Linear,PReLU,Linear
        x = pr(p, lin(l, x))
        x = pr(p + 1, lin(l + 1, x))
        return lin(l + 2, x)                       # f32 out

    def block2(l, p, x):                           # Linear,PReLU,Linear
        x = pr(p, lin(l, x))
        return lin(l + 1, x)                       # f32 out

    x_in = x_ref[...]                              # [TB, F] bf16, lane-dense

    # text_block(x[:, 7:]) with the column split folded into zero-padded w0.
    x_txt = block3(0, 0, x_in)

    # Only view 0 (text) of torch.stack([x_txt, x_ft], 1) reaches the output;
    # the feature/view-1 path is omitted entirely (output is unchanged).
    y = block3(3, 2, x_txt)                        # fusion_block
    yr = block2(6, 4, y)                           # fusion_res_block
    y = block2(8, 5, y + yr)                       # fusion_block_2
    yc = block3(10, 6, y)                          # cls_block
    yr = block2(13, 8, yc)                         # res_block
    yc = block3(15, 9, yc + yr)                    # cls_block_2
    out_ref[...] = lin(18, yc)                     # fc_layer -> [TB, 1] f32


def _round_up(n, m):
    return ((n + m - 1) // m) * m


def _is_v7x():
    try:
        return "7" in jax.devices()[0].device_kind
    except Exception:
        return False


def _vmem_budget(wb, tb, f, max_n, single_buffer):
    """Scoped-VMEM budget: resident params (+pipeline copy if double-buffered),
    activation working set, streamed IO tiles, headroom — capped at the chip's
    physical VMEM minus margin."""
    param_bytes = sum(int(a.size) * a.dtype.itemsize for a in wb)
    if not single_buffer:
        param_bytes *= 2
    act_bytes = 8 * tb * max_n * 4                 # f32 activation working set
    io_bytes = 2 * (tb * f * 2 + tb * 4)           # double-buffered bf16 in / f32 out
    need = param_bytes + act_bytes + io_bytes + (8 << 20)
    try:
        cap = pltpu.get_tpu_info().vmem_capacity_bytes
    except Exception:
        cap = 64 << 20                             # conservative (v7x per-TC)
    return int(min(max(need, 32 << 20), cap - (4 << 20)))


def _prepare_params(params, f_total):
    """Flat torch-layout param list -> (prelu_vec(11,), bf16 weights, f32 biases)
    for the 19 live Linears only.

    `params` follows the module's declaration order with weights already
    transposed to (in_features, out_features), biases (1, out), PReLU (1, 1).
    The text-block first weight is zero-padded over the full input width so
    the kernel needs no column split.  feature_block params are parsed (to
    keep the layout identical to the torch module) but not handed to the
    kernel: they never influence the output.
    """
    it = iter(params)
    blocks = []
    for n_lin in _BLOCK_LINEARS:
        lins = []
        for li in range(n_lin):
            w = jnp.asarray(next(it))
            b = jnp.asarray(next(it)).reshape(1, -1).astype(jnp.float32)
            a = None
            if li < n_lin - 1:                     # a PReLU follows every non-final Linear
                a = jnp.asarray(next(it)).reshape(())
            lins.append([w, b, a])
        blocks.append(lins)

    assert blocks[0][0][0].shape[0] == f_total - _SPLIT   # text first-layer K
    assert blocks[1][0][0].shape[0] == _SPLIT              # feature first-layer K (unused)

    # Fold x[:, 7:] into the text first layer: zero-pad the first 7 input rows.
    w0 = blocks[0][0][0]
    blocks[0][0][0] = jnp.zeros((f_total, w0.shape[1]), w0.dtype).at[_SPLIT:].set(w0)

    ws, bs, alphas = [], [], []
    for bi in _USED_BLOCKS:
        for w, b, a in blocks[bi]:
            ws.append(w.astype(jnp.bfloat16))
            bs.append(b)
            if a is not None:
                alphas.append(a)
    assert len(ws) == _NUM_KERNEL_LINEARS and len(alphas) == _NUM_KERNEL_PRELU
    prelu_vec = jnp.stack(alphas).astype(jnp.float32)       # (11,)
    return prelu_vec, ws, bs


def multi_view_nn(x, params, *, block_b=512):
    """Full Multi_View_NN forward in one batch-tiled pallas_call."""
    x = jnp.asarray(x, jnp.float32)
    B, F = x.shape
    prelu_vec, ws, bs = _prepare_params(params, F)

    # Batch tile: multiple of 8 sublanes; 512 keeps the MXU M-dim well fed now
    # that weights are single-buffered.
    TB = min(block_b, _round_up(B, 8))
    # v7x: 2 TensorCores share the "parallel" batch axis; if the tile count is
    # odd (>1), halve TB once so per-core work stays balanced.
    if _is_v7x() and TB % 16 == 0:
        n_tiles = -(-B // TB)
        if n_tiles > 1 and n_tiles % 2 == 1:
            TB //= 2
    B_pad = _round_up(B, TB)

    # bf16 input tile: halves the only per-step streaming DMA; matmul
    # accumulation stays f32 so numerics match the reference.
    x_bf = x.astype(jnp.bfloat16)
    if B_pad != B:
        x_bf = jnp.pad(x_bf, ((0, B_pad - B), (0, 0)))

    wb = []
    for w, b in zip(ws, bs):
        wb += [w, b]
    max_n = max(w.shape[1] for w in ws)

    def call(single_buffer):
        # Weights/biases: full-array blocks, constant index_map -> VMEM-resident
        # across the batch grid.  Single-buffered: constant index means the
        # second pipeline buffer never carries new data.
        def resident(shape):
            if single_buffer:
                return pl.BlockSpec(shape, lambda i, *_: (0, 0),
                                    pipeline_mode=pl.Buffered(1))
            return pl.BlockSpec(shape, lambda i, *_: (0, 0))

        wb_specs = []
        for w, b in zip(ws, bs):
            wb_specs += [resident(w.shape), resident(b.shape)]

        in_specs = [pl.BlockSpec((TB, F), lambda i, *_: (i, 0))] + wb_specs
        out_spec = pl.BlockSpec((TB, 1), lambda i, *_: (i, 0))
        vmem_limit = _vmem_budget(wb, TB, F, max_n, single_buffer)

        return pl.pallas_call(
            _mv_kernel,
            out_shape=jax.ShapeDtypeStruct((B_pad, 1), jnp.float32),
            grid_spec=pltpu.PrefetchScalarGridSpec(
                num_scalar_prefetch=1,               # PReLU slopes -> SMEM
                grid=(B_pad // TB,),
                in_specs=in_specs,
                out_specs=out_spec,
            ),
            compiler_params=pltpu.CompilerParams(
                dimension_semantics=("parallel",),   # batch tiles across TCs
                vmem_limit_bytes=vmem_limit,
            ),
        )(prelu_vec, x_bf, *wb)

    try:
        out = call(single_buffer=True)
    except Exception:
        # This jax/libtpu build rejected pipeline_mode=Buffered(1); fall back
        # to default (double-buffered) resident weights.
        out = call(single_buffer=False)
    return out[:B]


def make_params(key, txt_input=768, ft_input=7, fusion_input=768, hidden=1024):
    """Deterministic init mimicking PyTorch defaults (U(+-1/sqrt(fan_in)),
    PReLU=0.25).  Weights are stored pre-transposed as (in_features, out)."""

    def linear(key, fi, fo):
        k1, k2 = jax.random.split(key)
        bound = 1.0 / float(fi) ** 0.5
        w = jax.random.uniform(k1, (fi, fo), jnp.float32, -bound, bound)
        b = jax.random.uniform(k2, (1, fo), jnp.float32, -bound, bound)
        return [w, b]

    def prelu():
        return [jnp.full((1, 1), 0.25, jnp.float32)]

    def block3(key, fi, fo):
        k1, k2, k3 = jax.random.split(key, 3)
        return (linear(k1, fi, hidden) + prelu()
                + linear(k2, hidden, hidden) + prelu()
                + linear(k3, hidden, fo))

    def block2(key, fi, fo):
        k1, k2 = jax.random.split(key, 2)
        return linear(k1, fi, hidden) + prelu() + linear(k2, hidden, fo)

    keys = jax.random.split(key, 9)
    params = []
    params += block3(keys[0], txt_input, fusion_input)     # text_block
    params += block3(keys[1], ft_input, fusion_input)      # feature_block
    params += block3(keys[2], fusion_input, fusion_input)  # fusion_block
    params += block2(keys[3], fusion_input, fusion_input)  # fusion_res_block
    params += block2(keys[4], fusion_input, fusion_input)  # fusion_block_2
    params += block3(keys[5], fusion_input, fusion_input)  # cls_block
    params += block2(keys[6], fusion_input, fusion_input)  # res_block
    params += block3(keys[7], fusion_input, fusion_input)  # cls_block_2
    params += linear(keys[8], fusion_input, 1)             # fc_layer
    return params


def ref_forward(x, params):
    """Pure-JAX reference with the EXACT torch control flow (slice at column 7,
    feature block, stack along dim=1, both-view fusion, x[:, 0]).  Weights and
    matmul inputs are cast to bf16 with f32 accumulation, mirroring the
    kernel's numerics."""
    it = iter(params)

    def lin(x):
        w = next(it)
        b = next(it)
        return jnp.dot(x.astype(jnp.bfloat16), w.astype(jnp.bfloat16),
                       preferred_element_type=jnp.float32) + b

    def pr(x):
        a = next(it)[0, 0]
        return jnp.where(x >= 0, x, a * x)

    def b3(x):
        x = pr(lin(x))
        x = pr(lin(x))
        return lin(x)

    def b2(x):
        x = pr(lin(x))
        return lin(x)

    x = x.astype(jnp.float32)
    x_txt = b3(x[:, 7:])
    x_ft = b3(x[:, :7])
    xs = jnp.stack([x_txt, x_ft], axis=1)     # [B, 2, F]
    xs = b3(xs)
    xr = b2(xs)
    xs = b2(xs + xr)
    xc = b3(xs[:, 0])
    xr = b2(xc)
    xc = b3(xc + xr)
    return lin(xc)


if __name__ == "__main__":
    # Small shapes consistent with the module: ft_input must stay 7 (the
    # forward hardcodes the split at column 7); shrink the other dims.
    txt_input, ft_input, fusion_input, hidden = 32, 7, 32, 64
    B = 4

    key = jax.random.PRNGKey(0)
    kp, kx = jax.random.split(key)
    params = make_params(kp, txt_input, ft_input, fusion_input, hidden)
    x = jax.random.normal(kx, (B, ft_input + txt_input), jnp.float32)  # [4, 39]

    out = jax.block_until_ready(multi_view_nn(x, params))
    ref = jax.block_until_ready(ref_forward(x, params))

    assert out.shape == (B, 1), out.shape
    assert jnp.allclose(out, ref, rtol=2e-2, atol=2e-2), (out, ref)
    print("KERNEL_OK")
</pallas_src>

<mosaic_0001>
module attributes {stable_mosaic.version = 11 : i64} {
  func.func @_mv_kernel(%arg0: i32, %arg1: memref<11xf32, #tpu.memory_space<smem>>, %arg2: memref<8x39xbf16, #tpu.memory_space<vmem>>, %arg3: memref<39x64xbf16, #tpu.memory_space<vmem>>, %arg4: memref<1x64xf32, #tpu.memory_space<vmem>>, %arg5: memref<64x64xbf16, #tpu.memory_space<vmem>>, %arg6: memref<1x64xf32, #tpu.memory_space<vmem>>, %arg7: memref<64x32xbf16, #tpu.memory_space<vmem>>, %arg8: memref<1x32xf32, #tpu.memory_space<vmem>>, %arg9: memref<32x64xbf16, #tpu.memory_space<vmem>>, %arg10: memref<1x64xf32, #tpu.memory_space<vmem>>, %arg11: memref<64x64xbf16, #tpu.memory_space<vmem>>, %arg12: memref<1x64xf32, #tpu.memory_space<vmem>>, %arg13: memref<64x32xbf16, #tpu.memory_space<vmem>>, %arg14: memref<1x32xf32, #tpu.memory_space<vmem>>, %arg15: memref<32x64xbf16, #tpu.memory_space<vmem>>, %arg16: memref<1x64xf32, #tpu.memory_space<vmem>>, %arg17: memref<64x32xbf16, #tpu.memory_space<vmem>>, %arg18: memref<1x32xf32, #tpu.memory_space<vmem>>, %arg19: memref<32x64xbf16, #tpu.memory_space<vmem>>, %arg20: memref<1x64xf32, #tpu.memory_space<vmem>>, %arg21: memref<64x32xbf16, #tpu.memory_space<vmem>>, %arg22: memref<1x32xf32, #tpu.memory_space<vmem>>, %arg23: memref<32x64xbf16, #tpu.memory_space<vmem>>, %arg24: memref<1x64xf32, #tpu.memory_space<vmem>>, %arg25: memref<64x64xbf16, #tpu.memory_space<vmem>>, %arg26: memref<1x64xf32, #tpu.memory_space<vmem>>, %arg27: memref<64x32xbf16, #tpu.memory_space<vmem>>, %arg28: memref<1x32xf32, #tpu.memory_space<vmem>>, %arg29: memref<32x64xbf16, #tpu.memory_space<vmem>>, %arg30: memref<1x64xf32, #tpu.memory_space<vmem>>, %arg31: memref<64x32xbf16, #tpu.memory_space<vmem>>, %arg32: memref<1x32xf32, #tpu.memory_space<vmem>>, %arg33: memref<32x64xbf16, #tpu.memory_space<vmem>>, %arg34: memref<1x64xf32, #tpu.memory_space<vmem>>, %arg35: memref<64x64xbf16, #tpu.memory_space<vmem>>, %arg36: memref<1x64xf32, #tpu.memory_space<vmem>>, %arg37: memref<64x32xbf16, #tpu.memory_space<vmem>>, %arg38: memref<1x32xf32, #tpu.memory_space<vmem>>, %arg39: memref<32x1xbf16, #tpu.memory_space<vmem>>, %arg40: memref<1x1xf32, #tpu.memory_space<vmem>>, %arg41: memref<8x1xf32, #tpu.memory_space<vmem>>) attributes {dimension_semantics = [#tpu.dimension_semantics<parallel>], iteration_bounds = array<i64: 1>, scalar_prefetch = 1 : i64, scratch_operands = 0 : i64, tpu.core_type = #tpu.core_type<tc>, window_params = [{transform_indices = @transform_0, window_bounds = array<i64: 8, 39>}, {pipeline_mode = #tpu.pipeline_mode<synchronous>, transform_indices = @transform_1, window_bounds = array<i64: 39, 64>}, {pipeline_mode = #tpu.pipeline_mode<synchronous>, transform_indices = @transform_2, window_bounds = array<i64: 1, 64>}, {pipeline_mode = #tpu.pipeline_mode<synchronous>, transform_indices = @transform_3, window_bounds = array<i64: 64, 64>}, {pipeline_mode = #tpu.pipeline_mode<synchronous>, transform_indices = @transform_4, window_bounds = array<i64: 1, 64>}, {pipeline_mode = #tpu.pipeline_mode<synchronous>, transform_indices = @transform_5, window_bounds = array<i64: 64, 32>}, {pipeline_mode = #tpu.pipeline_mode<synchronous>, transform_indices = @transform_6, window_bounds = array<i64: 1, 32>}, {pipeline_mode = #tpu.pipeline_mode<synchronous>, transform_indices = @transform_7, window_bounds = array<i64: 32, 64>}, {pipeline_mode = #tpu.pipeline_mode<synchronous>, transform_indices = @transform_8, window_bounds = array<i64: 1, 64>}, {pipeline_mode = #tpu.pipeline_mode<synchronous>, transform_indices = @transform_9, window_bounds = array<i64: 64, 64>}, {pipeline_mode = #tpu.pipeline_mode<synchronous>, transform_indices = @transform_10, window_bounds = array<i64: 1, 64>}, {pipeline_mode = #tpu.pipeline_mode<synchronous>, transform_indices = @transform_11, window_bounds = array<i64: 64, 32>}, {pipeline_mode = #tpu.pipeline_mode<synchronous>, transform_indices = @transform_12, window_bounds = array<i64: 1, 32>}, {pipeline_mode = #tpu.pipeline_mode<synchronous>, transform_indices = @transform_13, window_bounds = array<i64: 32, 64>}, {pipeline_mode = #tpu.pipeline_mode<synchronous>, transform_indices = @transform_14, window_bounds = array<i64: 1, 64>}, {pipeline_mode = #tpu.pipeline_mode<synchronous>, transform_indices = @transform_15, window_bounds = array<i64: 64, 32>}, {pipeline_mode = #tpu.pipeline_mode<synchronous>, transform_indices = @transform_16, window_bounds = array<i64: 1, 32>}, {pipeline_mode = #tpu.pipeline_mode<synchronous>, transform_indices = @transform_17, window_bounds = array<i64: 32, 64>}, {pipeline_mode = #tpu.pipeline_mode<synchronous>, transform_indices = @transform_18, window_bounds = array<i64: 1, 64>}, {pipeline_mode = #tpu.pipeline_mode<synchronous>, transform_indices = @transform_19, window_bounds = array<i64: 64, 32>}, {pipeline_mode = #tpu.pipeline_mode<synchronous>, transform_indices = @transform_20, window_bounds = array<i64: 1, 32>}, {pipeline_mode = #tpu.pipeline_mode<synchronous>, transform_indices = @transform_21, window_bounds = array<i64: 32, 64>}, {pipeline_mode = #tpu.pipeline_mode<synchronous>, transform_indices = @transform_22, window_bounds = array<i64: 1, 64>}, {pipeline_mode = #tpu.pipeline_mode<synchronous>, transform_indices = @transform_23, window_bounds = array<i64: 64, 64>}, {pipeline_mode = #tpu.pipeline_mode<synchronous>, transform_indices = @transform_24, window_bounds = array<i64: 1, 64>}, {pipeline_mode = #tpu.pipeline_mode<synchronous>, transform_indices = @transform_25, window_bounds = array<i64: 64, 32>}, {pipeline_mode = #tpu.pipeline_mode<synchronous>, transform_indices = @transform_26, window_bounds = array<i64: 1, 32>}, {pipeline_mode = #tpu.pipeline_mode<synchronous>, transform_indices = @transform_27, window_bounds = array<i64: 32, 64>}, {pipeline_mode = #tpu.pipeline_mode<synchronous>, transform_indices = @transform_28, window_bounds = array<i64: 1, 64>}, {pipeline_mode = #tpu.pipeline_mode<synchronous>, transform_indices = @transform_29, window_bounds = array<i64: 64, 32>}, {pipeline_mode = #tpu.pipeline_mode<synchronous>, transform_indices = @transform_30, window_bounds = array<i64: 1, 32>}, {pipeline_mode = #tpu.pipeline_mode<synchronous>, transform_indices = @transform_31, window_bounds = array<i64: 32, 64>}, {pipeline_mode = #tpu.pipeline_mode<synchronous>, transform_indices = @transform_32, window_bounds = array<i64: 1, 64>}, {pipeline_mode = #tpu.pipeline_mode<synchronous>, transform_indices = @transform_33, window_bounds = array<i64: 64, 64>}, {pipeline_mode = #tpu.pipeline_mode<synchronous>, transform_indices = @transform_34, window_bounds = array<i64: 1, 64>}, {pipeline_mode = #tpu.pipeline_mode<synchronous>, transform_indices = @transform_35, window_bounds = array<i64: 64, 32>}, {pipeline_mode = #tpu.pipeline_mode<synchronous>, transform_indices = @transform_36, window_bounds = array<i64: 1, 32>}, {pipeline_mode = #tpu.pipeline_mode<synchronous>, transform_indices = @transform_37, window_bounds = array<i64: 32, 1>}, {pipeline_mode = #tpu.pipeline_mode<synchronous>, transform_indices = @transform_38, window_bounds = array<i64: 1, 1>}, {transform_indices = @transform_39, window_bounds = array<i64: 8, 1>}]} {
    %c0 = arith.constant 0 : index
    %c0_0 = arith.constant 0 : index
    %0 = vector.load %arg2[%c0, %c0_0] : memref<8x39xbf16, #tpu.memory_space<vmem>>, vector<8x39xbf16>
    %c0_1 = arith.constant 0 : index
    %c0_2 = arith.constant 0 : index
    %1 = vector.load %arg3[%c0_1, %c0_2] : memref<39x64xbf16, #tpu.memory_space<vmem>>, vector<39x64xbf16>
    %c0_3 = arith.constant 0 : index
    %c0_4 = arith.constant 0 : index
    %2 = vector.load %arg4[%c0_3, %c0_4] : memref<1x64xf32, #tpu.memory_space<vmem>>, vector<1x64xf32>
    %cst = arith.constant dense<0.000000e+00> : vector<8x64xf32>
    %3 = tpu.matmul %0, %1, %cst {dimension_numbers = #tpu.dot_dimension_numbers<[1], [0], [0], [1], [0, 0, 1, 1], [], []>} : vector<8x39xbf16>, vector<39x64xbf16>, vector<8x64xf32> -> vector<8x64xf32>
    %4 = vector.broadcast %2 : vector<1x64xf32> to vector<8x64xf32>
    %5 = arith.addf %3, %4 : vector<8x64xf32>
    %c0_5 = arith.constant 0 : index
    %6 = memref.load %arg1[%c0_5] : memref<11xf32, #tpu.memory_space<smem>>
    %cst_6 = arith.constant 0.000000e+00 : f32
    %7 = vector.broadcast %cst_6 : f32 to vector<8x64xf32>
    %8 = arith.cmpf oge, %5, %7 : vector<8x64xf32>
    %9 = vector.broadcast %6 : f32 to vector<8x64xf32>
    %10 = arith.mulf %9, %5 : vector<8x64xf32>
    %11 = arith.select %8, %5, %10 : vector<8x64xi1>, vector<8x64xf32>
    %12 = arith.truncf %11 : vector<8x64xf32> to vector<8x64xbf16>
    %c0_7 = arith.constant 0 : index
    %c0_8 = arith.constant 0 : index
    %13 = vector.load %arg5[%c0_7, %c0_8] : memref<64x64xbf16, #tpu.memory_space<vmem>>, vector<64x64xbf16>
    %c0_9 = arith.constant 0 : index
    %c0_10 = arith.constant 0 : index
    %14 = vector.load %arg6[%c0_9, %c0_10] : memref<1x64xf32, #tpu.memory_space<vmem>>, vector<1x64xf32>
    %cst_11 = arith.constant dense<0.000000e+00> : vector<8x64xf32>
    %15 = tpu.matmul %12, %13, %cst_11 {dimension_numbers = #tpu.dot_dimension_numbers<[1], [0], [0], [1], [0, 0, 1, 1], [], []>} : vector<8x64xbf16>, vector<64x64xbf16>, vector<8x64xf32> -> vector<8x64xf32>
    %16 = vector.broadcast %14 : vector<1x64xf32> to vector<8x64xf32>
    %17 = arith.addf %15, %16 : vector<8x64xf32>
    %c1 = arith.constant 1 : index
    %18 = memref.load %arg1[%c1] : memref<11xf32, #tpu.memory_space<smem>>
    %cst_12 = arith.constant 0.000000e+00 : f32
    %19 = vector.broadcast %cst_12 : f32 to vector<8x64xf32>
    %20 = arith.cmpf oge, %17, %19 : vector<8x64xf32>
    %21 = vector.broadcast %18 : f32 to vector<8x64xf32>
    %22 = arith.mulf %21, %17 : vector<8x64xf32>
    %23 = arith.select %20, %17, %22 : vector<8x64xi1>, vector<8x64xf32>
    %24 = arith.truncf %23 : vector<8x64xf32> to vector<8x64xbf16>
    %c0_13 = arith.constant 0 : index
    %c0_14 = arith.constant 0 : index
    %25 = vector.load %arg7[%c0_13, %c0_14] : memref<64x32xbf16, #tpu.memory_space<vmem>>, vector<64x32xbf16>
    %c0_15 = arith.constant 0 : index
    %c0_16 = arith.constant 0 : index
    %26 = vector.load %arg8[%c0_15, %c0_16] : memref<1x32xf32, #tpu.memory_space<vmem>>, vector<1x32xf32>
    %cst_17 = arith.constant dense<0.000000e+00> : vector<8x32xf32>
    %27 = tpu.matmul %24, %25, %cst_17 {dimension_numbers = #tpu.dot_dimension_numbers<[1], [0], [0], [1], [0, 0, 1, 1], [], []>} : vector<8x64xbf16>, vector<64x32xbf16>, vector<8x32xf32> -> vector<8x32xf32>
    %28 = vector.broadcast %26 : vector<1x32xf32> to vector<8x32xf32>
    %29 = arith.addf %27, %28 : vector<8x32xf32>
    %c0_18 = arith.constant 0 : index
    %c0_19 = arith.constant 0 : index
    %30 = vector.load %arg9[%c0_18, %c0_19] : memref<32x64xbf16, #tpu.memory_space<vmem>>, vector<32x64xbf16>
    %c0_20 = arith.constant 0 : index
    %c0_21 = arith.constant 0 : index
    %31 = vector.load %arg10[%c0_20, %c0_21] : memref<1x64xf32, #tpu.memory_space<vmem>>, vector<1x64xf32>
    %32 = arith.truncf %29 : vector<8x32xf32> to vector<8x32xbf16>
    %cst_22 = arith.constant dense<0.000000e+00> : vector<8x64xf32>
    %33 = tpu.matmul %32, %30, %cst_22 {dimension_numbers = #tpu.dot_dimension_numbers<[1], [0], [0], [1], [0, 0, 1, 1], [], []>} : vector<8x32xbf16>, vector<32x64xbf16>, vector<8x64xf32> -> vector<8x64xf32>
    %34 = vector.broadcast %31 : vector<1x64xf32> to vector<8x64xf32>
    %35 = arith.addf %33, %34 : vector<8x64xf32>
    %c2 = arith.constant 2 : index
    %36 = memref.load %arg1[%c2] : memref<11xf32, #tpu.memory_space<smem>>
    %cst_23 = arith.constant 0.000000e+00 : f32
    %37 = vector.broadcast %cst_23 : f32 to vector<8x64xf32>
    %38 = arith.cmpf oge, %35, %37 : vector<8x64xf32>
    %39 = vector.broadcast %36 : f32 to vector<8x64xf32>
    %40 = arith.mulf %39, %35 : vector<8x64xf32>
    %41 = arith.select %38, %35, %40 : vector<8x64xi1>, vector<8x64xf32>
    %42 = arith.truncf %41 : vector<8x64xf32> to vector<8x64xbf16>
    %c0_24 = arith.constant 0 : index
    %c0_25 = arith.constant 0 : index
    %43 = vector.load %arg11[%c0_24, %c0_25] : memref<64x64xbf16, #tpu.memory_space<vmem>>, vector<64x64xbf16>
    %c0_26 = arith.constant 0 : index
    %c0_27 = arith.constant 0 : index
    %44 = vector.load %arg12[%c0_26, %c0_27] : memref<1x64xf32, #tpu.memory_space<vmem>>, vector<1x64xf32>
    %cst_28 = arith.constant dense<0.000000e+00> : vector<8x64xf32>
    %45 = tpu.matmul %42, %43, %cst_28 {dimension_numbers = #tpu.dot_dimension_numbers<[1], [0], [0], [1], [0, 0, 1, 1], [], []>} : vector<8x64xbf16>, vector<64x64xbf16>, vector<8x64xf32> -> vector<8x64xf32>
    %46 = vector.broadcast %44 : vector<1x64xf32> to vector<8x64xf32>
    %47 = arith.addf %45, %46 : vector<8x64xf32>
    %c3 = arith.constant 3 : index
    %48 = memref.load %arg1[%c3] : memref<11xf32, #tpu.memory_space<smem>>
    %cst_29 = arith.constant 0.000000e+00 : f32
    %49 = vector.broadcast %cst_29 : f32 to vector<8x64xf32>
    %50 = arith.cmpf oge, %47, %49 : vector<8x64xf32>
    %51 = vector.broadcast %48 : f32 to vector<8x64xf32>
    %52 = arith.mulf %51, %47 : vector<8x64xf32>
    %53 = arith.select %50, %47, %52 : vector<8x64xi1>, vector<8x64xf32>
    %54 = arith.truncf %53 : vector<8x64xf32> to vector<8x64xbf16>
    %c0_30 = arith.constant 0 : index
    %c0_31 = arith.constant 0 : index
    %55 = vector.load %arg13[%c0_30, %c0_31] : memref<64x32xbf16, #tpu.memory_space<vmem>>, vector<64x32xbf16>
    %c0_32 = arith.constant 0 : index
    %c0_33 = arith.constant 0 : index
    %56 = vector.load %arg14[%c0_32, %c0_33] : memref<1x32xf32, #tpu.memory_space<vmem>>, vector<1x32xf32>
    %cst_34 = arith.constant dense<0.000000e+00> : vector<8x32xf32>
    %57 = tpu.matmul %54, %55, %cst_34 {dimension_numbers = #tpu.dot_dimension_numbers<[1], [0], [0], [1], [0, 0, 1, 1], [], []>} : vector<8x64xbf16>, vector<64x32xbf16>, vector<8x32xf32> -> vector<8x32xf32>
    %58 = vector.broadcast %56 : vector<1x32xf32> to vector<8x32xf32>
    %59 = arith.addf %57, %58 : vector<8x32xf32>
    %c0_35 = arith.constant 0 : index
    %c0_36 = arith.constant 0 : index
    %60 = vector.load %arg15[%c0_35, %c0_36] : memref<32x64xbf16, #tpu.memory_space<vmem>>, vector<32x64xbf16>
    %c0_37 = arith.constant 0 : index
    %c0_38 = arith.constant 0 : index
    %61 = vector.load %arg16[%c0_37, %c0_38] : memref<1x64xf32, #tpu.memory_space<vmem>>, vector<1x64xf32>
    %62 = arith.truncf %59 : vector<8x32xf32> to vector<8x32xbf16>
    %cst_39 = arith.constant dense<0.000000e+00> : vector<8x64xf32>
    %63 = tpu.matmul %62, %60, %cst_39 {dimension_numbers = #tpu.dot_dimension_numbers<[1], [0], [0], [1], [0, 0, 1, 1], [], []>} : vector<8x32xbf16>, vector<32x64xbf16>, vector<8x64xf32> -> vector<8x64xf32>
    %64 = vector.broadcast %61 : vector<1x64xf32> to vector<8x64xf32>
    %65 = arith.addf %63, %64 : vector<8x64xf32>
    %c4 = arith.constant 4 : index
    %66 = memref.load %arg1[%c4] : memref<11xf32, #tpu.memory_space<smem>>
    %cst_40 = arith.constant 0.000000e+00 : f32
    %67 = vector.broadcast %cst_40 : f32 to vector<8x64xf32>
    %68 = arith.cmpf oge, %65, %67 : vector<8x64xf32>
    %69 = vector.broadcast %66 : f32 to vector<8x64xf32>
    %70 = arith.mulf %69, %65 : vector<8x64xf32>
    %71 = arith.select %68, %65, %70 : vector<8x64xi1>, vector<8x64xf32>
    %72 = arith.truncf %71 : vector<8x64xf32> to vector<8x64xbf16>
    %c0_41 = arith.constant 0 : index
    %c0_42 = arith.constant 0 : index
    %73 = vector.load %arg17[%c0_41, %c0_42] : memref<64x32xbf16, #tpu.memory_space<vmem>>, vector<64x32xbf16>
    %c0_43 = arith.constant 0 : index
    %c0_44 = arith.constant 0 : index
    %74 = vector.load %arg18[%c0_43, %c0_44] : memref<1x32xf32, #tpu.memory_space<vmem>>, vector<1x32xf32>
    %cst_45 = arith.constant dense<0.000000e+00> : vector<8x32xf32>
    %75 = tpu.matmul %72, %73, %cst_45 {dimension_numbers = #tpu.dot_dimension_numbers<[1], [0], [0], [1], [0, 0, 1, 1], [], []>} : vector<8x64xbf16>, vector<64x32xbf16>, vector<8x32xf32> -> vector<8x32xf32>
    %76 = vector.broadcast %74 : vector<1x32xf32> to vector<8x32xf32>
    %77 = arith.addf %75, %76 : vector<8x32xf32>
    %78 = arith.addf %59, %77 : vector<8x32xf32>
    %c0_46 = arith.constant 0 : index
    %c0_47 = arith.constant 0 : index
    %79 = vector.load %arg19[%c0_46, %c0_47] : memref<32x64xbf16, #tpu.memory_space<vmem>>, vector<32x64xbf16>
    %c0_48 = arith.constant 0 : index
    %c0_49 = arith.constant 0 : index
    %80 = vector.load %arg20[%c0_48, %c0_49] : memref<1x64xf32, #tpu.memory_space<vmem>>, vector<1x64xf32>
    %81 = arith.truncf %78 : vector<8x32xf32> to vector<8x32xbf16>
    %cst_50 = arith.constant dense<0.000000e+00> : vector<8x64xf32>
    %82 = tpu.matmul %81, %79, %cst_50 {dimension_numbers = #tpu.dot_dimension_numbers<[1], [0], [0], [1], [0, 0, 1, 1], [], []>} : vector<8x32xbf16>, vector<32x64xbf16>, vector<8x64xf32> -> vector<8x64xf32>
    %83 = vector.broadcast %80 : vector<1x64xf32> to vector<8x64xf32>
    %84 = arith.addf %82, %83 : vector<8x64xf32>
    %c5 = arith.constant 5 : index
    %85 = memref.load %arg1[%c5] : memref<11xf32, #tpu.memory_space<smem>>
    %cst_51 = arith.constant 0.000000e+00 : f32
    %86 = vector.broadcast %cst_51 : f32 to vector<8x64xf32>
    %87 = arith.cmpf oge, %84, %86 : vector<8x64xf32>
    %88 = vector.broadcast %85 : f32 to vector<8x64xf32>
    %89 = arith.mulf %88, %84 : vector<8x64xf32>
    %90 = arith.select %87, %84, %89 : vector<8x64xi1>, vector<8x64xf32>
    %91 = arith.truncf %90 : vector<8x64xf32> to vector<8x64xbf16>
    %c0_52 = arith.constant 0 : index
    %c0_53 = arith.constant 0 : index
    %92 = vector.load %arg21[%c0_52, %c0_53] : memref<64x32xbf16, #tpu.memory_space<vmem>>, vector<64x32xbf16>
    %c0_54 = arith.constant 0 : index
    %c0_55 = arith.constant 0 : index
    %93 = vector.load %arg22[%c0_54, %c0_55] : memref<1x32xf32, #tpu.memory_space<vmem>>, vector<1x32xf32>
    %cst_56 = arith.constant dense<0.000000e+00> : vector<8x32xf32>
    %94 = tpu.matmul %91, %92, %cst_56 {dimension_numbers = #tpu.dot_dimension_numbers<[1], [0], [0], [1], [0, 0, 1, 1], [], []>} : vector<8x64xbf16>, vector<64x32xbf16>, vector<8x32xf32> -> vector<8x32xf32>
    %95 = vector.broadcast %93 : vector<1x32xf32> to vector<8x32xf32>
    %96 = arith.addf %94, %95 : vector<8x32xf32>
    %c0_57 = arith.constant 0 : index
    %c0_58 = arith.constant 0 : index
    %97 = vector.load %arg23[%c0_57, %c0_58] : memref<32x64xbf16, #tpu.memory_space<vmem>>, vector<32x64xbf16>
    %c0_59 = arith.constant 0 : index
    %c0_60 = arith.constant 0 : index
    %98 = vector.load %arg24[%c0_59, %c0_60] : memref<1x64xf32, #tpu.memory_space<vmem>>, vector<1x64xf32>
    %99 = arith.truncf %96 : vector<8x32xf32> to vector<8x32xbf16>
    %cst_61 = arith.constant dense<0.000000e+00> : vector<8x64xf32>
    %100 = tpu.matmul %99, %97, %cst_61 {dimension_numbers = #tpu.dot_dimension_numbers<[1], [0], [0], [1], [0, 0, 1, 1], [], []>} : vector<8x32xbf16>, vector<32x64xbf16>, vector<8x64xf32> -> vector<8x64xf32>
    %101 = vector.broadcast %98 : vector<1x64xf32> to vector<8x64xf32>
    %102 = arith.addf %100, %101 : vector<8x64xf32>
    %c6 = arith.constant 6 : index
    %103 = memref.load %arg1[%c6] : memref<11xf32, #tpu.memory_space<smem>>
    %cst_62 = arith.constant 0.000000e+00 : f32
    %104 = vector.broadcast %cst_62 : f32 to vector<8x64xf32>
    %105 = arith.cmpf oge, %102, %104 : vector<8x64xf32>
    %106 = vector.broadcast %103 : f32 to vector<8x64xf32>
    %107 = arith.mulf %106, %102 : vector<8x64xf32>
    %108 = arith.select %105, %102, %107 : vector<8x64xi1>, vector<8x64xf32>
    %109 = arith.truncf %108 : vector<8x64xf32> to vector<8x64xbf16>
    %c0_63 = arith.constant 0 : index
    %c0_64 = arith.constant 0 : index
    %110 = vector.load %arg25[%c0_63, %c0_64] : memref<64x64xbf16, #tpu.memory_space<vmem>>, vector<64x64xbf16>
    %c0_65 = arith.constant 0 : index
    %c0_66 = arith.constant 0 : index
    %111 = vector.load %arg26[%c0_65, %c0_66] : memref<1x64xf32, #tpu.memory_space<vmem>>, vector<1x64xf32>
    %cst_67 = arith.constant dense<0.000000e+00> : vector<8x64xf32>
    %112 = tpu.matmul %109, %110, %cst_67 {dimension_numbers = #tpu.dot_dimension_numbers<[1], [0], [0], [1], [0, 0, 1, 1], [], []>} : vector<8x64xbf16>, vector<64x64xbf16>, vector<8x64xf32> -> vector<8x64xf32>
    %113 = vector.broadcast %111 : vector<1x64xf32> to vector<8x64xf32>
    %114 = arith.addf %112, %113 : vector<8x64xf32>
    %c7 = arith.constant 7 : index
    %115 = memref.load %arg1[%c7] : memref<11xf32, #tpu.memory_space<smem>>
    %cst_68 = arith.constant 0.000000e+00 : f32
    %116 = vector.broadcast %cst_68 : f32 to vector<8x64xf32>
    %117 = arith.cmpf oge, %114, %116 : vector<8x64xf32>
    %118 = vector.broadcast %115 : f32 to vector<8x64xf32>
    %119 = arith.mulf %118, %114 : vector<8x64xf32>
    %120 = arith.select %117, %114, %119 : vector<8x64xi1>, vector<8x64xf32>
    %121 = arith.truncf %120 : vector<8x64xf32> to vector<8x64xbf16>
    %c0_69 = arith.constant 0 : index
    %c0_70 = arith.constant 0 : index
    %122 = vector.load %arg27[%c0_69, %c0_70] : memref<64x32xbf16, #tpu.memory_space<vmem>>, vector<64x32xbf16>
    %c0_71 = arith.constant 0 : index
    %c0_72 = arith.constant 0 : index
    %123 = vector.load %arg28[%c0_71, %c0_72] : memref<1x32xf32, #tpu.memory_space<vmem>>, vector<1x32xf32>
    %cst_73 = arith.constant dense<0.000000e+00> : vector<8x32xf32>
    %124 = tpu.matmul %121, %122, %cst_73 {dimension_numbers = #tpu.dot_dimension_numbers<[1], [0], [0], [1], [0, 0, 1, 1], [], []>} : vector<8x64xbf16>, vector<64x32xbf16>, vector<8x32xf32> -> vector<8x32xf32>
    %125 = vector.broadcast %123 : vector<1x32xf32> to vector<8x32xf32>
    %126 = arith.addf %124, %125 : vector<8x32xf32>
    %c0_74 = arith.constant 0 : index
    %c0_75 = arith.constant 0 : index
    %127 = vector.load %arg29[%c0_74, %c0_75] : memref<32x64xbf16, #tpu.memory_space<vmem>>, vector<32x64xbf16>
    %c0_76 = arith.constant 0 : index
    %c0_77 = arith.constant 0 : index
    %128 = vector.load %arg30[%c0_76, %c0_77] : memref<1x64xf32, #tpu.memory_space<vmem>>, vector<1x64xf32>
    %129 = arith.truncf %126 : vector<8x32xf32> to vector<8x32xbf16>
    %cst_78 = arith.constant dense<0.000000e+00> : vector<8x64xf32>
    %130 = tpu.matmul %129, %127, %cst_78 {dimension_numbers = #tpu.dot_dimension_numbers<[1], [0], [0], [1], [0, 0, 1, 1], [], []>} : vector<8x32xbf16>, vector<32x64xbf16>, vector<8x64xf32> -> vector<8x64xf32>
    %131 = vector.broadcast %128 : vector<1x64xf32> to vector<8x64xf32>
    %132 = arith.addf %130, %131 : vector<8x64xf32>
    %c8 = arith.constant 8 : index
    %133 = memref.load %arg1[%c8] : memref<11xf32, #tpu.memory_space<smem>>
    %cst_79 = arith.constant 0.000000e+00 : f32
    %134 = vector.broadcast %cst_79 : f32 to vector<8x64xf32>
    %135 = arith.cmpf oge, %132, %134 : vector<8x64xf32>
    %136 = vector.broadcast %133 : f32 to vector<8x64xf32>
    %137 = arith.mulf %136, %132 : vector<8x64xf32>
    %138 = arith.select %135, %132, %137 : vector<8x64xi1>, vector<8x64xf32>
    %139 = arith.truncf %138 : vector<8x64xf32> to vector<8x64xbf16>
    %c0_80 = arith.constant 0 : index
    %c0_81 = arith.constant 0 : index
    %140 = vector.load %arg31[%c0_80, %c0_81] : memref<64x32xbf16, #tpu.memory_space<vmem>>, vector<64x32xbf16>
    %c0_82 = arith.constant 0 : index
    %c0_83 = arith.constant 0 : index
    %141 = vector.load %arg32[%c0_82, %c0_83] : memref<1x32xf32, #tpu.memory_space<vmem>>, vector<1x32xf32>
    %cst_84 = arith.constant dense<0.000000e+00> : vector<8x32xf32>
    %142 = tpu.matmul %139, %140, %cst_84 {dimension_numbers = #tpu.dot_dimension_numbers<[1], [0], [0], [1], [0, 0, 1, 1], [], []>} : vector<8x64xbf16>, vector<64x32xbf16>, vector<8x32xf32> -> vector<8x32xf32>
    %143 = vector.broadcast %141 : vector<1x32xf32> to vector<8x32xf32>
    %144 = arith.addf %142, %143 : vector<8x32xf32>
    %145 = arith.addf %126, %144 : vector<8x32xf32>
    %c0_85 = arith.constant 0 : index
    %c0_86 = arith.constant 0 : index
    %146 = vector.load %arg33[%c0_85, %c0_86] : memref<32x64xbf16, #tpu.memory_space<vmem>>, vector<32x64xbf16>
    %c0_87 = arith.constant 0 : index
    %c0_88 = arith.constant 0 : index
    %147 = vector.load %arg34[%c0_87, %c0_88] : memref<1x64xf32, #tpu.memory_space<vmem>>, vector<1x64xf32>
    %148 = arith.truncf %145 : vector<8x32xf32> to vector<8x32xbf16>
    %cst_89 = arith.constant dense<0.000000e+00> : vector<8x64xf32>
    %149 = tpu.matmul %148, %146, %cst_89 {dimension_numbers = #tpu.dot_dimension_numbers<[1], [0], [0], [1], [0, 0, 1, 1], [], []>} : vector<8x32xbf16>, vector<32x64xbf16>, vector<8x64xf32> -> vector<8x64xf32>
    %150 = vector.broadcast %147 : vector<1x64xf32> to vector<8x64xf32>
    %151 = arith.addf %149, %150 : vector<8x64xf32>
    %c9 = arith.constant 9 : index
    %152 = memref.load %arg1[%c9] : memref<11xf32, #tpu.memory_space<smem>>
    %cst_90 = arith.constant 0.000000e+00 : f32
    %153 = vector.broadcast %cst_90 : f32 to vector<8x64xf32>
    %154 = arith.cmpf oge, %151, %153 : vector<8x64xf32>
    %155 = vector.broadcast %152 : f32 to vector<8x64xf32>
    %156 = arith.mulf %155, %151 : vector<8x64xf32>
    %157 = arith.select %154, %151, %156 : vector<8x64xi1>, vector<8x64xf32>
    %158 = arith.truncf %157 : vector<8x64xf32> to vector<8x64xbf16>
    %c0_91 = arith.constant 0 : index
    %c0_92 = arith.constant 0 : index
    %159 = vector.load %arg35[%c0_91, %c0_92] : memref<64x64xbf16, #tpu.memory_space<vmem>>, vector<64x64xbf16>
    %c0_93 = arith.constant 0 : index
    %c0_94 = arith.constant 0 : index
    %160 = vector.load %arg36[%c0_93, %c0_94] : memref<1x64xf32, #tpu.memory_space<vmem>>, vector<1x64xf32>
    %cst_95 = arith.constant dense<0.000000e+00> : vector<8x64xf32>
    %161 = tpu.matmul %158, %159, %cst_95 {dimension_numbers = #tpu.dot_dimension_numbers<[1], [0], [0], [1], [0, 0, 1, 1], [], []>} : vector<8x64xbf16>, vector<64x64xbf16>, vector<8x64xf32> -> vector<8x64xf32>
    %162 = vector.broadcast %160 : vector<1x64xf32> to vector<8x64xf32>
    %163 = arith.addf %161, %162 : vector<8x64xf32>
    %c10 = arith.constant 10 : index
    %164 = memref.load %arg1[%c10] : memref<11xf32, #tpu.memory_space<smem>>
    %cst_96 = arith.constant 0.000000e+00 : f32
    %165 = vector.broadcast %cst_96 : f32 to vector<8x64xf32>
    %166 = arith.cmpf oge, %163, %165 : vector<8x64xf32>
    %167 = vector.broadcast %164 : f32 to vector<8x64xf32>
    %168 = arith.mulf %167, %163 : vector<8x64xf32>
    %169 = arith.select %166, %163, %168 : vector<8x64xi1>, vector<8x64xf32>
    %170 = arith.truncf %169 : vector<8x64xf32> to vector<8x64xbf16>
    %c0_97 = arith.constant 0 : index
    %c0_98 = arith.constant 0 : index
    %171 = vector.load %arg37[%c0_97, %c0_98] : memref<64x32xbf16, #tpu.memory_space<vmem>>, vector<64x32xbf16>
    %c0_99 = arith.constant 0 : index
    %c0_100 = arith.constant 0 : index
    %172 = vector.load %arg38[%c0_99, %c0_100] : memref<1x32xf32, #tpu.memory_space<vmem>>, vector<1x32xf32>
    %cst_101 = arith.constant dense<0.000000e+00> : vector<8x32xf32>
    %173 = tpu.matmul %170, %171, %cst_101 {dimension_numbers = #tpu.dot_dimension_numbers<[1], [0], [0], [1], [0, 0, 1, 1], [], []>} : vector<8x64xbf16>, vector<64x32xbf16>, vector<8x32xf32> -> vector<8x32xf32>
    %174 = vector.broadcast %172 : vector<1x32xf32> to vector<8x32xf32>
    %175 = arith.addf %173, %174 : vector<8x32xf32>
    %c0_102 = arith.constant 0 : index
    %c0_103 = arith.constant 0 : index
    %176 = vector.load %arg39[%c0_102, %c0_103] : memref<32x1xbf16, #tpu.memory_space<vmem>>, vector<32x1xbf16>
    %c0_104 = arith.constant 0 : index
    %c0_105 = arith.constant 0 : index
    %177 = vector.load %arg40[%c0_104, %c0_105] : memref<1x1xf32, #tpu.memory_space<vmem>>, vector<1x1xf32>
    %178 = arith.truncf %175 : vector<8x32xf32> to vector<8x32xbf16>
    %cst_106 = arith.constant dense<0.000000e+00> : vector<8x1xf32>
    %179 = tpu.matmul %178, %176, %cst_106 {dimension_numbers = #tpu.dot_dimension_numbers<[1], [0], [0], [1], [0, 0, 1, 1], [], []>} : vector<8x32xbf16>, vector<32x1xbf16>, vector<8x1xf32> -> vector<8x1xf32>
    %180 = vector.broadcast %177 : vector<1x1xf32> to vector<8x1xf32>
    %181 = arith.addf %179, %180 : vector<8x1xf32>
    %c0_107 = arith.constant 0 : index
    %c0_108 = arith.constant 0 : index
    %182 = vector.load %arg41[%c0_107, %c0_108] : memref<8x1xf32, #tpu.memory_space<vmem>>, vector<8x1xf32>
    tpu.vector_store %arg41[%c0_107, %c0_108], %181 {strides = array<i32>} : memref<8x1xf32, #tpu.memory_space<vmem>>, vector<8x1xf32>,
    return
  }
  func.func @transform_0(%arg0: i32, %arg1: memref<11xf32, #tpu.memory_space<smem>>) -> (i32, i32) {
    %c0_i32 = arith.constant 0 : i32
    %c0_i32_0 = arith.constant 0 : i32
    return %arg0, %c0_i32 : i32, i32
  }
  func.func @transform_1(%arg0: i32, %arg1: memref<11xf32, #tpu.memory_space<smem>>) -> (i32, i32) {
    %c0_i32 = arith.constant 0 : i32
    %c0_i32_0 = arith.constant 0 : i32
    %c0_i32_1 = arith.constant 0 : i32
    return %c0_i32, %c0_i32_0 : i32, i32
  }
  func.func @transform_2(%arg0: i32, %arg1: memref<11xf32, #tpu.memory_space<smem>>) -> (i32, i32) {
    %c0_i32 = arith.constant 0 : i32
    %c0_i32_0 = arith.constant 0 : i32
    %c0_i32_1 = arith.constant 0 : i32
    return %c0_i32, %c0_i32_0 : i32, i32
  }
  func.func @transform_3(%arg0: i32, %arg1: memref<11xf32, #tpu.memory_space<smem>>) -> (i32, i32) {
    %c0_i32 = arith.constant 0 : i32
    %c0_i32_0 = arith.constant 0 : i32
    %c0_i32_1 = arith.constant 0 : i32
    return %c0_i32, %c0_i32_0 : i32, i32
  }
  func.func @transform_4(%arg0: i32, %arg1: memref<11xf32, #tpu.memory_space<smem>>) -> (i32, i32) {
    %c0_i32 = arith.constant 0 : i32
    %c0_i32_0 = arith.constant 0 : i32
    %c0_i32_1 = arith.constant 0 : i32
    return %c0_i32, %c0_i32_0 : i32, i32
  }
  func.func @transform_5(%arg0: i32, %arg1: memref<11xf32, #tpu.memory_space<smem>>) -> (i32, i32) {
    %c0_i32 = arith.constant 0 : i32
    %c0_i32_0 = arith.constant 0 : i32
    %c0_i32_1 = arith.constant 0 : i32
    return %c0_i32, %c0_i32_0 : i32, i32
  }
  func.func @transform_6(%arg0: i32, %arg1: memref<11xf32, #tpu.memory_space<smem>>) -> (i32, i32) {
    %c0_i32 = arith.constant 0 : i32
    %c0_i32_0 = arith.constant 0 : i32
    %c0_i32_1 = arith.constant 0 : i32
    return %c0_i32, %c0_i32_0 : i32, i32
  }
  func.func @transform_7(%arg0: i32, %arg1: memref<11xf32, #tpu.memory_space<smem>>) -> (i32, i32) {
    %c0_i32 = arith.constant 0 : i32
    %c0_i32_0 = arith.constant 0 : i32
    %c0_i32_1 = arith.constant 0 : i32
    return %c0_i32, %c0_i32_0 : i32, i32
  }
  func.func @transform_8(%arg0: i32, %arg1: memref<11xf32, #tpu.memory_space<smem>>) -> (i32, i32) {
    %c0_i32 = arith.constant 0 : i32
    %c0_i32_0 = arith.constant 0 : i32
    %c0_i32_1 = arith.constant 0 : i32
    return %c0_i32, %c0_i32_0 : i32, i32
  }
  func.func @transform_9(%arg0: i32, %arg1: memref<11xf32, #tpu.memory_space<smem>>) -> (i32, i32) {
    %c0_i32 = arith.constant 0 : i32
    %c0_i32_0 = arith.constant 0 : i32
    %c0_i32_1 = arith.constant 0 : i32
    return %c0_i32, %c0_i32_0 : i32, i32
  }
  func.func @transform_10(%arg0: i32, %arg1: memref<11xf32, #tpu.memory_space<smem>>) -> (i32, i32) {
    %c0_i32 = arith.constant 0 : i32
    %c0_i32_0 = arith.constant 0 : i32
    %c0_i32_1 = arith.constant 0 : i32
    return %c0_i32, %c0_i32_0 : i32, i32
  }
  func.func @transform_11(%arg0: i32, %arg1: memref<11xf32, #tpu.memory_space<smem>>) -> (i32, i32) {
    %c0_i32 = arith.constant 0 : i32
    %c0_i32_0 = arith.constant 0 : i32
    %c0_i32_1 = arith.constant 0 : i32
    return %c0_i32, %c0_i32_0 : i32, i32
  }
  func.func @transform_12(%arg0: i32, %arg1: memref<11xf32, #tpu.memory_space<smem>>) -> (i32, i32) {
    %c0_i32 = arith.constant 0 : i32
    %c0_i32_0 = arith.constant 0 : i32
    %c0_i32_1 = arith.constant 0 : i32
    return %c0_i32, %c0_i32_0 : i32, i32
  }
  func.func @transform_13(%arg0: i32, %arg1: memref<11xf32, #tpu.memory_space<smem>>) -> (i32, i32) {
    %c0_i32 = arith.constant 0 : i32
    %c0_i32_0 = arith.constant 0 : i32
    %c0_i32_1 = arith.constant 0 : i32
    return %c0_i32, %c0_i32_0 : i32, i32
  }
  func.func @transform_14(%arg0: i32, %arg1: memref<11xf32, #tpu.memory_space<smem>>) -> (i32, i32) {
    %c0_i32 = arith.constant 0 : i32
    %c0_i32_0 = arith.constant 0 : i32
    %c0_i32_1 = arith.constant 0 : i32
    return %c0_i32, %c0_i32_0 : i32, i32
  }
  func.func @transform_15(%arg0: i32, %arg1: memref<11xf32, #tpu.memory_space<smem>>) -> (i32, i32) {
    %c0_i32 = arith.constant 0 : i32
    %c0_i32_0 = arith.constant 0 : i32
    %c0_i32_1 = arith.constant 0 : i32
    return %c0_i32, %c0_i32_0 : i32, i32
  }
  func.func @transform_16(%arg0: i32, %arg1: memref<11xf32, #tpu.memory_space<smem>>) -> (i32, i32) {
    %c0_i32 = arith.constant 0 : i32
    %c0_i32_0 = arith.constant 0 : i32
    %c0_i32_1 = arith.constant 0 : i32
    return %c0_i32, %c0_i32_0 : i32, i32
  }
  func.func @transform_17(%arg0: i32, %arg1: memref<11xf32, #tpu.memory_space<smem>>) -> (i32, i32) {
    %c0_i32 = arith.constant 0 : i32
    %c0_i32_0 = arith.constant 0 : i32
    %c0_i32_1 = arith.constant 0 : i32
    return %c0_i32, %c0_i32_0 : i32, i32
  }
  func.func @transform_18(%arg0: i32, %arg1: memref<11xf32, #tpu.memory_space<smem>>) -> (i32, i32) {
    %c0_i32 = arith.constant 0 : i32
    %c0_i32_0 = arith.constant 0 : i32
    %c0_i32_1 = arith.constant 0 : i32
    return %c0_i32, %c0_i32_0 : i32, i32
  }
  func.func @transform_19(%arg0: i32, %arg1: memref<11xf32, #tpu.memory_space<smem>>) -> (i32, i32) {
    %c0_i32 = arith.constant 0 : i32
    %c0_i32_0 = arith.constant 0 : i32
    %c0_i32_1 = arith.constant 0 : i32
    return %c0_i32, %c0_i32_0 : i32, i32
  }
  func.func @transform_20(%arg0: i32, %arg1: memref<11xf32, #tpu.memory_space<smem>>) -> (i32, i32) {
    %c0_i32 = arith.constant 0 : i32
    %c0_i32_0 = arith.constant 0 : i32
    %c0_i32_1 = arith.constant 0 : i32
    return %c0_i32, %c0_i32_0 : i32, i32
  }
  func.func @transform_21(%arg0: i32, %arg1: memref<11xf32, #tpu.memory_space<smem>>) -> (i32, i32) {
    %c0_i32 = arith.constant 0 : i32
    %c0_i32_0 = arith.constant 0 : i32
    %c0_i32_1 = arith.constant 0 : i32
    return %c0_i32, %c0_i32_0 : i32, i32
  }
  func.func @transform_22(%arg0: i32, %arg1: memref<11xf32, #tpu.memory_space<smem>>) -> (i32, i32) {
    %c0_i32 = arith.constant 0 : i32
    %c0_i32_0 = arith.constant 0 : i32
    %c0_i32_1 = arith.constant 0 : i32
    return %c0_i32, %c0_i32_0 : i32, i32
  }
  func.func @transform_23(%arg0: i32, %arg1: memref<11xf32, #tpu.memory_space<smem>>) -> (i32, i32) {
    %c0_i32 = arith.constant 0 : i32
    %c0_i32_0 = arith.constant 0 : i32
    %c0_i32_1 = arith.constant 0 : i32
    return %c0_i32, %c0_i32_0 : i32, i32
  }
  func.func @transform_24(%arg0: i32, %arg1: memref<11xf32, #tpu.memory_space<smem>>) -> (i32, i32) {
    %c0_i32 = arith.constant 0 : i32
    %c0_i32_0 = arith.constant 0 : i32
    %c0_i32_1 = arith.constant 0 : i32
    return %c0_i32, %c0_i32_0 : i32, i32
  }
  func.func @transform_25(%arg0: i32, %arg1: memref<11xf32, #tpu.memory_space<smem>>) -> (i32, i32) {
    %c0_i32 = arith.constant 0 : i32
    %c0_i32_0 = arith.constant 0 : i32
    %c0_i32_1 = arith.constant 0 : i32
    return %c0_i32, %c0_i32_0 : i32, i32
  }
  func.func @transform_26(%arg0: i32, %arg1: memref<11xf32, #tpu.memory_space<smem>>) -> (i32, i32) {
    %c0_i32 = arith.constant 0 : i32
    %c0_i32_0 = arith.constant 0 : i32
    %c0_i32_1 = arith.constant 0 : i32
    return %c0_i32, %c0_i32_0 : i32, i32
  }
  func.func @transform_27(%arg0: i32, %arg1: memref<11xf32, #tpu.memory_space<smem>>) -> (i32, i32) {
    %c0_i32 = arith.constant 0 : i32
    %c0_i32_0 = arith.constant 0 : i32
    %c0_i32_1 = arith.constant 0 : i32
    return %c0_i32, %c0_i32_0 : i32, i32
  }
  func.func @transform_28(%arg0: i32, %arg1: memref<11xf32, #tpu.memory_space<smem>>) -> (i32, i32) {
    %c0_i32 = arith.constant 0 : i32
    %c0_i32_0 = arith.constant 0 : i32
    %c0_i32_1 = arith.constant 0 : i32
    return %c0_i32, %c0_i32_0 : i32, i32
  }
  func.func @transform_29(%arg0: i32, %arg1: memref<11xf32, #tpu.memory_space<smem>>) -> (i32, i32) {
    %c0_i32 = arith.constant 0 : i32
    %c0_i32_0 = arith.constant 0 : i32
    %c0_i32_1 = arith.constant 0 : i32
    return %c0_i32, %c0_i32_0 : i32, i32
  }
  func.func @transform_30(%arg0: i32, %arg1: memref<11xf32, #tpu.memory_space<smem>>) -> (i32, i32) {
    %c0_i32 = arith.constant 0 : i32
    %c0_i32_0 = arith.constant 0 : i32
    %c0_i32_1 = arith.constant 0 : i32
    return %c0_i32, %c0_i32_0 : i32, i32
  }
  func.func @transform_31(%arg0: i32, %arg1: memref<11xf32, #tpu.memory_space<smem>>) -> (i32, i32) {
    %c0_i32 = arith.constant 0 : i32
    %c0_i32_0 = arith.constant 0 : i32
    %c0_i32_1 = arith.constant 0 : i32
    return %c0_i32, %c0_i32_0 : i32, i32
  }
  func.func @transform_32(%arg0: i32, %arg1: memref<11xf32, #tpu.memory_space<smem>>) -> (i32, i32) {
    %c0_i32 = arith.constant 0 : i32
    %c0_i32_0 = arith.constant 0 : i32
    %c0_i32_1 = arith.constant 0 : i32
    return %c0_i32, %c0_i32_0 : i32, i32
  }
  func.func @transform_33(%arg0: i32, %arg1: memref<11xf32, #tpu.memory_space<smem>>) -> (i32, i32) {
    %c0_i32 = arith.constant 0 : i32
    %c0_i32_0 = arith.constant 0 : i32
    %c0_i32_1 = arith.constant 0 : i32
    return %c0_i32, %c0_i32_0 : i32, i32
  }
  func.func @transform_34(%arg0: i32, %arg1: memref<11xf32, #tpu.memory_space<smem>>) -> (i32, i32) {
    %c0_i32 = arith.constant 0 : i32
    %c0_i32_0 = arith.constant 0 : i32
    %c0_i32_1 = arith.constant 0 : i32
    return %c0_i32, %c0_i32_0 : i32, i32
  }
  func.func @transform_35(%arg0: i32, %arg1: memref<11xf32, #tpu.memory_space<smem>>) -> (i32, i32) {
    %c0_i32 = arith.constant 0 : i32
    %c0_i32_0 = arith.constant 0 : i32
    %c0_i32_1 = arith.constant 0 : i32
    return %c0_i32, %c0_i32_0 : i32, i32
  }
  func.func @transform_36(%arg0: i32, %arg1: memref<11xf32, #tpu.memory_space<smem>>) -> (i32, i32) {
    %c0_i32 = arith.constant 0 : i32
    %c0_i32_0 = arith.constant 0 : i32
    %c0_i32_1 = arith.constant 0 : i32
    return %c0_i32, %c0_i32_0 : i32, i32
  }
  func.func @transform_37(%arg0: i32, %arg1: memref<11xf32, #tpu.memory_space<smem>>) -> (i32, i32) {
    %c0_i32 = arith.constant 0 : i32
    %c0_i32_0 = arith.constant 0 : i32
    %c0_i32_1 = arith.constant 0 : i32
    return %c0_i32, %c0_i32_0 : i32, i32
  }
  func.func @transform_38(%arg0: i32, %arg1: memref<11xf32, #tpu.memory_space<smem>>) -> (i32, i32) {
    %c0_i32 = arith.constant 0 : i32
    %c0_i32_0 = arith.constant 0 : i32
    %c0_i32_1 = arith.constant 0 : i32
    return %c0_i32, %c0_i32_0 : i32, i32
  }
  func.func @transform_39(%arg0: i32, %arg1: memref<11xf32, #tpu.memory_space<smem>>) -> (i32, i32) {
    %c0_i32 = arith.constant 0 : i32
    %c0_i32_0 = arith.constant 0 : i32
    return %arg0, %c0_i32 : i32, i32
  }
}

module attributes {stable_mosaic.version = 11 : i64} {
  func.func @_mv_kernel(%arg0: i32, %arg1: memref<11xf32, #tpu.memory_space<smem>>, %arg2: memref<8x39xbf16, #tpu.memory_space<vmem>>, %arg3: memref<39x64xbf16, #tpu.memory_space<vmem>>, %arg4: memref<1x64xf32, #tpu.memory_space<vmem>>, %arg5: memref<64x64xbf16, #tpu.memory_space<vmem>>, %arg6: memref<1x64xf32, #tpu.memory_space<vmem>>, %arg7: memref<64x32xbf16, #tpu.memory_space<vmem>>, %arg8: memref<1x32xf32, #tpu.memory_space<vmem>>, %arg9: memref<32x64xbf16, #tpu.memory_space<vmem>>, %arg10: memref<1x64xf32, #tpu.memory_space<vmem>>, %arg11: memref<64x64xbf16, #tpu.memory_space<vmem>>, %arg12: memref<1x64xf32, #tpu.memory_space<vmem>>, %arg13: memref<64x32xbf16, #tpu.memory_space<vmem>>, %arg14: memref<1x32xf32, #tpu.memory_space<vmem>>, %arg15: memref<32x64xbf16, #tpu.memory_space<vmem>>, %arg16: memref<1x64xf32, #tpu.memory_space<vmem>>, %arg17: memref<64x32xbf16, #tpu.memory_space<vmem>>, %arg18: memref<1x32xf32, #tpu.memory_space<vmem>>, %arg19: memref<32x64xbf16, #tpu.memory_space<vmem>>, %arg20: memref<1x64xf32, #tpu.memory_space<vmem>>, %arg21: memref<64x32xbf16, #tpu.memory_space<vmem>>, %arg22: memref<1x32xf32, #tpu.memory_space<vmem>>, %arg23: memref<32x64xbf16, #tpu.memory_space<vmem>>, %arg24: memref<1x64xf32, #tpu.memory_space<vmem>>, %arg25: memref<64x64xbf16, #tpu.memory_space<vmem>>, %arg26: memref<1x64xf32, #tpu.memory_space<vmem>>, %arg27: memref<64x32xbf16, #tpu.memory_space<vmem>>, %arg28: memref<1x32xf32, #tpu.memory_space<vmem>>, %arg29: memref<32x64xbf16, #tpu.memory_space<vmem>>, %arg30: memref<1x64xf32, #tpu.memory_space<vmem>>, %arg31: memref<64x32xbf16, #tpu.memory_space<vmem>>, %arg32: memref<1x32xf32, #tpu.memory_space<vmem>>, %arg33: memref<32x64xbf16, #tpu.memory_space<vmem>>, %arg34: memref<1x64xf32, #tpu.memory_space<vmem>>, %arg35: memref<64x64xbf16, #tpu.memory_space<vmem>>, %arg36: memref<1x64xf32, #tpu.memory_space<vmem>>, %arg37: memref<64x32xbf16, #tpu.memory_space<vmem>>, %arg38: memref<1x32xf32, #tpu.memory_space<vmem>>, %arg39: memref<32x1xbf16, #tpu.memory_space<vmem>>, %arg40: memref<1x1xf32, #tpu.memory_space<vmem>>, %arg41: memref<8x1xf32, #tpu.memory_space<vmem>>) attributes {dimension_semantics = [#tpu.dimension_semantics<parallel>], iteration_bounds = array<i64: 1>, scalar_prefetch = 1 : i64, scratch_operands = 0 : i64, tpu.core_type = #tpu.core_type<tc>, window_params = [{transform_indices = @transform_0, window_bounds = array<i64: 8, 39>}, {pipeline_mode = #tpu.pipeline_mode<synchronous>, transform_indices = @transform_1, window_bounds = array<i64: 39, 64>}, {pipeline_mode = #tpu.pipeline_mode<synchronous>, transform_indices = @transform_2, window_bounds = array<i64: 1, 64>}, {pipeline_mode = #tpu.pipeline_mode<synchronous>, transform_indices = @transform_3, window_bounds = array<i64: 64, 64>}, {pipeline_mode = #tpu.pipeline_mode<synchronous>, transform_indices = @transform_4, window_bounds = array<i64: 1, 64>}, {pipeline_mode = #tpu.pipeline_mode<synchronous>, transform_indices = @transform_5, window_bounds = array<i64: 64, 32>}, {pipeline_mode = #tpu.pipeline_mode<synchronous>, transform_indices = @transform_6, window_bounds = array<i64: 1, 32>}, {pipeline_mode = #tpu.pipeline_mode<synchronous>, transform_indices = @transform_7, window_bounds = array<i64: 32, 64>}, {pipeline_mode = #tpu.pipeline_mode<synchronous>, transform_indices = @transform_8, window_bounds = array<i64: 1, 64>}, {pipeline_mode = #tpu.pipeline_mode<synchronous>, transform_indices = @transform_9, window_bounds = array<i64: 64, 64>}, {pipeline_mode = #tpu.pipeline_mode<synchronous>, transform_indices = @transform_10, window_bounds = array<i64: 1, 64>}, {pipeline_mode = #tpu.pipeline_mode<synchronous>, transform_indices = @transform_11, window_bounds = array<i64: 64, 32>}, {pipeline_mode = #tpu.pipeline_mode<synchronous>, transform_indices = @transform_12, window_bounds = array<i64: 1, 32>}, {pipeline_mode = #tpu.pipeline_mode<synchronous>, transform_indices = @transform_13, window_bounds = array<i64: 32, 64>}, {pipeline_mode = #tpu.pipeline_mode<synchronous>, transform_indices = @transform_14, window_bounds = array<i64: 1, 64>}, {pipeline_mode = #tpu.pipeline_mode<synchronous>, transform_indices = @transform_15, window_bounds = array<i64: 64, 32>}, {pipeline_mode = #tpu.pipeline_mode<synchronous>, transform_indices = @transform_16, window_bounds = array<i64: 1, 32>}, {pipeline_mode = #tpu.pipeline_mode<synchronous>, transform_indices = @transform_17, window_bounds = array<i64: 32, 64>}, {pipeline_mode = #tpu.pipeline_mode<synchronous>, transform_indices = @transform_18, window_bounds = array<i64: 1, 64>}, {pipeline_mode = #tpu.pipeline_mode<synchronous>, transform_indices = @transform_19, window_bounds = array<i64: 64, 32>}, {pipeline_mode = #tpu.pipeline_mode<synchronous>, transform_indices = @transform_20, window_bounds = array<i64: 1, 32>}, {pipeline_mode = #tpu.pipeline_mode<synchronous>, transform_indices = @transform_21, window_bounds = array<i64: 32, 64>}, {pipeline_mode = #tpu.pipeline_mode<synchronous>, transform_indices = @transform_22, window_bounds = array<i64: 1, 64>}, {pipeline_mode = #tpu.pipeline_mode<synchronous>, transform_indices = @transform_23, window_bounds = array<i64: 64, 64>}, {pipeline_mode = #tpu.pipeline_mode<synchronous>, transform_indices = @transform_24, window_bounds = array<i64: 1, 64>}, {pipeline_mode = #tpu.pipeline_mode<synchronous>, transform_indices = @transform_25, window_bounds = array<i64: 64, 32>}, {pipeline_mode = #tpu.pipeline_mode<synchronous>, transform_indices = @transform_26, window_bounds = array<i64: 1, 32>}, {pipeline_mode = #tpu.pipeline_mode<synchronous>, transform_indices = @transform_27, window_bounds = array<i64: 32, 64>}, {pipeline_mode = #tpu.pipeline_mode<synchronous>, transform_indices = @transform_28, window_bounds = array<i64: 1, 64>}, {pipeline_mode = #tpu.pipeline_mode<synchronous>, transform_indices = @transform_29, window_bounds = array<i64: 64, 32>}, {pipeline_mode = #tpu.pipeline_mode<synchronous>, transform_indices = @transform_30, window_bounds = array<i64: 1, 32>}, {pipeline_mode = #tpu.pipeline_mode<synchronous>, transform_indices = @transform_31, window_bounds = array<i64: 32, 64>}, {pipeline_mode = #tpu.pipeline_mode<synchronous>, transform_indices = @transform_32, window_bounds = array<i64: 1, 64>}, {pipeline_mode = #tpu.pipeline_mode<synchronous>, transform_indices = @transform_33, window_bounds = array<i64: 64, 64>}, {pipeline_mode = #tpu.pipeline_mode<synchronous>, transform_indices = @transform_34, window_bounds = array<i64: 1, 64>}, {pipeline_mode = #tpu.pipeline_mode<synchronous>, transform_indices = @transform_35, window_bounds = array<i64: 64, 32>}, {pipeline_mode = #tpu.pipeline_mode<synchronous>, transform_indices = @transform_36, window_bounds = array<i64: 1, 32>}, {pipeline_mode = #tpu.pipeline_mode<synchronous>, transform_indices = @transform_37, window_bounds = array<i64: 32, 1>}, {pipeline_mode = #tpu.pipeline_mode<synchronous>, transform_indices = @transform_38, window_bounds = array<i64: 1, 1>}, {transform_indices = @transform_39, window_bounds = array<i64: 8, 1>}]} {
    %c0 = arith.constant 0 : index
    %c0_0 = arith.constant 0 : index
    %0 = vector.load %arg2[%c0, %c0_0] : memref<8x39xbf16, #tpu.memory_space<vmem>>, vector<8x39xbf16>
    %c0_1 = arith.constant 0 : index
    %c0_2 = arith.constant 0 : index
    %1 = vector.load %arg3[%c0_1, %c0_2] : memref<39x64xbf16, #tpu.memory_space<vmem>>, vector<39x64xbf16>
    %c0_3 = arith.constant 0 : index
    %c0_4 = arith.constant 0 : index
    %2 = vector.load %arg4[%c0_3, %c0_4] : memref<1x64xf32, #tpu.memory_space<vmem>>, vector<1x64xf32>
    %cst = arith.constant dense<0.000000e+00> : vector<8x64xf32>
    %3 = tpu.matmul %0, %1, %cst {dimension_numbers = #tpu.dot_dimension_numbers<[1], [0], [0], [1], [0, 0, 1, 1], [], []>} : vector<8x39xbf16>, vector<39x64xbf16>, vector<8x64xf32> -> vector<8x64xf32>
    %4 = vector.broadcast %2 : vector<1x64xf32> to vector<8x64xf32>
    %5 = arith.addf %3, %4 : vector<8x64xf32>
    %c0_5 = arith.constant 0 : index
    %6 = memref.load %arg1[%c0_5] : memref<11xf32, #tpu.memory_space<smem>>
    %cst_6 = arith.constant 0.000000e+00 : f32
    %7 = vector.broadcast %cst_6 : f32 to vector<8x64xf32>
    %8 = arith.cmpf oge, %5, %7 : vector<8x64xf32>
    %9 = vector.broadcast %6 : f32 to vector<8x64xf32>
    %10 = arith.mulf %9, %5 : vector<8x64xf32>
    %11 = arith.select %8, %5, %10 : vector<8x64xi1>, vector<8x64xf32>
    %12 = arith.truncf %11 : vector<8x64xf32> to vector<8x64xbf16>
    %c0_7 = arith.constant 0 : index
    %c0_8 = arith.constant 0 : index
    %13 = vector.load %arg5[%c0_7, %c0_8] : memref<64x64xbf16, #tpu.memory_space<vmem>>, vector<64x64xbf16>
    %c0_9 = arith.constant 0 : index
    %c0_10 = arith.constant 0 : index
    %14 = vector.load %arg6[%c0_9, %c0_10] : memref<1x64xf32, #tpu.memory_space<vmem>>, vector<1x64xf32>
    %cst_11 = arith.constant dense<0.000000e+00> : vector<8x64xf32>
    %15 = tpu.matmul %12, %13, %cst_11 {dimension_numbers = #tpu.dot_dimension_numbers<[1], [0], [0], [1], [0, 0, 1, 1], [], []>} : vector<8x64xbf16>, vector<64x64xbf16>, vector<8x64xf32> -> vector<8x64xf32>
    %16 = vector.broadcast %14 : vector<1x64xf32> to vector<8x64xf32>
    %17 = arith.addf %15, %16 : vector<8x64xf32>
    %c1 = arith.constant 1 : index
    %18 = memref.load %arg1[%c1] : memref<11xf32, #tpu.memory_space<smem>>
    %cst_12 = arith.constant 0.000000e+00 : f32
    %19 = vector.broadcast %cst_12 : f32 to vector<8x64xf32>
    %20 = arith.cmpf oge, %17, %19 : vector<8x64xf32>
    %21 = vector.broadcast %18 : f32 to vector<8x64xf32>
    %22 = arith.mulf %21, %17 : vector<8x64xf32>
    %23 = arith.select %20, %17, %22 : vector<8x64xi1>, vector<8x64xf32>
    %24 = arith.truncf %23 : vector<8x64xf32> to vector<8x64xbf16>
    %c0_13 = arith.constant 0 : index
    %c0_14 = arith.constant 0 : index
    %25 = vector.load %arg7[%c0_13, %c0_14] : memref<64x32xbf16, #tpu.memory_space<vmem>>, vector<64x32xbf16>
    %c0_15 = arith.constant 0 : index
    %c0_16 = arith.constant 0 : index
    %26 = vector.load %arg8[%c0_15, %c0_16] : memref<1x32xf32, #tpu.memory_space<vmem>>, vector<1x32xf32>
    %cst_17 = arith.constant dense<0.000000e+00> : vector<8x32xf32>
    %27 = tpu.matmul %24, %25, %cst_17 {dimension_numbers = #tpu.dot_dimension_numbers<[1], [0], [0], [1], [0, 0, 1, 1], [], []>} : vector<8x64xbf16>, vector<64x32xbf16>, vector<8x32xf32> -> vector<8x32xf32>
    %28 = vector.broadcast %26 : vector<1x32xf32> to vector<8x32xf32>
    %29 = arith.addf %27, %28 : vector<8x32xf32>
    %c0_18 = arith.constant 0 : index
    %c0_19 = arith.constant 0 : index
    %30 = vector.load %arg9[%c0_18, %c0_19] : memref<32x64xbf16, #tpu.memory_space<vmem>>, vector<32x64xbf16>
    %c0_20 = arith.constant 0 : index
    %c0_21 = arith.constant 0 : index
    %31 = vector.load %arg10[%c0_20, %c0_21] : memref<1x64xf32, #tpu.memory_space<vmem>>, vector<1x64xf32>
    %32 = arith.truncf %29 : vector<8x32xf32> to vector<8x32xbf16>
    %cst_22 = arith.constant dense<0.000000e+00> : vector<8x64xf32>
    %33 = tpu.matmul %32, %30, %cst_22 {dimension_numbers = #tpu.dot_dimension_numbers<[1], [0], [0], [1], [0, 0, 1, 1], [], []>} : vector<8x32xbf16>, vector<32x64xbf16>, vector<8x64xf32> -> vector<8x64xf32>
    %34 = vector.broadcast %31 : vector<1x64xf32> to vector<8x64xf32>
    %35 = arith.addf %33, %34 : vector<8x64xf32>
    %c2 = arith.constant 2 : index
    %36 = memref.load %arg1[%c2] : memref<11xf32, #tpu.memory_space<smem>>
    %cst_23 = arith.constant 0.000000e+00 : f32
    %37 = vector.broadcast %cst_23 : f32 to vector<8x64xf32>
    %38 = arith.cmpf oge, %35, %37 : vector<8x64xf32>
    %39 = vector.broadcast %36 : f32 to vector<8x64xf32>
    %40 = arith.mulf %39, %35 : vector<8x64xf32>
    %41 = arith.select %38, %35, %40 : vector<8x64xi1>, vector<8x64xf32>
    %42 = arith.truncf %41 : vector<8x64xf32> to vector<8x64xbf16>
    %c0_24 = arith.constant 0 : index
    %c0_25 = arith.constant 0 : index
    %43 = vector.load %arg11[%c0_24, %c0_25] : memref<64x64xbf16, #tpu.memory_space<vmem>>, vector<64x64xbf16>
    %c0_26 = arith.constant 0 : index
    %c0_27 = arith.constant 0 : index
    %44 = vector.load %arg12[%c0_26, %c0_27] : memref<1x64xf32, #tpu.memory_space<vmem>>, vector<1x64xf32>
    %cst_28 = arith.constant dense<0.000000e+00> : vector<8x64xf32>
    %45 = tpu.matmul %42, %43, %cst_28 {dimension_numbers = #tpu.dot_dimension_numbers<[1], [0], [0], [1], [0, 0, 1, 1], [], []>} : vector<8x64xbf16>, vector<64x64xbf16>, vector<8x64xf32> -> vector<8x64xf32>
    %46 = vector.broadcast %44 : vector<1x64xf32> to vector<8x64xf32>
    %47 = arith.addf %45, %46 : vector<8x64xf32>
    %c3 = arith.constant 3 : index
    %48 = memref.load %arg1[%c3] : memref<11xf32, #tpu.memory_space<smem>>
    %cst_29 = arith.constant 0.000000e+00 : f32
    %49 = vector.broadcast %cst_29 : f32 to vector<8x64xf32>
    %50 = arith.cmpf oge, %47, %49 : vector<8x64xf32>
    %51 = vector.broadcast %48 : f32 to vector<8x64xf32>
    %52 = arith.mulf %51, %47 : vector<8x64xf32>
    %53 = arith.select %50, %47, %52 : vector<8x64xi1>, vector<8x64xf32>
    %54 = arith.truncf %53 : vector<8x64xf32> to vector<8x64xbf16>
    %c0_30 = arith.constant 0 : index
    %c0_31 = arith.constant 0 : index
    %55 = vector.load %arg13[%c0_30, %c0_31] : memref<64x32xbf16, #tpu.memory_space<vmem>>, vector<64x32xbf16>
    %c0_32 = arith.constant 0 : index
    %c0_33 = arith.constant 0 : index
    %56 = vector.load %arg14[%c0_32, %c0_33] : memref<1x32xf32, #tpu.memory_space<vmem>>, vector<1x32xf32>
    %cst_34 = arith.constant dense<0.000000e+00> : vector<8x32xf32>
    %57 = tpu.matmul %54, %55, %cst_34 {dimension_numbers = #tpu.dot_dimension_numbers<[1], [0], [0], [1], [0, 0, 1, 1], [], []>} : vector<8x64xbf16>, vector<64x32xbf16>, vector<8x32xf32> -> vector<8x32xf32>
    %58 = vector.broadcast %56 : vector<1x32xf32> to vector<8x32xf32>
    %59 = arith.addf %57, %58 : vector<8x32xf32>
    %c0_35 = arith.constant 0 : index
    %c0_36 = arith.constant 0 : index
    %60 = vector.load %arg15[%c0_35, %c0_36] : memref<32x64xbf16, #tpu.memory_space<vmem>>, vector<32x64xbf16>
    %c0_37 = arith.constant 0 : index
    %c0_38 = arith.constant 0 : index
    %61 = vector.load %arg16[%c0_37, %c0_38] : memref<1x64xf32, #tpu.memory_space<vmem>>, vector<1x64xf32>
    %62 = arith.truncf %59 : vector<8x32xf32> to vector<8x32xbf16>
    %cst_39 = arith.constant dense<0.000000e+00> : vector<8x64xf32>
    %63 = tpu.matmul %62, %60, %cst_39 {dimension_numbers = #tpu.dot_dimension_numbers<[1], [0], [0], [1], [0, 0, 1, 1], [], []>} : vector<8x32xbf16>, vector<32x64xbf16>, vector<8x64xf32> -> vector<8x64xf32>
    %64 = vector.broadcast %61 : vector<1x64xf32> to vector<8x64xf32>
    %65 = arith.addf %63, %64 : vector<8x64xf32>
    %c4 = arith.constant 4 : index
    %66 = memref.load %arg1[%c4] : memref<11xf32, #tpu.memory_space<smem>>
    %cst_40 = arith.constant 0.000000e+00 : f32
    %67 = vector.broadcast %cst_40 : f32 to vector<8x64xf32>
    %68 = arith.cmpf oge, %65, %67 : vector<8x64xf32>
    %69 = vector.broadcast %66 : f32 to vector<8x64xf32>
    %70 = arith.mulf %69, %65 : vector<8x64xf32>
    %71 = arith.select %68, %65, %70 : vector<8x64xi1>, vector<8x64xf32>
    %72 = arith.truncf %71 : vector<8x64xf32> to vector<8x64xbf16>
    %c0_41 = arith.constant 0 : index
    %c0_42 = arith.constant 0 : index
    %73 = vector.load %arg17[%c0_41, %c0_42] : memref<64x32xbf16, #tpu.memory_space<vmem>>, vector<64x32xbf16>
    %c0_43 = arith.constant 0 : index
    %c0_44 = arith.constant 0 : index
    %74 = vector.load %arg18[%c0_43, %c0_44] : memref<1x32xf32, #tpu.memory_space<vmem>>, vector<1x32xf32>
    %cst_45 = arith.constant dense<0.000000e+00> : vector<8x32xf32>
    %75 = tpu.matmul %72, %73, %cst_45 {dimension_numbers = #tpu.dot_dimension_numbers<[1], [0], [0], [1], [0, 0, 1, 1], [], []>} : vector<8x64xbf16>, vector<64x32xbf16>, vector<8x32xf32> -> vector<8x32xf32>
    %76 = vector.broadcast %74 : vector<1x32xf32> to vector<8x32xf32>
    %77 = arith.addf %75, %76 : vector<8x32xf32>
    %78 = arith.addf %59, %77 : vector<8x32xf32>
    %c0_46 = arith.constant 0 : index
    %c0_47 = arith.constant 0 : index
    %79 = vector.load %arg19[%c0_46, %c0_47] : memref<32x64xbf16, #tpu.memory_space<vmem>>, vector<32x64xbf16>
    %c0_48 = arith.constant 0 : index
    %c0_49 = arith.constant 0 : index
    %80 = vector.load %arg20[%c0_48, %c0_49] : memref<1x64xf32, #tpu.memory_space<vmem>>, vector<1x64xf32>
    %81 = arith.truncf %78 : vector<8x32xf32> to vector<8x32xbf16>
    %cst_50 = arith.constant dense<0.000000e+00> : vector<8x64xf32>
    %82 = tpu.matmul %81, %79, %cst_50 {dimension_numbers = #tpu.dot_dimension_numbers<[1], [0], [0], [1], [0, 0, 1, 1], [], []>} : vector<8x32xbf16>, vector<32x64xbf16>, vector<8x64xf32> -> vector<8x64xf32>
    %83 = vector.broadcast %80 : vector<1x64xf32> to vector<8x64xf32>
    %84 = arith.addf %82, %83 : vector<8x64xf32>
    %c5 = arith.constant 5 : index
    %85 = memref.load %arg1[%c5] : memref<11xf32, #tpu.memory_space<smem>>
    %cst_51 = arith.constant 0.000000e+00 : f32
    %86 = vector.broadcast %cst_51 : f32 to vector<8x64xf32>
    %87 = arith.cmpf oge, %84, %86 : vector<8x64xf32>
    %88 = vector.broadcast %85 : f32 to vector<8x64xf32>
    %89 = arith.mulf %88, %84 : vector<8x64xf32>
    %90 = arith.select %87, %84, %89 : vector<8x64xi1>, vector<8x64xf32>
    %91 = arith.truncf %90 : vector<8x64xf32> to vector<8x64xbf16>
    %c0_52 = arith.constant 0 : index
    %c0_53 = arith.constant 0 : index
    %92 = vector.load %arg21[%c0_52, %c0_53] : memref<64x32xbf16, #tpu.memory_space<vmem>>, vector<64x32xbf16>
    %c0_54 = arith.constant 0 : index
    %c0_55 = arith.constant 0 : index
    %93 = vector.load %arg22[%c0_54, %c0_55] : memref<1x32xf32, #tpu.memory_space<vmem>>, vector<1x32xf32>
    %cst_56 = arith.constant dense<0.000000e+00> : vector<8x32xf32>
    %94 = tpu.matmul %91, %92, %cst_56 {dimension_numbers = #tpu.dot_dimension_numbers<[1], [0], [0], [1], [0, 0, 1, 1], [], []>} : vector<8x64xbf16>, vector<64x32xbf16>, vector<8x32xf32> -> vector<8x32xf32>
    %95 = vector.broadcast %93 : vector<1x32xf32> to vector<8x32xf32>
    %96 = arith.addf %94, %95 : vector<8x32xf32>
    %c0_57 = arith.constant 0 : index
    %c0_58 = arith.constant 0 : index
    %97 = vector.load %arg23[%c0_57, %c0_58] : memref<32x64xbf16, #tpu.memory_space<vmem>>, vector<32x64xbf16>
    %c0_59 = arith.constant 0 : index
    %c0_60 = arith.constant 0 : index
    %98 = vector.load %arg24[%c0_59, %c0_60] : memref<1x64xf32, #tpu.memory_space<vmem>>, vector<1x64xf32>
    %99 = arith.truncf %96 : vector<8x32xf32> to vector<8x32xbf16>
    %cst_61 = arith.constant dense<0.000000e+00> : vector<8x64xf32>
    %100 = tpu.matmul %99, %97, %cst_61 {dimension_numbers = #tpu.dot_dimension_numbers<[1], [0], [0], [1], [0, 0, 1, 1], [], []>} : vector<8x32xbf16>, vector<32x64xbf16>, vector<8x64xf32> -> vector<8x64xf32>
    %101 = vector.broadcast %98 : vector<1x64xf32> to vector<8x64xf32>
    %102 = arith.addf %100, %101 : vector<8x64xf32>
    %c6 = arith.constant 6 : index
    %103 = memref.load %arg1[%c6] : memref<11xf32, #tpu.memory_space<smem>>
    %cst_62 = arith.constant 0.000000e+00 : f32
    %104 = vector.broadcast %cst_62 : f32 to vector<8x64xf32>
    %105 = arith.cmpf oge, %102, %104 : vector<8x64xf32>
    %106 = vector.broadcast %103 : f32 to vector<8x64xf32>
    %107 = arith.mulf %106, %102 : vector<8x64xf32>
    %108 = arith.select %105, %102, %107 : vector<8x64xi1>, vector<8x64xf32>
    %109 = arith.truncf %108 : vector<8x64xf32> to vector<8x64xbf16>
    %c0_63 = arith.constant 0 : index
    %c0_64 = arith.constant 0 : index
    %110 = vector.load %arg25[%c0_63, %c0_64] : memref<64x64xbf16, #tpu.memory_space<vmem>>, vector<64x64xbf16>
    %c0_65 = arith.constant 0 : index
    %c0_66 = arith.constant 0 : index
    %111 = vector.load %arg26[%c0_65, %c0_66] : memref<1x64xf32, #tpu.memory_space<vmem>>, vector<1x64xf32>
    %cst_67 = arith.constant dense<0.000000e+00> : vector<8x64xf32>
    %112 = tpu.matmul %109, %110, %cst_67 {dimension_numbers = #tpu.dot_dimension_numbers<[1], [0], [0], [1], [0, 0, 1, 1], [], []>} : vector<8x64xbf16>, vector<64x64xbf16>, vector<8x64xf32> -> vector<8x64xf32>
    %113 = vector.broadcast %111 : vector<1x64xf32> to vector<8x64xf32>
    %114 = arith.addf %112, %113 : vector<8x64xf32>
    %c7 = arith.constant 7 : index
    %115 = memref.load %arg1[%c7] : memref<11xf32, #tpu.memory_space<smem>>
    %cst_68 = arith.constant 0.000000e+00 : f32
    %116 = vector.broadcast %cst_68 : f32 to vector<8x64xf32>
    %117 = arith.cmpf oge, %114, %116 : vector<8x64xf32>
    %118 = vector.broadcast %115 : f32 to vector<8x64xf32>
    %119 = arith.mulf %118, %114 : vector<8x64xf32>
    %120 = arith.select %117, %114, %119 : vector<8x64xi1>, vector<8x64xf32>
    %121 = arith.truncf %120 : vector<8x64xf32> to vector<8x64xbf16>
    %c0_69 = arith.constant 0 : index
    %c0_70 = arith.constant 0 : index
    %122 = vector.load %arg27[%c0_69, %c0_70] : memref<64x32xbf16, #tpu.memory_space<vmem>>, vector<64x32xbf16>
    %c0_71 = arith.constant 0 : index
    %c0_72 = arith.constant 0 : index
    %123 = vector.load %arg28[%c0_71, %c0_72] : memref<1x32xf32, #tpu.memory_space<vmem>>, vector<1x32xf32>
    %cst_73 = arith.constant dense<0.000000e+00> : vector<8x32xf32>
    %124 = tpu.matmul %121, %122, %cst_73 {dimension_numbers = #tpu.dot_dimension_numbers<[1], [0], [0], [1], [0, 0, 1, 1], [], []>} : vector<8x64xbf16>, vector<64x32xbf16>, vector<8x32xf32> -> vector<8x32xf32>
    %125 = vector.broadcast %123 : vector<1x32xf32> to vector<8x32xf32>
    %126 = arith.addf %124, %125 : vector<8x32xf32>
    %c0_74 = arith.constant 0 : index
    %c0_75 = arith.constant 0 : index
    %127 = vector.load %arg29[%c0_74, %c0_75] : memref<32x64xbf16, #tpu.memory_space<vmem>>, vector<32x64xbf16>
    %c0_76 = arith.constant 0 : index
    %c0_77 = arith.constant 0 : index
    %128 = vector.load %arg30[%c0_76, %c0_77] : memref<1x64xf32, #tpu.memory_space<vmem>>, vector<1x64xf32>
    %129 = arith.truncf %126 : vector<8x32xf32> to vector<8x32xbf16>
    %cst_78 = arith.constant dense<0.000000e+00> : vector<8x64xf32>
    %130 = tpu.matmul %129, %127, %cst_78 {dimension_numbers = #tpu.dot_dimension_numbers<[1], [0], [0], [1], [0, 0, 1, 1], [], []>} : vector<8x32xbf16>, vector<32x64xbf16>, vector<8x64xf32> -> vector<8x64xf32>
    %131 = vector.broadcast %128 : vector<1x64xf32> to vector<8x64xf32>
    %132 = arith.addf %130, %131 : vector<8x64xf32>
    %c8 = arith.constant 8 : index
    %133 = memref.load %arg1[%c8] : memref<11xf32, #tpu.memory_space<smem>>
    %cst_79 = arith.constant 0.000000e+00 : f32
    %134 = vector.broadcast %cst_79 : f32 to vector<8x64xf32>
    %135 = arith.cmpf oge, %132, %134 : vector<8x64xf32>
    %136 = vector.broadcast %133 : f32 to vector<8x64xf32>
    %137 = arith.mulf %136, %132 : vector<8x64xf32>
    %138 = arith.select %135, %132, %137 : vector<8x64xi1>, vector<8x64xf32>
    %139 = arith.truncf %138 : vector<8x64xf32> to vector<8x64xbf16>
    %c0_80 = arith.constant 0 : index
    %c0_81 = arith.constant 0 : index
    %140 = vector.load %arg31[%c0_80, %c0_81] : memref<64x32xbf16, #tpu.memory_space<vmem>>, vector<64x32xbf16>
    %c0_82 = arith.constant 0 : index
    %c0_83 = arith.constant 0 : index
    %141 = vector.load %arg32[%c0_82, %c0_83] : memref<1x32xf32, #tpu.memory_space<vmem>>, vector<1x32xf32>
    %cst_84 = arith.constant dense<0.000000e+00> : vector<8x32xf32>
    %142 = tpu.matmul %139, %140, %cst_84 {dimension_numbers = #tpu.dot_dimension_numbers<[1], [0], [0], [1], [0, 0, 1, 1], [], []>} : vector<8x64xbf16>, vector<64x32xbf16>, vector<8x32xf32> -> vector<8x32xf32>
    %143 = vector.broadcast %141 : vector<1x32xf32> to vector<8x32xf32>
    %144 = arith.addf %142, %143 : vector<8x32xf32>
    %145 = arith.addf %126, %144 : vector<8x32xf32>
    %c0_85 = arith.constant 0 : index
    %c0_86 = arith.constant 0 : index
    %146 = vector.load %arg33[%c0_85, %c0_86] : memref<32x64xbf16, #tpu.memory_space<vmem>>, vector<32x64xbf16>
    %c0_87 = arith.constant 0 : index
    %c0_88 = arith.constant 0 : index
    %147 = vector.load %arg34[%c0_87, %c0_88] : memref<1x64xf32, #tpu.memory_space<vmem>>, vector<1x64xf32>
    %148 = arith.truncf %145 : vector<8x32xf32> to vector<8x32xbf16>
    %cst_89 = arith.constant dense<0.000000e+00> : vector<8x64xf32>
    %149 = tpu.matmul %148, %146, %cst_89 {dimension_numbers = #tpu.dot_dimension_numbers<[1], [0], [0], [1], [0, 0, 1, 1], [], []>} : vector<8x32xbf16>, vector<32x64xbf16>, vector<8x64xf32> -> vector<8x64xf32>
    %150 = vector.broadcast %147 : vector<1x64xf32> to vector<8x64xf32>
    %151 = arith.addf %149, %150 : vector<8x64xf32>
    %c9 = arith.constant 9 : index
    %152 = memref.load %arg1[%c9] : memref<11xf32, #tpu.memory_space<smem>>
    %cst_90 = arith.constant 0.000000e+00 : f32
    %153 = vector.broadcast %cst_90 : f32 to vector<8x64xf32>
    %154 = arith.cmpf oge, %151, %153 : vector<8x64xf32>
    %155 = vector.broadcast %152 : f32 to vector<8x64xf32>
    %156 = arith.mulf %155, %151 : vector<8x64xf32>
    %157 = arith.select %154, %151, %156 : vector<8x64xi1>, vector<8x64xf32>
    %158 = arith.truncf %157 : vector<8x64xf32> to vector<8x64xbf16>
    %c0_91 = arith.constant 0 : index
    %c0_92 = arith.constant 0 : index
    %159 = vector.load %arg35[%c0_91, %c0_92] : memref<64x64xbf16, #tpu.memory_space<vmem>>, vector<64x64xbf16>
    %c0_93 = arith.constant 0 : index
    %c0_94 = arith.constant 0 : index
    %160 = vector.load %arg36[%c0_93, %c0_94] : memref<1x64xf32, #tpu.memory_space<vmem>>, vector<1x64xf32>
    %cst_95 = arith.constant dense<0.000000e+00> : vector<8x64xf32>
    %161 = tpu.matmul %158, %159, %cst_95 {dimension_numbers = #tpu.dot_dimension_numbers<[1], [0], [0], [1], [0, 0, 1, 1], [], []>} : vector<8x64xbf16>, vector<64x64xbf16>, vector<8x64xf32> -> vector<8x64xf32>
    %162 = vector.broadcast %160 : vector<1x64xf32> to vector<8x64xf32>
    %163 = arith.addf %161, %162 : vector<8x64xf32>
    %c10 = arith.constant 10 : index
    %164 = memref.load %arg1[%c10] : memref<11xf32, #tpu.memory_space<smem>>
    %cst_96 = arith.constant 0.000000e+00 : f32
    %165 = vector.broadcast %cst_96 : f32 to vector<8x64xf32>
    %166 = arith.cmpf oge, %163, %165 : vector<8x64xf32>
    %167 = vector.broadcast %164 : f32 to vector<8x64xf32>
    %168 = arith.mulf %167, %163 : vector<8x64xf32>
    %169 = arith.select %166, %163, %168 : vector<8x64xi1>, vector<8x64xf32>
    %170 = arith.truncf %169 : vector<8x64xf32> to vector<8x64xbf16>
    %c0_97 = arith.constant 0 : index
    %c0_98 = arith.constant 0 : index
    %171 = vector.load %arg37[%c0_97, %c0_98] : memref<64x32xbf16, #tpu.memory_space<vmem>>, vector<64x32xbf16>
    %c0_99 = arith.constant 0 : index
    %c0_100 = arith.constant 0 : index
    %172 = vector.load %arg38[%c0_99, %c0_100] : memref<1x32xf32, #tpu.memory_space<vmem>>, vector<1x32xf32>
    %cst_101 = arith.constant dense<0.000000e+00> : vector<8x32xf32>
    %173 = tpu.matmul %170, %171, %cst_101 {dimension_numbers = #tpu.dot_dimension_numbers<[1], [0], [0], [1], [0, 0, 1, 1], [], []>} : vector<8x64xbf16>, vector<64x32xbf16>, vector<8x32xf32> -> vector<8x32xf32>
    %174 = vector.broadcast %172 : vector<1x32xf32> to vector<8x32xf32>
    %175 = arith.addf %173, %174 : vector<8x32xf32>
    %c0_102 = arith.constant 0 : index
    %c0_103 = arith.constant 0 : index
    %176 = vector.load %arg39[%c0_102, %c0_103] : memref<32x1xbf16, #tpu.memory_space<vmem>>, vector<32x1xbf16>
    %c0_104 = arith.constant 0 : index
    %c0_105 = arith.constant 0 : index
    %177 = vector.load %arg40[%c0_104, %c0_105] : memref<1x1xf32, #tpu.memory_space<vmem>>, vector<1x1xf32>
    %178 = arith.truncf %175 : vector<8x32xf32> to vector<8x32xbf16>
    %cst_106 = arith.constant dense<0.000000e+00> : vector<8x1xf32>
    %179 = tpu.matmul %178, %176, %cst_106 {dimension_numbers = #tpu.dot_dimension_numbers<[1], [0], [0], [1], [0, 0, 1, 1], [], []>} : vector<8x32xbf16>, vector<32x1xbf16>, vector<8x1xf32> -> vector<8x1xf32>
    %180 = vector.broadcast %177 : vector<1x1xf32> to vector<8x1xf32>
    %181 = arith.addf %179, %180 : vector<8x1xf32>
    %c0_107 = arith.constant 0 : index
    %c0_108 = arith.constant 0 : index
    %182 = vector.load %arg41[%c0_107, %c0_108] : memref<8x1xf32, #tpu.memory_space<vmem>>, vector<8x1xf32>
    tpu.vector_store %arg41[%c0_107, %c0_108], %181 {strides = array<i32>} : memref<8x1xf32, #tpu.memory_space<vmem>>, vector<8x1xf32>,
    return
  }
  func.func @transform_0(%arg0: i32, %arg1: memref<11xf32, #tpu.memory_space<smem>>) -> (i32, i32) {
    %c0_i32 = arith.constant 0 : i32
    %c0_i32_0 = arith.constant 0 : i32
    return %arg0, %c0_i32 : i32, i32
  }
  func.func @transform_1(%arg0: i32, %arg1: memref<11xf32, #tpu.memory_space<smem>>) -> (i32, i32) {
    %c0_i32 = arith.constant 0 : i32
    %c0_i32_0 = arith.constant 0 : i32
    %c0_i32_1 = arith.constant 0 : i32
    return %c0_i32, %c0_i32_0 : i32, i32
  }
  func.func @transform_2(%arg0: i32, %arg1: memref<11xf32, #tpu.memory_space<smem>>) -> (i32, i32) {
    %c0_i32 = arith.constant 0 : i32
    %c0_i32_0 = arith.constant 0 : i32
    %c0_i32_1 = arith.constant 0 : i32
    return %c0_i32, %c0_i32_0 : i32, i32
  }
  func.func @transform_3(%arg0: i32, %arg1: memref<11xf32, #tpu.memory_space<smem>>) -> (i32, i32) {
    %c0_i32 = arith.constant 0 : i32
    %c0_i32_0 = arith.constant 0 : i32
    %c0_i32_1 = arith.constant 0 : i32
    return %c0_i32, %c0_i32_0 : i32, i32
  }
  func.func @transform_4(%arg0: i32, %arg1: memref<11xf32, #tpu.memory_space<smem>>) -> (i32, i32) {
    %c0_i32 = arith.constant 0 : i32
    %c0_i32_0 = arith.constant 0 : i32
    %c0_i32_1 = arith.constant 0 : i32
    return %c0_i32, %c0_i32_0 : i32, i32
  }
  func.func @transform_5(%arg0: i32, %arg1: memref<11xf32, #tpu.memory_space<smem>>) -> (i32, i32) {
    %c0_i32 = arith.constant 0 : i32
    %c0_i32_0 = arith.constant 0 : i32
    %c0_i32_1 = arith.constant 0 : i32
    return %c0_i32, %c0_i32_0 : i32, i32
  }
  func.func @transform_6(%arg0: i32, %arg1: memref<11xf32, #tpu.memory_space<smem>>) -> (i32, i32) {
    %c0_i32 = arith.constant 0 : i32
    %c0_i32_0 = arith.constant 0 : i32
    %c0_i32_1 = arith.constant 0 : i32
    return %c0_i32, %c0_i32_0 : i32, i32
  }
  func.func @transform_7(%arg0: i32, %arg1: memref<11xf32, #tpu.memory_space<smem>>) -> (i32, i32) {
    %c0_i32 = arith.constant 0 : i32
    %c0_i32_0 = arith.constant 0 : i32
    %c0_i32_1 = arith.constant 0 : i32
    return %c0_i32, %c0_i32_0 : i32, i32
  }
  func.func @transform_8(%arg0: i32, %arg1: memref<11xf32, #tpu.memory_space<smem>>) -> (i32, i32) {
    %c0_i32 = arith.constant 0 : i32
    %c0_i32_0 = arith.constant 0 : i32
    %c0_i32_1 = arith.constant 0 : i32
    return %c0_i32, %c0_i32_0 : i32, i32
  }
  func.func @transform_9(%arg0: i32, %arg1: memref<11xf32, #tpu.memory_space<smem>>) -> (i32, i32) {
    %c0_i32 = arith.constant 0 : i32
    %c0_i32_0 = arith.constant 0 : i32
    %c0_i32_1 = arith.constant 0 : i32
    return %c0_i32, %c0_i32_0 : i32, i32
  }
  func.func @transform_10(%arg0: i32, %arg1: memref<11xf32, #tpu.memory_space<smem>>) -> (i32, i32) {
    %c0_i32 = arith.constant 0 : i32
    %c0_i32_0 = arith.constant 0 : i32
    %c0_i32_1 = arith.constant 0 : i32
    return %c0_i32, %c0_i32_0 : i32, i32
  }
  func.func @transform_11(%arg0: i32, %arg1: memref<11xf32, #tpu.memory_space<smem>>) -> (i32, i32) {
    %c0_i32 = arith.constant 0 : i32
    %c0_i32_0 = arith.constant 0 : i32
    %c0_i32_1 = arith.constant 0 : i32
    return %c0_i32, %c0_i32_0 : i32, i32
  }
  func.func @transform_12(%arg0: i32, %arg1: memref<11xf32, #tpu.memory_space<smem>>) -> (i32, i32) {
    %c0_i32 = arith.constant 0 : i32
    %c0_i32_0 = arith.constant 0 : i32
    %c0_i32_1 = arith.constant 0 : i32
    return %c0_i32, %c0_i32_0 : i32, i32
  }
  func.func @transform_13(%arg0: i32, %arg1: memref<11xf32, #tpu.memory_space<smem>>) -> (i32, i32) {
    %c0_i32 = arith.constant 0 : i32
    %c0_i32_0 = arith.constant 0 : i32
    %c0_i32_1 = arith.constant 0 : i32
    return %c0_i32, %c0_i32_0 : i32, i32
  }
  func.func @transform_14(%arg0: i32, %arg1: memref<11xf32, #tpu.memory_space<smem>>) -> (i32, i32) {
    %c0_i32 = arith.constant 0 : i32
    %c0_i32_0 = arith.constant 0 : i32
    %c0_i32_1 = arith.constant 0 : i32
    return %c0_i32, %c0_i32_0 : i32, i32
  }
  func.func @transform_15(%arg0: i32, %arg1: memref<11xf32, #tpu.memory_space<smem>>) -> (i32, i32) {
    %c0_i32 = arith.constant 0 : i32
    %c0_i32_0 = arith.constant 0 : i32
    %c0_i32_1 = arith.constant 0 : i32
    return %c0_i32, %c0_i32_0 : i32, i32
  }
  func.func @transform_16(%arg0: i32, %arg1: memref<11xf32, #tpu.memory_space<smem>>) -> (i32, i32) {
    %c0_i32 = arith.constant 0 : i32
    %c0_i32_0 = arith.constant 0 : i32
    %c0_i32_1 = arith.constant 0 : i32
    return %c0_i32, %c0_i32_0 : i32, i32
  }
  func.func @transform_17(%arg0: i32, %arg1: memref<11xf32, #tpu.memory_space<smem>>) -> (i32, i32) {
    %c0_i32 = arith.constant 0 : i32
    %c0_i32_0 = arith.constant 0 : i32
    %c0_i32_1 = arith.constant 0 : i32
    return %c0_i32, %c0_i32_0 : i32, i32
  }
  func.func @transform_18(%arg0: i32, %arg1: memref<11xf32, #tpu.memory_space<smem>>) -> (i32, i32) {
    %c0_i32 = arith.constant 0 : i32
    %c0_i32_0 = arith.constant 0 : i32
    %c0_i32_1 = arith.constant 0 : i32
    return %c0_i32, %c0_i32_0 : i32, i32
  }
  func.func @transform_19(%arg0: i32, %arg1: memref<11xf32, #tpu.memory_space<smem>>) -> (i32, i32) {
    %c0_i32 = arith.constant 0 : i32
    %c0_i32_0 = arith.constant 0 : i32
    %c0_i32_1 = arith.constant 0 : i32
    return %c0_i32, %c0_i32_0 : i32, i32
  }
  func.func @transform_20(%arg0: i32, %arg1: memref<11xf32, #tpu.memory_space<smem>>) -> (i32, i32) {
    %c0_i32 = arith.constant 0 : i32
    %c0_i32_0 = arith.constant 0 : i32
    %c0_i32_1 = arith.constant 0 : i32
    return %c0_i32, %c0_i32_0 : i32, i32
  }
  func.func @transform_21(%arg0: i32, %arg1: memref<11xf32, #tpu.memory_space<smem>>) -> (i32, i32) {
    %c0_i32 = arith.constant 0 : i32
    %c0_i32_0 = arith.constant 0 : i32
    %c0_i32_1 = arith.constant 0 : i32
    return %c0_i32, %c0_i32_0 : i32, i32
  }
  func.func @transform_22(%arg0: i32, %arg1: memref<11xf32, #tpu.memory_space<smem>>) -> (i32, i32) {
    %c0_i32 = arith.constant 0 : i32
    %c0_i32_0 = arith.constant 0 : i32
    %c0_i32_1 = arith.constant 0 : i32
    return %c0_i32, %c0_i32_0 : i32, i32
  }
  func.func @transform_23(%arg0: i32, %arg1: memref<11xf32, #tpu.memory_space<smem>>) -> (i32, i32) {
    %c0_i32 = arith.constant 0 : i32
    %c0_i32_0 = arith.constant 0 : i32
    %c0_i32_1 = arith.constant 0 : i32
    return %c0_i32, %c0_i32_0 : i32, i32
  }
  func.func @transform_24(%arg0: i32, %arg1: memref<11xf32, #tpu.memory_space<smem>>) -> (i32, i32) {
    %c0_i32 = arith.constant 0 : i32
    %c0_i32_0 = arith.constant 0 : i32
    %c0_i32_1 = arith.constant 0 : i32
    return %c0_i32, %c0_i32_0 : i32, i32
  }
  func.func @transform_25(%arg0: i32, %arg1: memref<11xf32, #tpu.memory_space<smem>>) -> (i32, i32) {
    %c0_i32 = arith.constant 0 : i32
    %c0_i32_0 = arith.constant 0 : i32
    %c0_i32_1 = arith.constant 0 : i32
    return %c0_i32, %c0_i32_0 : i32, i32
  }
  func.func @transform_26(%arg0: i32, %arg1: memref<11xf32, #tpu.memory_space<smem>>) -> (i32, i32) {
    %c0_i32 = arith.constant 0 : i32
    %c0_i32_0 = arith.constant 0 : i32
    %c0_i32_1 = arith.constant 0 : i32
    return %c0_i32, %c0_i32_0 : i32, i32
  }
  func.func @transform_27(%arg0: i32, %arg1: memref<11xf32, #tpu.memory_space<smem>>) -> (i32, i32) {
    %c0_i32 = arith.constant 0 : i32
    %c0_i32_0 = arith.constant 0 : i32
    %c0_i32_1 = arith.constant 0 : i32
    return %c0_i32, %c0_i32_0 : i32, i32
  }
  func.func @transform_28(%arg0: i32, %arg1: memref<11xf32, #tpu.memory_space<smem>>) -> (i32, i32) {
    %c0_i32 = arith.constant 0 : i32
    %c0_i32_0 = arith.constant 0 : i32
    %c0_i32_1 = arith.constant 0 : i32
    return %c0_i32, %c0_i32_0 : i32, i32
  }
  func.func @transform_29(%arg0: i32, %arg1: memref<11xf32, #tpu.memory_space<smem>>) -> (i32, i32) {
    %c0_i32 = arith.constant 0 : i32
    %c0_i32_0 = arith.constant 0 : i32
    %c0_i32_1 = arith.constant 0 : i32
    return %c0_i32, %c0_i32_0 : i32, i32
  }
  func.func @transform_30(%arg0: i32, %arg1: memref<11xf32, #tpu.memory_space<smem>>) -> (i32, i32) {
    %c0_i32 = arith.constant 0 : i32
    %c0_i32_0 = arith.constant 0 : i32
    %c0_i32_1 = arith.constant 0 : i32
    return %c0_i32, %c0_i32_0 : i32, i32
  }
  func.func @transform_31(%arg0: i32, %arg1: memref<11xf32, #tpu.memory_space<smem>>) -> (i32, i32) {
    %c0_i32 = arith.constant 0 : i32
    %c0_i32_0 = arith.constant 0 : i32
    %c0_i32_1 = arith.constant 0 : i32
    return %c0_i32, %c0_i32_0 : i32, i32
  }
  func.func @transform_32(%arg0: i32, %arg1: memref<11xf32, #tpu.memory_space<smem>>) -> (i32, i32) {
    %c0_i32 = arith.constant 0 : i32
    %c0_i32_0 = arith.constant 0 : i32
    %c0_i32_1 = arith.constant 0 : i32
    return %c0_i32, %c0_i32_0 : i32, i32
  }
  func.func @transform_33(%arg0: i32, %arg1: memref<11xf32, #tpu.memory_space<smem>>) -> (i32, i32) {
    %c0_i32 = arith.constant 0 : i32
    %c0_i32_0 = arith.constant 0 : i32
    %c0_i32_1 = arith.constant 0 : i32
    return %c0_i32, %c0_i32_0 : i32, i32
  }
  func.func @transform_34(%arg0: i32, %arg1: memref<11xf32, #tpu.memory_space<smem>>) -> (i32, i32) {
    %c0_i32 = arith.constant 0 : i32
    %c0_i32_0 = arith.constant 0 : i32
    %c0_i32_1 = arith.constant 0 : i32
    return %c0_i32, %c0_i32_0 : i32, i32
  }
  func.func @transform_35(%arg0: i32, %arg1: memref<11xf32, #tpu.memory_space<smem>>) -> (i32, i32) {
    %c0_i32 = arith.constant 0 : i32
    %c0_i32_0 = arith.constant 0 : i32
    %c0_i32_1 = arith.constant 0 : i32
    return %c0_i32, %c0_i32_0 : i32, i32
  }
  func.func @transform_36(%arg0: i32, %arg1: memref<11xf32, #tpu.memory_space<smem>>) -> (i32, i32) {
    %c0_i32 = arith.constant 0 : i32
    %c0_i32_0 = arith.constant 0 : i32
    %c0_i32_1 = arith.constant 0 : i32
    return %c0_i32, %c0_i32_0 : i32, i32
  }
  func.func @transform_37(%arg0: i32, %arg1: memref<11xf32, #tpu.memory_space<smem>>) -> (i32, i32) {
    %c0_i32 = arith.constant 0 : i32
    %c0_i32_0 = arith.constant 0 : i32
    %c0_i32_1 = arith.constant 0 : i32
    return %c0_i32, %c0_i32_0 : i32, i32
  }
  func.func @transform_38(%arg0: i32, %arg1: memref<11xf32, #tpu.memory_space<smem>>) -> (i32, i32) {
    %c0_i32 = arith.constant 0 : i32
    %c0_i32_0 = arith.constant 0 : i32
    %c0_i32_1 = arith.constant 0 : i32
    return %c0_i32, %c0_i32_0 : i32, i32
  }
  func.func @transform_39(%arg0: i32, %arg1: memref<11xf32, #tpu.memory_space<smem>>) -> (i32, i32) {
    %c0_i32 = arith.constant 0 : i32
    %c0_i32_0 = arith.constant 0 : i32
    return %arg0, %c0_i32 : i32, i32
  }
}

</mosaic_0001>

<bundles_post_ra>
// kernel: tpu_custom_call.1
= control target key start
LH: loop header
LB: loop body
LE: loop exit
PB: predicated region body
PF: predicated region fallthrough
CT: control target
= control target key end

     0   :  { %s2245_s6 = smov 1   ;;  %s2246_s10 = smov 2   ;;  %s2696_s0 = inlined_call_operand.smem [shape: u32[41], index: -1, kind: input, shape index: {}] }
   0x1   :  { %s2297_s5 = sld [smem:[%s2696_s0]]   ;;  %s2247_s14 = smov 3  }
   0x2   :  { %s2302_s9 = sld [smem:[%s2696_s0 + %s2245_s6]]   ;;  %s2248_s18 = smov 4  }
   0x3   :  { %s2307_s13 = sld [smem:[%s2696_s0 + %s2246_s10]]   ;;  %s2249_s22 = smov 5  }
   0x4   :  { %s2312_s17 = sld [smem:[%s2696_s0 + %s2247_s14]]   ;;  %s2250_s26 = smov 6  }
   0x5   :  { %s2317_s21 = sld [smem:[%s2696_s0 + %s2248_s18]]   ;;  %s2251_s30 = smov 7  }
   0x6   :  { %s2322_s25 = sld [smem:[%s2696_s0 + %s2249_s22]]   ;;  %s2252_s4 = smov 8  }
   0x7   :  { %s2327_s29 = sld [smem:[%s2696_s0 + %s2250_s26]]   ;;  %s2253_s10 = smov 9  }
   0x8   :  { %s2332_s3 = sld [smem:[%s2696_s0 + %s2251_s30]]   ;;  %s2254_s15 = smov 10  }
   0x9   :  { %s2337_s8 = sld [smem:[%s2696_s0 + %s2252_s4]]   ;;  %s2255_s20 = smov 11  }
   0xa   :  { %s2342_s14 = sld [smem:[%s2696_s0 + %s2253_s10]]   ;;  %s2256_s26 = smov 12  }
   0xb   :  { %s2347_s19 = sld [smem:[%s2696_s0 + %s2254_s15]]   ;;  %s2257_s1 = smov 13  }
   0xc   :  { %s2352_s24 = sld [smem:[%s2696_s0 + %s2255_s20]]   ;;  %s2258_s7 = smov 14  }
   0xd   :  { %s2357_s30 = sld [smem:[%s2696_s0 + %s2256_s26]]   ;;  %s2259_s15 = smov 15  }
   0xe   :  { %s2362_s6 = sld [smem:[%s2696_s0 + %s2257_s1]]   ;;  %s2260_s22 = smov 16  }
   0xf   :  { %s2367_s12 = sld [smem:[%s2696_s0 + %s2258_s7]]   ;;  %s2261_s28 = smov 17  }
  0x10   :  { %s2372_s20 = sld [smem:[%s2696_s0 + %s2259_s15]]   ;;  %s2262_s7 = smov 18  }
  0x11   :  { %s2377_s27 = sld [smem:[%s2696_s0 + %s2260_s22]]   ;;  %s2263_s15 = smov 19  }
  0x12   :  { %s2382_s4 = sld [smem:[%s2696_s0 + %s2261_s28]]   ;;  %s2264_s22 = smov 20  }
  0x13   :  { %s2265_s28 = smov 21  }
  0x14   :  { %2707 = sst [smem:[#allocation6_spill]] %s2362_s6 }
  0x15   :  { %s2387_s6 = sld [smem:[%s2696_s0 + %s2262_s7]]   ;;  %s2266_s7 = smov 22  }
  0x16   :  { %2708 = sst [smem:[#allocation7_spill]] %s2372_s20 }
  0x17   :  { %2709 = sst [smem:[#allocation8_spill]] %s2377_s27 }
  0x18   :  { %2710 = sst [smem:[#allocation9_spill]] %s2382_s4 }
  0x19   :  { %s2392_s20 = sld [smem:[%s2696_s0 + %s2263_s15]]   ;;  %s2267_s15 = smov 23  }
  0x1a   :  { %s2397_s27 = sld [smem:[%s2696_s0 + %s2264_s22]]   ;;  %s2268_s22 = smov 24  }
  0x1b   :  { %2711 = sst [smem:[#allocation10_spill]] %s2387_s6 }
  0x1c   :  { %s2402_s4 = sld [smem:[%s2696_s0 + %s2265_s28]]   ;;  %s2269_s28 = smov 25  }
  0x1d   :  { %s2407_s6 = sld [smem:[%s2696_s0 + %s2266_s7]]   ;;  %s2270_s7 = smov 26  }
  0x1f   :  { %2712 = sst [smem:[#allocation11_spill]] %s2392_s20 }
  0x20   :  { %2713 = sst [smem:[#allocation12_spill]] %s2397_s27 }
  0x21   :  { %s2412_s20 = sld [smem:[%s2696_s0 + %s2267_s15]]   ;;  %s2271_s15 = smov 27  }
  0x22   :  { %2714 = sst [smem:[#allocation13_spill]] %s2402_s4 }
  0x23   :  { %2715 = sst [smem:[#allocation14_spill]] %s2407_s6 }
  0x24   :  { %s2417_s27 = sld [smem:[%s2696_s0 + %s2268_s22]]   ;;  %s2272_s22 = smov 28  }
  0x25   :  { %s2422_s4 = sld [smem:[%s2696_s0 + %s2269_s28]]   ;;  %s2273_s28 = smov 29  }
  0x26   :  { %s2427_s6 = sld [smem:[%s2696_s0 + %s2270_s7]]   ;;  %s2274_s7 = smov 30  }
  0x27   :  { %2716 = sst [smem:[#allocation15_spill]] %s2412_s20 }
  0x28   :  { %s2432_s20 = sld [smem:[%s2696_s0 + %s2271_s15]]   ;;  %s2275_s15 = smov 31  }
  0x2a   :  { %2717 = sst [smem:[#allocation16_spill]] %s2417_s27 }
  0x2b   :  { %2718 = sst [smem:[#allocation17_spill]] %s2422_s4 }
  0x2c   :  { %2719 = sst [smem:[#allocation18_spill]] %s2427_s6 }
  0x2d   :  { %s2437_s27 = sld [smem:[%s2696_s0 + %s2272_s22]]   ;;  %s2276_s22 = smov 32  }
  0x2e   :  { %2720 = sst [smem:[#allocation19_spill]] %s2432_s20 }
  0x2f   :  { %s2442_s4 = sld [smem:[%s2696_s0 + %s2273_s28]]   ;;  %s2277_s28 = smov 33  }
  0x30   :  { %s2447_s6 = sld [smem:[%s2696_s0 + %s2274_s7]]   ;;  %s2278_s7 = smov 34  }
  0x31   :  { %s2452_s20 = sld [smem:[%s2696_s0 + %s2275_s15]]   ;;  %s2279_s15 = smov 35  }
  0x32   :  { %s2457_s1 = sld [smem:[%s2696_s0 + %s2276_s22]]   ;;  %s2280_s22 = smov 36  }
  0x33   :  { %2721 = sst [smem:[#allocation20_spill]] %s2437_s27 }
  0x34   :  { %s2462_s10 = sld [smem:[%s2696_s0 + %s2277_s28]]  }
  0x35   :  { %2722 = sst [smem:[#allocation21_spill]] %s2442_s4  ;;  %s2281_s4 = smov 37  }
  0x36   :  { %2723 = sst [smem:[#allocation22_spill]] %s2447_s6  ;;  %s2282_s6 = smov 38  }
  0x37   :  { %2724 = sst [smem:[#allocation23_spill]] %s2452_s20  ;;  %s2283_s20 = smov 40  }
  0x38   :  { %2725 = sst [smem:[#allocation24_spill]] %s2457_s1  ;;  %s86_s1 = sshll.u32 %s2297_s5, 4  ;;  %s87_s1 = int_to_ptr.vmem [resolvable:$true] %s86_s1 }
  0x39   :  { %s2467_s16 = sld [smem:[%s2696_s0 + %s2278_s7]]   ;;  %p2236_p1 = scmp.lt.s32.totalorder %s87_s1, %s87_s1 }
  0x3a   :  { %2726 = sst [smem:[#allocation25_spill]] %s2462_s10 }
  0x3b   :  { %s2472_s23 = sld [smem:[%s2696_s0 + %s2279_s15]]  }
  0x3c   :  { %s2477_s27 = sld [smem:[%s2696_s0 + %s2280_s22]]   ;;  %s2231_s22 = scalar_lea.vmem %s87_s1, 16 }
  0x3d   :  { %s2482_s10 = sld [smem:[%s2696_s0 + %s2281_s4]]   ;;  %p2232_p0 = scmp.ne.s32.totalorder %s87_s1, %s2231_s22 }
  0x3e   :  { %p2237_p2 = scmp.lt.s32.totalorder %s2231_s22, %s2231_s22 }
  0x3f   :  { %2727 = sst [smem:[#allocation26_spill]] %s2467_s16 }
  0x40   :  { %s2487_s16 = sld [smem:[%s2696_s0 + %s2282_s6]]   ;;  %p2238_p3 = por %p2237_p2, %p2236_p1 }
  0x41   :  { %2728 = sst [smem:[#allocation27_spill]] %s2472_s23 }
  0x42   :  { %s2492_s23 = sld [smem:[%s2696_s0 + %s2283_s20]]   ;;  %p2239_p4 = pnand %p2238_p3, %p2232_p0 }
  0x44   :  { %2242 = shalt.err (!%p2239_p4)  }
  0x45   :  { %s2284_s26 = smov [#allocation3]   ;;  %s2285_s4 = smov 39  }
  0x46   :  { %89 = dma.vmem_to_smem %s87_s1, 16, %s2284_s26, [#allocation2] }
  0x47   :  { %s1737_s6 = sld [smem:[%s2696_s0 + %s2285_s4]]  }
  0x4d   :  { %v90_v0 = vstv %s1737_s6 }
  0x4e   :  { %91 = vst [vmem:[#allocation4] sm:$0x1] %v90_v0 }
  0x4f   :  { %2243 = dma.done.wait [#allocation2], 16 }
  0x50   :  { %2244 = vsyncadd [#allocation2], 4294967280 }
  0x51   :  { %93 = sfence }
  0x52   :  { %v2170_v1 = vld [vmem:[%s2307_s13] sm:$0xff]   ;;  %v2286_v2 = vmov 0.0   ;;  %v2171_v3 = vld [vmem:[%s2307_s13 + $0x8] sm:$0xff]   ;;  %vm205_vm0 = vcmask 1042432   ;;  %v2172_v4 = vld [vmem:[%s2307_s13 + $0x10] ss:$0 sps:$4 sm:$0xff]  }
  0x53   :  { %1928 = vmatprep.subr.bf16.mxu0 %v2286_v2  ;;  %1938 = vmatprep.subr.bf16.mxu1 %v2286_v2  ;;  %vm206_vm1 = vcmask 1043456   ;;  %v2287_v5 = vmov 65535   ;;  %v2173_v7 = vld [vmem:[%s2317_s21] sm:$0xff]   ;;  %vm2288_vm2 = vmmov 0   ;;  %vm201_vm3 = vcmask 318464   ;;  %v2174_v9 = vld [vmem:[%s2317_s21 + $0x8] sm:$0xff]  }
  0x54   :  { %1929 = vmatpush3.bf16.msra.mxu0 %v2170_v1  ;;  %v207_v6 = vsel %vm205_vm0, 4294967295, %v2287_v5  ;;  %1934 = vmatprep.mubr.msk.bf16.mxu0 %vm2288_vm2, %v2286_v2  ;;  %v173_v11 = vld [vmem:[%s2302_s9] sm:$0xf]  ;;  %v2175_v12 = vld [vmem:[%s2317_s21 + $0x10] sm:$0xff]   ;;  %v2176_v13 = vld [vmem:[%s2317_s21 + $0x18] sm:$0xff]   ;;  %s252_s0 = sld [smem:[#allocation3]] }
  0x55   :  { %1930 = vmatprep.subr.bf16.mxu0 %v2286_v2  ;;  %v208_v8 = vsel %vm206_vm1, %v207_v6, 0  ;;  %1946 = vmatprep.mubr.msk.bf16.mxu1 %vm2288_vm2, %v2286_v2  ;;  %v2177_v14 = vld [vmem:[%s2327_s29] sm:$0xff]   ;;  %v2178_v15 = vld [vmem:[%s2327_s29 + $0x8] sm:$0xff]   ;;  %vm297_vm5 = vcmask 523264   ;;  %v2179_v26 = vld [vmem:[%s2327_s29 + $0x10] sm:$0xff]   ;;  %s1750_s5 = sld [smem:[#allocation3 + $0x1]] }
  0x56   :  { %1939 = vmatpush3.bf16.msra.mxu1 %v2173_v7  ;;  %v210_v10 = vand.u32 %v2172_v4, %v208_v8  ;;  %v1739_v16 = vld [vmem:[%s2312_s17] ss:$0 sm:$0xff]  ;;  %v2180_v27 = vld [vmem:[%s2327_s29 + $0x18] sm:$0xff]   ;;  %v2182_v39 = vld [vmem:[%s2337_s8 + $0x8] sm:$0xff]   ;;  %vm453_vm7 = vcmask 261120   ;;  %s1761_s9 = sld [smem:[#allocation3 + $0x2]] }
  0x57   :  { %1940 = vmatprep.subr.bf16.mxu1 %v2286_v2  ;;  %v2181_v28 = vld [vmem:[%s2337_s8] sm:$0xff]   ;;  %v2184_v48 = vld [vmem:[%s2347_s19 + $0x8] sm:$0xff]   ;;  %v2185_v49 = vld [vmem:[%s2347_s19 + $0x10] sm:$0xff]   ;;  %s1768_s13 = sld [smem:[#allocation3 + $0x3]]  ;;  %s2729_s17 = sld [smem:[#allocation8_spill]]  ;;  %vm1693_vm1 = vcmask 7168  }
  0x58   :  { %1931 = vmatpush3.bf16.msra.mxu0 %v2171_v3  ;;  %v1744_v29 = vld [vmem:[%s2322_s25] ss:$0 sm:$0xff]  ;;  %v2186_v50 = vld [vmem:[%s2347_s19 + $0x18] sm:$0xff]   ;;  %v2188_v52 = vld [vmem:[%s2357_s30 + $0x8] sm:$0xff]   ;;  %s2730_s21 = sld [smem:[#allocation6_spill]]  ;;  %s2731_s25 = sld [smem:[#allocation10_spill]] }
  0x59   :  { %1932 = vmatprep.subr.bf16.mxu0 %v2286_v2  ;;  %v1751_v40 = vld [vmem:[%s2332_s3] ss:$0 sm:$0xff]  ;;  %v2189_v63 = vld [vmem:[%s2357_s30 + $0x10] sm:$0xff]   ;;  %v2190_v0 = vld [vmem:[%s2357_s30 + $0x18] sm:$0xff]   ;;  %s2732_s29 = sld [smem:[#allocation7_spill]]  ;;  %s1779_s3 = sld [smem:[#allocation3 + $0x4]] }
  0x5a   :  { %1941 = vmatpush3.bf16.msra.mxu1 %v2174_v9  ;;  %v254_v18 = vstv %s252_s0  ;;  %v2183_v45 = vld [vmem:[%s2347_s19] sm:$0xff]   ;;  %s2733_s8 = sld [smem:[#allocation9_spill]]  ;;  %s2735_s19 = sld [smem:[#allocation14_spill]] }
  0x5b   :  { %1942 = vmatprep.subr.bf16.mxu1 %v2286_v2  ;;  %v343_v31 = vstv %s1750_s5  ;;  %v2187_v51 = vld [vmem:[%s2357_s30] sm:$0xff]   ;;  %s1790_s30 = sld [smem:[#allocation3 + $0x5]]  ;;  %s2738_s7 = sld [smem:[#allocation16_spill]] }
  0x5c   :  { %1933 = vmatpush3.bf16.msra.mxu0 %v210_v10  ;;  %v1757_v53 = vld [vmem:[%s2342_s14] ss:$0 sm:$0xff]  ;;  %v499_v55 = vstv %s1761_s9  ;;  %s2734_s14 = sld [smem:[#allocation12_spill]]  ;;  %s2739_s11 = sld [smem:[#allocation18_spill]] }
  0x5d   :  { %1950 = vmatprep.subr.bf16.mxu0 %v2286_v2  ;;  %v2191_v1 = vld [vmem:[%s2367_s12] sm:$0xff]   ;;  %v587_v5 = vstv %s1768_s13  ;;  %s2740_s20 = sld [smem:[#allocation15_spill]]  ;;  %s1801_s15 = sld [smem:[#allocation3 + $0x6]] }
  0x5e   :  { %1943 = vmatpush3.bf16.msra.mxu1 %v2175_v12  ;;  %v1762_v3 = vld [vmem:[%s2352_s24] ss:$0 sm:$0xff]  ;;  %s2736_s24 = sld [smem:[#allocation11_spill]]  ;;  %s2741_s18 = sld [smem:[#allocation20_spill]] }
  0x5f   :  { %1935 = vmatmul.mubr.msk.bf16.vlgmr.msra.gmra.mrb[0].mxu0 %vm201_vm3, %v173_v11  ;;  %1944 = vmatprep.subr.bf16.mxu1 %v2286_v2  ;;  %s2742_s1 = sld [smem:[#allocation17_spill]]  ;;  %s1808_s22 = sld [smem:[#allocation3 + $0x7]] }
  0x60   :  { %1958 = vmatprep.mubr.msk.bf16.mxu0 %vm2288_vm2, %v2286_v2  ;;  %1951 = vmatpush3.bf16.msra.mxu0 %v2177_v14  ;;  %v2193_v14 = vld [vmem:[%s2729_s17] sm:$0xff]   ;;  %s2743_s26 = sld [smem:[#allocation22_spill]]  ;;  %s2744_s4 = sld [smem:[#allocation19_spill]] }
  0x61   :  { %1952 = vmatprep.subr.bf16.mxu0 %v2286_v2  ;;  %s2745_s28 = sld [smem:[#allocation24_spill]]  ;;  %s2746_s2 = sld [smem:[#allocation21_spill]] }
  0x62   :  { %1945 = vmatpush3.bf16.msra.mxu1 %v2176_v13  ;;  %v2192_v13 = vld [vmem:[%s2367_s12 + $0x8] sm:$0xff]   ;;  %s2737_s12 = sld [smem:[#allocation13_spill]]  ;;  %s1819_s6 = sld [smem:[#allocation3 + $0x8]] }
  0x63   :  { %1962 = vmatprep.subr.bf16.mxu1 %v2286_v2  ;;  %s2747_s0 = sld [smem:[#allocation23_spill]]  ;;  %s2748_s5 = sld [smem:[#allocation26_spill]] }
  0x64   :  { %1953 = vmatpush3.bf16.msra.mxu0 %v2178_v15  ;;  %v2194_v15 = vld [vmem:[%s2729_s17 + $0x8] sm:$0xff]   ;;  %s2749_s9 = sld [smem:[#allocation25_spill]]  ;;  %s1830_s13 = sld [smem:[#allocation3 + $0x9]] }
  0x65   :  { %1954 = vmatprep.subr.bf16.mxu0 %v2286_v2 }
  0x68   :  { %1955 = vmatpush3.bf16.msra.mxu0 %v2179_v26  ;;  %v1775_v26 = vld [vmem:[%s2732_s29] ss:$0 sm:$0xff] }
  0x69   :  { %1956 = vmatprep.subr.bf16.mxu0 %v2286_v2 }
  0x6c   :  { %1957 = vmatpush3.bf16.msra.mxu0 %v2180_v27 }
  0x6d   :  { %1982 = vmatprep.subr.bf16.mxu0 %v2286_v2 }
 0x132   :  { %v246_v17 = vpop.f32.mrb[0].mxu0 }
 0x133   :  { %v247_v19 = vadd.f32 %v1739_v16, %v246_v17  ;;  %v1936_v20 = vpop.f32.mrb[1].mxu0  ;;  %v1769_v16 = vld [vmem:[%s2730_s21] ss:$0 sm:$0xff]  ;;  %s1837_s21 = sld [smem:[#allocation3 + $0xa]] }
 0x134   :  { %v249_v21 = vpop.f32.mrb[2].mxu0 }
 0x135   :  { %vm253_vm4 = vcmp.ge.f32.partialorder %v247_v19, 0.0  ;;  %v255_v22 = vmul.f32 %v254_v18, %v247_v19  ;;  %v1937_v23 = vpop.f32.mrb[3].mxu0 }
 0x136   :  { %v2195_v23 = vld [vmem:[%s2729_s17 + $0x10] sm:$0xff]  }
 0x137   :  { %v256_v24 = vsel %vm253_vm4, %v247_v19, %v255_v22 }
 0x138   :  { %v257_v25 = vpack.c.bf16 %v256_v24, %v256_v24  ;;  %v2196_v24 = vld [vmem:[%s2729_s17 + $0x18] sm:$0xff]   ;;  %s2750_s17 = sld [smem:[#allocation27_spill]] }
 0x13a   :  { %1947 = vmatmul.mubr.msk.bf16.vlgmr.msra.gmra.mrb[0].mxu1 %vm297_vm5, %v257_v25  ;;  %v2197_v25 = vld [vmem:[%s2731_s25] sm:$0xff]  }
 0x13b   :  { %1966 = vmatprep.mubr.msk.bf16.mxu1 %vm2288_vm2, %v2286_v2  ;;  %1963 = vmatpush3.bf16.msra.mxu1 %v2181_v28  ;;  %v742_v28 = vstv %s1779_s3 }
 0x13c   :  { %1964 = vmatprep.subr.bf16.mxu1 %v2286_v2 }
 0x13f   :  { %1965 = vmatpush3.bf16.msra.mxu1 %v2182_v39 }
 0x140   :  { %1970 = vmatprep.subr.bf16.mxu1 %v2286_v2 }
 0x20d   :  { %v335_v30 = vpop.f32.mrb[0].mxu1 }
 0x20e   :  { %v336_v32 = vadd.f32 %v1744_v29, %v335_v30  ;;  %v1948_v33 = vpop.f32.mrb[1].mxu1 }
 0x20f   :  { %v338_v34 = vpop.f32.mrb[2].mxu1 }
 0x210   :  { %vm342_vm6 = vcmp.ge.f32.partialorder %v336_v32, 0.0  ;;  %v344_v35 = vmul.f32 %v343_v31, %v336_v32  ;;  %v1949_v36 = vpop.f32.mrb[3].mxu1 }
 0x211   :  { %v2198_v36 = vld [vmem:[%s2731_s25 + $0x8] sm:$0xff]  }
 0x212   :  { %v345_v37 = vsel %vm342_vm6, %v336_v32, %v344_v35 }
 0x213   :  { %v346_v38 = vpack.c.bf16 %v345_v37, %v345_v37  ;;  %v1780_v37 = vld [vmem:[%s2733_s8] ss:$0 sm:$0xff] }
 0x215   :  { %1959 = vmatmul.mubr.msk.bf16.vlgmr.msra.gmra.mrb[4].mxu0 %vm297_vm5, %v346_v38 }
 0x216   :  { %1990 = vmatprep.mubr.msk.bf16.mxu0 %vm2288_vm2, %v2286_v2  ;;  %1983 = vmatpush3.bf16.msra.mxu0 %v2187_v51 }
 0x217   :  { %1984 = vmatprep.subr.bf16.mxu0 %v2286_v2 }
 0x21a   :  { %1985 = vmatpush3.bf16.msra.mxu0 %v2188_v52  ;;  %v898_v52 = vstv %s1790_s30 }
 0x21b   :  { %1986 = vmatprep.subr.bf16.mxu0 %v2286_v2 }
 0x21e   :  { %1987 = vmatpush3.bf16.msra.mxu0 %v2189_v63 }
 0x21f   :  { %1988 = vmatprep.subr.bf16.mxu0 %v2286_v2 }
 0x222   :  { %1989 = vmatpush3.bf16.msra.mxu0 %v2190_v0 }
 0x223   :  { %2002 = vmatprep.subr.bf16.mxu0 %v2286_v2 }
 0x2e8   :  { %v423_v41 = vpop.f32.mrb[4].mxu0 }
 0x2e9   :  { %v424_v42 = vadd.f32 %v1751_v40, %v423_v41  ;;  %v1960_v43 = vpop.f32.mrb[5].mxu0 }
 0x2ea   :  { %v426_v44 = vpop.f32.mrb[6].mxu0 }
 0x2eb   :  { %v434_v46 = vpack.c.bf16 %v424_v42, %v424_v42  ;;  %v1961_v47 = vpop.f32.mrb[7].mxu0  ;;  %v2199_v44 = vld [vmem:[%s2734_s14] sm:$0xff]  }
 0x2ec   :  { %v2201_v47 = vld [vmem:[%s2734_s14 + $0x10] sm:$0xff]  }
 0x2ed   :  { %1967 = vmatmul.mubr.msk.bf16.vlgmr.msra.gmra.mrb[4].mxu1 %vm453_vm7, %v434_v46  ;;  %v2200_v46 = vld [vmem:[%s2734_s14 + $0x8] sm:$0xff]  }
 0x2ee   :  { %1971 = vmatpush3.bf16.msra.mxu1 %v2183_v45  ;;  %1978 = vmatprep.mubr.msk.bf16.mxu1 %vm2288_vm2, %v2286_v2 }
 0x2ef   :  { %1972 = vmatprep.subr.bf16.mxu1 %v2286_v2 }
 0x2f2   :  { %1973 = vmatpush3.bf16.msra.mxu1 %v2184_v48  ;;  %v2202_v48 = vld [vmem:[%s2734_s14 + $0x18] sm:$0xff]  }
 0x2f3   :  { %1974 = vmatprep.subr.bf16.mxu1 %v2286_v2 }
 0x2f6   :  { %1975 = vmatpush3.bf16.msra.mxu1 %v2185_v49  ;;  %v2203_v49 = vld [vmem:[%s2735_s19] sm:$0xff]  }
 0x2f7   :  { %1976 = vmatprep.subr.bf16.mxu1 %v2286_v2 }
 0x2fa   :  { %1977 = vmatpush3.bf16.msra.mxu1 %v2186_v50  ;;  %v1786_v50 = vld [vmem:[%s2736_s24] ss:$0 sm:$0xff] }
 0x2fb   :  { %1994 = vmatprep.subr.bf16.mxu1 %v2286_v2 }
 0x3c0   :  { %v491_v54 = vpop.f32.mrb[4].mxu1 }
 0x3c1   :  { %v492_v56 = vadd.f32 %v1757_v53, %v491_v54  ;;  %v1968_v57 = vpop.f32.mrb[5].mxu1 }
 0x3c2   :  { %v494_v58 = vpop.f32.mrb[6].mxu1 }
 0x3c3   :  { %vm498_vm8 = vcmp.ge.f32.partialorder %v492_v56, 0.0  ;;  %v500_v59 = vmul.f32 %v499_v55, %v492_v56  ;;  %v1969_v60 = vpop.f32.mrb[7].mxu1 }
 0x3c4   :  { %v2204_v60 = vld [vmem:[%s2735_s19 + $0x8] sm:$0xff]  }
 0x3c5   :  { %v501_v61 = vsel %vm498_vm8, %v492_v56, %v500_v59 }
 0x3c6   :  { %v502_v62 = vpack.c.bf16 %v501_v61, %v501_v61  ;;  %v1791_v61 = vld [vmem:[%s2737_s12] ss:$0 sm:$0xff] }
 0x3c8   :  { %1979 = vmatmul.mubr.msk.bf16.vlgmr.msra.gmra.mrb[8].mxu1 %vm297_vm5, %v502_v62 }
 0x3c9   :  { %1998 = vmatprep.mubr.msk.bf16.mxu1 %vm2288_vm2, %v2286_v2  ;;  %1995 = vmatpush3.bf16.msra.mxu1 %v2191_v1 }
 0x3ca   :  { %1996 = vmatprep.subr.bf16.mxu1 %v2286_v2 }
 0x3cd   :  { %1997 = vmatpush3.bf16.msra.mxu1 %v2192_v13  ;;  %v1053_v13 = vstv %s1801_s15 }
 0x3ce   :  { %2014 = vmatprep.subr.bf16.mxu1 %v2286_v2 }
 0x49b   :  { %v579_v4 = vpop.f32.mrb[8].mxu1 }
 0x49c   :  { %v580_v6 = vadd.f32 %v1762_v3, %v579_v4  ;;  %v1980_v7 = vpop.f32.mrb[9].mxu1  ;;  %v2205_v3 = vld [vmem:[%s2738_s7] sm:$0xff]  }
 0x49d   :  { %v582_v8 = vpop.f32.mrb[10].mxu1  ;;  %v2207_v7 = vld [vmem:[%s2738_s7 + $0x10] sm:$0xff]  }
 0x49e   :  { %vm586_vm9 = vcmp.ge.f32.partialorder %v580_v6, 0.0  ;;  %v588_v9 = vmul.f32 %v587_v5, %v580_v6  ;;  %v1981_v10 = vpop.f32.mrb[11].mxu1  ;;  %v2208_v8 = vld [vmem:[%s2738_s7 + $0x18] sm:$0xff]  }
 0x49f   :  { %v2210_v10 = vld [vmem:[%s2739_s11 + $0x8] sm:$0xff]  }
 0x4a0   :  { %v589_v11 = vsel %vm586_vm9, %v580_v6, %v588_v9  ;;  %v2206_v6 = vld [vmem:[%s2738_s7 + $0x8] sm:$0xff]   ;;  %v2209_v9 = vld [vmem:[%s2739_s11] sm:$0xff]  }
 0x4a1   :  { %v590_v12 = vpack.c.bf16 %v589_v11, %v589_v11  ;;  %v1797_v11 = vld [vmem:[%s2740_s20] ss:$0 sm:$0xff] }
 0x4a3   :  { %1991 = vmatmul.mubr.msk.bf16.vlgmr.msra.gmra.mrb[8].mxu0 %vm297_vm5, %v590_v12 }
 0x4a4   :  { %2010 = vmatprep.mubr.msk.bf16.mxu0 %vm2288_vm2, %v2286_v2  ;;  %2003 = vmatpush3.bf16.msra.mxu0 %v2193_v14 }
 0x4a5   :  { %2004 = vmatprep.subr.bf16.mxu0 %v2286_v2 }
 0x4a8   :  { %2005 = vmatpush3.bf16.msra.mxu0 %v2194_v15 }
 0x4a9   :  { %2006 = vmatprep.subr.bf16.mxu0 %v2286_v2 }
 0x4ac   :  { %2007 = vmatpush3.bf16.msra.mxu0 %v2195_v23  ;;  %v2213_v23 = vld [vmem:[%s2741_s18] sm:$0xff]  }
 0x4ad   :  { %2008 = vmatprep.subr.bf16.mxu0 %v2286_v2 }
 0x4b0   :  { %2009 = vmatpush3.bf16.msra.mxu0 %v2196_v24  ;;  %v1802_v24 = vld [vmem:[%s2742_s1] ss:$0 sm:$0xff] }
 0x4b1   :  { %2034 = vmatprep.subr.bf16.mxu0 %v2286_v2 }
 0x576   :  { %v667_v17 = vpop.f32.mrb[8].mxu0 }
 0x577   :  { %v668_v18 = vadd.f32 %v1769_v16, %v667_v17  ;;  %v1992_v19 = vpop.f32.mrb[9].mxu0 }
 0x578   :  { %v670_v20 = vpop.f32.mrb[10].mxu0 }
 0x579   :  { %v678_v21 = vpack.c.bf16 %v668_v18, %v668_v18  ;;  %v1993_v22 = vpop.f32.mrb[11].mxu0 }
 0x57a   :  { %v2212_v22 = vld [vmem:[%s2739_s11 + $0x18] sm:$0xff]  }
 0x57b   :  { %1999 = vmatmul.mubr.msk.bf16.vlgmr.msra.gmra.mrb[12].mxu1 %vm453_vm7, %v678_v21  ;;  %v2211_v21 = vld [vmem:[%s2739_s11 + $0x10] sm:$0xff]  }
 0x57c   :  { %2018 = vmatprep.mubr.msk.bf16.mxu1 %vm2288_vm2, %v2286_v2  ;;  %2015 = vmatpush3.bf16.msra.mxu1 %v2197_v25 }
 0x57d   :  { %2016 = vmatprep.subr.bf16.mxu1 %v2286_v2 }
 0x580   :  { %2017 = vmatpush3.bf16.msra.mxu1 %v2198_v36  ;;  %v2216_v36 = vld [vmem:[%s2743_s26 + $0x8] sm:$0xff]  }
 0x581   :  { %2022 = vmatprep.subr.bf16.mxu1 %v2286_v2 }
 0x64e   :  { %v734_v27 = vpop.f32.mrb[12].mxu1 }
 0x64f   :  { %v735_v29 = vadd.f32 %v1775_v26, %v734_v27  ;;  %v2000_v30 = vpop.f32.mrb[13].mxu1  ;;  %v1141_v26 = vstv %s1808_s22 }
 0x650   :  { %v737_v31 = vpop.f32.mrb[14].mxu1 }
 0x651   :  { %vm741_vm10 = vcmp.ge.f32.partialorder %v735_v29, 0.0  ;;  %v743_v32 = vmul.f32 %v742_v28, %v735_v29  ;;  %v2001_v33 = vpop.f32.mrb[15].mxu1 }
 0x653   :  { %v744_v34 = vsel %vm741_vm10, %v735_v29, %v743_v32 }
 0x654   :  { %v745_v35 = vpack.c.bf16 %v744_v34, %v744_v34  ;;  %v2214_v34 = vld [vmem:[%s2741_s18 + $0x8] sm:$0xff]  }
 0x656   :  { %2011 = vmatmul.mubr.msk.bf16.vlgmr.msra.gmra.mrb[12].mxu0 %vm297_vm5, %v745_v35  ;;  %v2215_v35 = vld [vmem:[%s2743_s26] sm:$0xff]  }
 0x657   :  { %2038 = vmatprep.mubr.msk.bf16.mxu0 %vm2288_vm2, %v2286_v2  ;;  %2035 = vmatpush3.bf16.msra.mxu0 %v2203_v49  ;;  %v1296_v49 = vstv %s1819_s6 }
 0x658   :  { %2036 = vmatprep.subr.bf16.mxu0 %v2286_v2 }
 0x65b   :  { %2037 = vmatpush3.bf16.msra.mxu0 %v2204_v60 }
 0x65c   :  { %2042 = vmatprep.subr.bf16.mxu0 %v2286_v2 }
 0x729   :  { %v822_v38 = vpop.f32.mrb[12].mxu0 }
 0x72a   :  { %v823_v39 = vadd.f32 %v1780_v37, %v822_v38  ;;  %v2012_v40 = vpop.f32.mrb[13].mxu0  ;;  %v1809_v37 = vld [vmem:[%s2744_s4] ss:$0 sm:$0xff] }
 0x72b   :  { %v825_v41 = vpop.f32.mrb[14].mxu0 }
 0x72c   :  { %v828_v42 = vadd.f32 %v823_v39, %v668_v18  ;;  %v2013_v43 = vpop.f32.mrb[15].mxu0 }
 0x72e   :  { %v834_v45 = vpack.c.bf16 %v828_v42, %v828_v42 }
 0x730   :  { %2019 = vmatmul.mubr.msk.bf16.vlgmr.msra.gmra.mrb[16].mxu1 %vm453_vm7, %v834_v45  ;;  %v2218_v45 = vld [vmem:[%s2743_s26 + $0x18] sm:$0xff]  }
 0x731   :  { %2023 = vmatpush3.bf16.msra.mxu1 %v2199_v44  ;;  %2030 = vmatprep.mubr.msk.bf16.mxu1 %vm2288_vm2, %v2286_v2  ;;  %v2217_v44 = vld [vmem:[%s2743_s26 + $0x10] sm:$0xff]  }
 0x732   :  { %2024 = vmatprep.subr.bf16.mxu1 %v2286_v2 }
 0x735   :  { %2025 = vmatpush3.bf16.msra.mxu1 %v2200_v46  ;;  %v2219_v46 = vld [vmem:[%s2745_s28] sm:$0xff]  }
 0x736   :  { %2026 = vmatprep.subr.bf16.mxu1 %v2286_v2 }
 0x739   :  { %2027 = vmatpush3.bf16.msra.mxu1 %v2201_v47  ;;  %v1815_v47 = vld [vmem:[%s2746_s2] ss:$0 sm:$0xff] }
 0x73a   :  { %2028 = vmatprep.subr.bf16.mxu1 %v2286_v2 }
 0x73d   :  { %2029 = vmatpush3.bf16.msra.mxu1 %v2202_v48 }
 0x73e   :  { %2054 = vmatprep.subr.bf16.mxu1 %v2286_v2 }
 0x803   :  { %v890_v51 = vpop.f32.mrb[16].mxu1 }
 0x804   :  { %v891_v53 = vadd.f32 %v1786_v50, %v890_v51  ;;  %v2020_v54 = vpop.f32.mrb[17].mxu1 }
 0x805   :  { %v893_v55 = vpop.f32.mrb[18].mxu1 }
 0x806   :  { %vm897_vm11 = vcmp.ge.f32.partialorder %v891_v53, 0.0  ;;  %v899_v56 = vmul.f32 %v898_v52, %v891_v53  ;;  %v2021_v57 = vpop.f32.mrb[19].mxu1 }
 0x807   :  { %v2220_v57 = vld [vmem:[%s2745_s28 + $0x8] sm:$0xff]  }
 0x808   :  { %v900_v58 = vsel %vm897_vm11, %v891_v53, %v899_v56 }
 0x809   :  { %v901_v59 = vpack.c.bf16 %v900_v58, %v900_v58  ;;  %v1820_v58 = vld [vmem:[%s2747_s0] ss:$0 sm:$0xff] }
 0x80b   :  { %2031 = vmatmul.mubr.msk.bf16.vlgmr.msra.gmra.mrb[20].mxu1 %vm297_vm5, %v901_v59 }
 0x80c   :  { %2062 = vmatprep.mubr.msk.bf16.mxu1 %vm2288_vm2, %v2286_v2  ;;  %2055 = vmatpush3.bf16.msra.mxu1 %v2209_v9  ;;  %v1826_v9 = vld [vmem:[%s2749_s9] ss:$0 sm:$0xff] }
 0x80d   :  { %2056 = vmatprep.subr.bf16.mxu1 %v2286_v2 }
 0x810   :  { %2057 = vmatpush3.bf16.msra.mxu1 %v2210_v10 }
 0x811   :  { %2058 = vmatprep.subr.bf16.mxu1 %v2286_v2 }
 0x814   :  { %2059 = vmatpush3.bf16.msra.mxu1 %v2211_v21  ;;  %v2229_v21 = vld [vmem:[%s2487_s16] sm:$0xff]  }
 0x815   :  { %2060 = vmatprep.subr.bf16.mxu1 %v2286_v2 }
 0x818   :  { %2061 = vmatpush3.bf16.msra.mxu1 %v2212_v22  ;;  %v1831_v22 = vld [vmem:[%s2750_s17] ss:$0 sm:$0xff] }
 0x819   :  { %2074 = vmatprep.subr.bf16.mxu1 %v2286_v2 }
 0x8de   :  { %v978_v62 = vpop.f32.mrb[20].mxu1 }
 0x8df   :  { %v979_v63 = vadd.f32 %v1791_v61, %v978_v62  ;;  %v2032_v0 = vpop.f32.mrb[21].mxu1 }
 0x8e0   :  { %v981_v1 = vpop.f32.mrb[22].mxu1 }
 0x8e1   :  { %v989_v4 = vpack.c.bf16 %v979_v63, %v979_v63  ;;  %v2033_v5 = vpop.f32.mrb[23].mxu1  ;;  %v2221_v1 = vld [vmem:[%s2748_s5] sm:$0xff]  }
 0x8e2   :  { %v2223_v5 = vld [vmem:[%s2748_s5 + $0x10] sm:$0xff]  }
 0x8e3   :  { %2039 = vmatmul.mubr.msk.bf16.vlgmr.msra.gmra.mrb[16].mxu0 %vm453_vm7, %v989_v4  ;;  %v2222_v4 = vld [vmem:[%s2748_s5 + $0x8] sm:$0xff]  }
 0x8e4   :  { %2043 = vmatpush3.bf16.msra.mxu0 %v2205_v3  ;;  %2050 = vmatprep.mubr.msk.bf16.mxu0 %vm2288_vm2, %v2286_v2 }
 0x8e5   :  { %2044 = vmatprep.subr.bf16.mxu0 %v2286_v2 }
 0x8e8   :  { %2045 = vmatpush3.bf16.msra.mxu0 %v2206_v6  ;;  %v2224_v6 = vld [vmem:[%s2748_s5 + $0x18] sm:$0xff]  }
 0x8e9   :  { %2046 = vmatprep.subr.bf16.mxu0 %v2286_v2 }
 0x8ec   :  { %2047 = vmatpush3.bf16.msra.mxu0 %v2207_v7  ;;  %v2225_v7 = vld [vmem:[%s2477_s27] sm:$0xff]  }
 0x8ed   :  { %2048 = vmatprep.subr.bf16.mxu0 %v2286_v2 }
 0x8f0   :  { %2049 = vmatpush3.bf16.msra.mxu0 %v2208_v8  ;;  %v2226_v8 = vld [vmem:[%s2477_s27 + $0x8] sm:$0xff]  }
 0x8f1   :  { %2066 = vmatprep.subr.bf16.mxu0 %v2286_v2 }
 0x9b6   :  { %v1045_v12 = vpop.f32.mrb[16].mxu0 }
 0x9b7   :  { %v1046_v14 = vadd.f32 %v1797_v11, %v1045_v12  ;;  %v2040_v15 = vpop.f32.mrb[17].mxu0  ;;  %v1452_v11 = vstv %s1830_s13 }
 0x9b8   :  { %v1048_v16 = vpop.f32.mrb[18].mxu0 }
 0x9b9   :  { %vm1052_vm12 = vcmp.ge.f32.partialorder %v1046_v14, 0.0  ;;  %v1054_v17 = vmul.f32 %v1053_v13, %v1046_v14  ;;  %v2041_v18 = vpop.f32.mrb[19].mxu0 }
 0x9bb   :  { %v1055_v19 = vsel %vm1052_vm12, %v1046_v14, %v1054_v17 }
 0x9bc   :  { %v1056_v20 = vpack.c.bf16 %v1055_v19, %v1055_v19  ;;  %v2227_v19 = vld [vmem:[%s2477_s27 + $0x10] sm:$0xff]  }
 0x9be   :  { %2051 = vmatmul.mubr.msk.bf16.vlgmr.msra.gmra.mrb[20].mxu0 %vm297_vm5, %v1056_v20  ;;  %v2228_v20 = vld [vmem:[%s2477_s27 + $0x18] sm:$0xff]  }
 0x9bf   :  { %2070 = vmatprep.mubr.msk.bf16.mxu0 %vm2288_vm2, %v2286_v2  ;;  %2067 = vmatpush3.bf16.msra.mxu0 %v2213_v23 }
 0x9c0   :  { %2068 = vmatprep.subr.bf16.mxu0 %v2286_v2 }
 0x9c3   :  { %2069 = vmatpush3.bf16.msra.mxu0 %v2214_v34 }
 0x9c4   :  { %2086 = vmatprep.subr.bf16.mxu0 %v2286_v2 }
 0xa91   :  { %v1133_v25 = vpop.f32.mrb[20].mxu0 }
 0xa92   :  { %v1134_v27 = vadd.f32 %v1802_v24, %v1133_v25  ;;  %v2052_v28 = vpop.f32.mrb[21].mxu0  ;;  %v1540_v24 = vstv %s1837_s21 }
 0xa93   :  { %v1136_v29 = vpop.f32.mrb[22].mxu0 }
 0xa94   :  { %vm1140_vm13 = vcmp.ge.f32.partialorder %v1134_v27, 0.0  ;;  %v1142_v30 = vmul.f32 %v1141_v26, %v1134_v27  ;;  %v2053_v31 = vpop.f32.mrb[23].mxu0 }
 0xa96   :  { %v1143_v32 = vsel %vm1140_vm13, %v1134_v27, %v1142_v30 }
 0xa97   :  { %v1144_v33 = vpack.c.bf16 %v1143_v32, %v1143_v32  ;;  %v2230_v32 = vld [vmem:[%s2487_s16 + $0x8] sm:$0xff]  }
 0xa99   :  { %2063 = vmatmul.mubr.msk.bf16.vlgmr.msra.gmra.mrb[24].mxu1 %vm297_vm5, %v1144_v33  ;;  %v1838_v33 = vld [vmem:[%s2482_s10] ss:$0 sm:$0xff] }
 0xa9a   :  { %2082 = vmatprep.mubr.msk.bf16.mxu1 %vm2288_vm2, %v2286_v2  ;;  %2075 = vmatpush3.bf16.msra.mxu1 %v2215_v35 }
 0xa9b   :  { %2076 = vmatprep.subr.bf16.mxu1 %v2286_v2 }
 0xa9e   :  { %2077 = vmatpush3.bf16.msra.mxu1 %v2216_v36 }
 0xa9f   :  { %2078 = vmatprep.subr.bf16.mxu1 %v2286_v2 }
 0xaa2   :  { %2079 = vmatpush3.bf16.msra.mxu1 %v2217_v44 }
 0xaa3   :  { %2080 = vmatprep.subr.bf16.mxu1 %v2286_v2 }
 0xaa6   :  { %2081 = vmatpush3.bf16.msra.mxu1 %v2218_v45 }
 0xaa7   :  { %2106 = vmatprep.subr.bf16.mxu1 %v2286_v2 }
 0xb6c   :  { %v1221_v38 = vpop.f32.mrb[24].mxu1 }
 0xb6d   :  { %v1222_v39 = vadd.f32 %v1809_v37, %v1221_v38  ;;  %v2064_v40 = vpop.f32.mrb[25].mxu1 }
 0xb6e   :  { %v1224_v41 = vpop.f32.mrb[26].mxu1 }
 0xb6f   :  { %v1232_v42 = vpack.c.bf16 %v1222_v39, %v1222_v39  ;;  %v2065_v43 = vpop.f32.mrb[27].mxu1 }
 0xb71   :  { %2071 = vmatmul.mubr.msk.bf16.vlgmr.msra.gmra.mrb[24].mxu0 %vm453_vm7, %v1232_v42 }
 0xb72   :  { %2090 = vmatprep.mubr.msk.bf16.mxu0 %vm2288_vm2, %v2286_v2  ;;  %2087 = vmatpush3.bf16.msra.mxu0 %v2219_v46 }
 0xb73   :  { %2088 = vmatprep.subr.bf16.mxu0 %v2286_v2 }
 0xb76   :  { %2089 = vmatpush3.bf16.msra.mxu0 %v2220_v57 }
 0xb77   :  { %2094 = vmatprep.subr.bf16.mxu0 %v2286_v2 }
 0xc44   :  { %v1288_v48 = vpop.f32.mrb[24].mxu0 }
 0xc45   :  { %v1289_v50 = vadd.f32 %v1815_v47, %v1288_v48  ;;  %v2072_v51 = vpop.f32.mrb[25].mxu0 }
 0xc46   :  { %v1291_v52 = vpop.f32.mrb[26].mxu0 }
 0xc47   :  { %vm1295_vm14 = vcmp.ge.f32.partialorder %v1289_v50, 0.0  ;;  %v1297_v53 = vmul.f32 %v1296_v49, %v1289_v50  ;;  %v2073_v54 = vpop.f32.mrb[27].mxu0 }
 0xc49   :  { %v1298_v55 = vsel %vm1295_vm14, %v1289_v50, %v1297_v53 }
 0xc4a   :  { %v1299_v56 = vpack.c.bf16 %v1298_v55, %v1298_v55 }
 0xc4c   :  { %2083 = vmatmul.mubr.msk.bf16.vlgmr.msra.gmra.mrb[28].mxu1 %vm297_vm5, %v1299_v56 }
 0xc4d   :  { %2114 = vmatprep.mubr.msk.bf16.mxu1 %vm2288_vm2, %v2286_v2  ;;  %2107 = vmatpush3.bf16.msra.mxu1 %v2225_v7 }
 0xc4e   :  { %2108 = vmatprep.subr.bf16.mxu1 %v2286_v2 }
 0xc51   :  { %2109 = vmatpush3.bf16.msra.mxu1 %v2226_v8 }
 0xc52   :  { %2110 = vmatprep.subr.bf16.mxu1 %v2286_v2 }
 0xc55   :  { %2111 = vmatpush3.bf16.msra.mxu1 %v2227_v19 }
 0xc56   :  { %2112 = vmatprep.subr.bf16.mxu1 %v2286_v2 }
 0xc59   :  { %2113 = vmatpush3.bf16.msra.mxu1 %v2228_v20 }
 0xd1f   :  { %v1376_v59 = vpop.f32.mrb[28].mxu1 }
 0xd20   :  { %v1377_v60 = vadd.f32 %v1820_v58, %v1376_v59  ;;  %v2084_v61 = vpop.f32.mrb[29].mxu1 }
 0xd21   :  { %v1379_v62 = vpop.f32.mrb[30].mxu1 }
 0xd22   :  { %v1382_v63 = vadd.f32 %v1377_v60, %v1222_v39  ;;  %v2085_v0 = vpop.f32.mrb[31].mxu1  ;;  %v1844_v39 = vld [vmem:[#allocation4] ss:$0 sm:$0xff] }
 0xd24   :  { %v1388_v3 = vpack.c.bf16 %v1382_v63, %v1382_v63 }
 0xd26   :  { %2091 = vmatmul.mubr.msk.bf16.vlgmr.msra.gmra.mrb[28].mxu0 %vm453_vm7, %v1388_v3 }
 0xd27   :  { %2095 = vmatpush3.bf16.msra.mxu0 %v2221_v1  ;;  %2102 = vmatprep.mubr.msk.bf16.mxu0 %vm2288_vm2, %v2286_v2 }
 0xd28   :  { %2096 = vmatprep.subr.bf16.mxu0 %v2286_v2 }
 0xd2b   :  { %2097 = vmatpush3.bf16.msra.mxu0 %v2222_v4 }
 0xd2c   :  { %2098 = vmatprep.subr.bf16.mxu0 %v2286_v2 }
 0xd2f   :  { %2099 = vmatpush3.bf16.msra.mxu0 %v2223_v5 }
 0xd30   :  { %2100 = vmatprep.subr.bf16.mxu0 %v2286_v2 }
 0xd33   :  { %2101 = vmatpush3.bf16.msra.mxu0 %v2224_v6 }
 0xd34   :  { %2118 = vmatprep.subr.bf16.mxu0 %v2286_v2 }
 0xdf9   :  { %v1444_v10 = vpop.f32.mrb[28].mxu0 }
 0xdfa   :  { %v1445_v12 = vadd.f32 %v1826_v9, %v1444_v10  ;;  %v2092_v13 = vpop.f32.mrb[29].mxu0 }
 0xdfb   :  { %v1447_v14 = vpop.f32.mrb[30].mxu0 }
 0xdfc   :  { %vm1451_vm15 = vcmp.ge.f32.partialorder %v1445_v12, 0.0  ;;  %v1453_v15 = vmul.f32 %v1452_v11, %v1445_v12  ;;  %v2093_v16 = vpop.f32.mrb[31].mxu0 }
 0xdfe   :  { %v1454_v17 = vsel %vm1451_vm15, %v1445_v12, %v1453_v15 }
 0xdff   :  { %v1455_v18 = vpack.c.bf16 %v1454_v17, %v1454_v17 }
 0xe01   :  { %2103 = vmatmul.mubr.msk.bf16.vlgmr.msra.gmra.mrb[32].mxu0 %vm297_vm5, %v1455_v18 }
 0xe02   :  { %2122 = vmatprep.mubr.msk.bf16.mxu0 %vm2288_vm2, %v2286_v2  ;;  %2119 = vmatpush3.bf16.msra.mxu0 %v2229_v21 }
 0xe03   :  { %2120 = vmatprep.subr.bf16.mxu0 %v2286_v2 }
 0xe06   :  { %2121 = vmatpush3.bf16.msra.mxu0 %v2230_v32 }
 0xed4   :  { %v1532_v23 = vpop.f32.mrb[32].mxu0 }
 0xed5   :  { %v1533_v25 = vadd.f32 %v1831_v22, %v1532_v23  ;;  %v2104_v26 = vpop.f32.mrb[33].mxu0 }
 0xed6   :  { %v1535_v27 = vpop.f32.mrb[34].mxu0 }
 0xed7   :  { %vm1539_vm0 = vcmp.ge.f32.partialorder %v1533_v25, 0.0  ;;  %v1541_v28 = vmul.f32 %v1540_v24, %v1533_v25  ;;  %v2105_v29 = vpop.f32.mrb[35].mxu0 }
 0xed9   :  { %v1542_v30 = vsel %vm1539_vm0, %v1533_v25, %v1541_v28 }
 0xeda   :  { %v1543_v31 = vpack.c.bf16 %v1542_v30, %v1542_v30 }
 0xedc   :  { %2115 = vmatmul.mubr.msk.bf16.vlgmr.msra.gmra.mrb[32].mxu1 %vm297_vm5, %v1543_v31 }
 0xfaf   :  { %v1620_v2 = vpop.f32.mrb[32].mxu1 }
 0xfb0   :  { %v1621_v34 = vadd.f32 %v1838_v33, %v1620_v2  ;;  %v2116_v35 = vpop.f32.mrb[33].mxu1 }
 0xfb1   :  { %v1623_v36 = vpop.f32.mrb[34].mxu1 }
 0xfb2   :  { %v1631_v37 = vpack.c.bf16 %v1621_v34, %v1621_v34  ;;  %v2117_v38 = vpop.f32.mrb[35].mxu1 }
 0xfb4   :  { %2123 = vmatmul.mubr.msk.bf16.vlgmr.msra.gmra.mrb[36].mxu0 %vm453_vm7, %v1631_v37 }
0x1087   :  { %v1687_v40 = vpop.f32.mrb[36].mxu0 }
0x1088   :  { %v1688_v41 = vadd.f32 %v1844_v39, %v1687_v40  ;;  %v2124_v42 = vpop.f32.mrb[37].mxu0 }
0x1089   :  { %v1690_v43 = vpop.f32.mrb[38].mxu0 }
0x108a   :  { %1694 = vst.msk [vmem:[%s2492_s23] sm:$0xff] %vm1693_vm1, %v1688_v41  ;;  %v2125_v44 = vpop.f32.mrb[39].mxu0 }

// kernel: tpu_custom_call.1
= control target key start
LH: loop header
LB: loop body
LE: loop exit
PB: predicated region body
PF: predicated region fallthrough
CT: control target
= control target key end

     0   :  { %s2245_s6 = smov 1   ;;  %s2246_s10 = smov 2   ;;  %s2696_s0 = inlined_call_operand.smem [shape: u32[41], index: -1, kind: input, shape index: {}] }
   0x1   :  { %s2297_s5 = sld [smem:[%s2696_s0]]   ;;  %s2247_s14 = smov 3  }
   0x2   :  { %s2302_s9 = sld [smem:[%s2696_s0 + %s2245_s6]]   ;;  %s2248_s18 = smov 4  }
   0x3   :  { %s2307_s13 = sld [smem:[%s2696_s0 + %s2246_s10]]   ;;  %s2249_s22 = smov 5  }
   0x4   :  { %s2312_s17 = sld [smem:[%s2696_s0 + %s2247_s14]]   ;;  %s2250_s26 = smov 6  }
   0x5   :  { %s2317_s21 = sld [smem:[%s2696_s0 + %s2248_s18]]   ;;  %s2251_s30 = smov 7  }
   0x6   :  { %s2322_s25 = sld [smem:[%s2696_s0 + %s2249_s22]]   ;;  %s2252_s4 = smov 8  }
   0x7   :  { %s2327_s29 = sld [smem:[%s2696_s0 + %s2250_s26]]   ;;  %s2253_s10 = smov 9  }
   0x8   :  { %s2332_s3 = sld [smem:[%s2696_s0 + %s2251_s30]]   ;;  %s2254_s15 = smov 10  }
   0x9   :  { %s2337_s8 = sld [smem:[%s2696_s0 + %s2252_s4]]   ;;  %s2255_s20 = smov 11  }
   0xa   :  { %s2342_s14 = sld [smem:[%s2696_s0 + %s2253_s10]]   ;;  %s2256_s26 = smov 12  }
   0xb   :  { %s2347_s19 = sld [smem:[%s2696_s0 + %s2254_s15]]   ;;  %s2257_s1 = smov 13  }
   0xc   :  { %s2352_s24 = sld [smem:[%s2696_s0 + %s2255_s20]]   ;;  %s2258_s7 = smov 14  }
   0xd   :  { %s2357_s30 = sld [smem:[%s2696_s0 + %s2256_s26]]   ;;  %s2259_s15 = smov 15  }
   0xe   :  { %s2362_s6 = sld [smem:[%s2696_s0 + %s2257_s1]]   ;;  %s2260_s22 = smov 16  }
   0xf   :  { %s2367_s12 = sld [smem:[%s2696_s0 + %s2258_s7]]   ;;  %s2261_s28 = smov 17  }
  0x10   :  { %s2372_s20 = sld [smem:[%s2696_s0 + %s2259_s15]]   ;;  %s2262_s7 = smov 18  }
  0x11   :  { %s2377_s27 = sld [smem:[%s2696_s0 + %s2260_s22]]   ;;  %s2263_s15 = smov 19  }
  0x12   :  { %s2382_s4 = sld [smem:[%s2696_s0 + %s2261_s28]]   ;;  %s2264_s22 = smov 20  }
  0x13   :  { %s2265_s28 = smov 21  }
  0x14   :  { %2707 = sst [smem:[#allocation6_spill]] %s2362_s6 }
  0x15   :  { %s2387_s6 = sld [smem:[%s2696_s0 + %s2262_s7]]   ;;  %s2266_s7 = smov 22  }
  0x16   :  { %2708 = sst [smem:[#allocation7_spill]] %s2372_s20 }
  0x17   :  { %2709 = sst [smem:[#allocation8_spill]] %s2377_s27 }
  0x18   :  { %2710 = sst [smem:[#allocation9_spill]] %s2382_s4 }
  0x19   :  { %s2392_s20 = sld [smem:[%s2696_s0 + %s2263_s15]]   ;;  %s2267_s15 = smov 23  }
  0x1a   :  { %s2397_s27 = sld [smem:[%s2696_s0 + %s2264_s22]]   ;;  %s2268_s22 = smov 24  }
  0x1b   :  { %2711 = sst [smem:[#allocation10_spill]] %s2387_s6 }
  0x1c   :  { %s2402_s4 = sld [smem:[%s2696_s0 + %s2265_s28]]   ;;  %s2269_s28 = smov 25  }
  0x1d   :  { %s2407_s6 = sld [smem:[%s2696_s0 + %s2266_s7]]   ;;  %s2270_s7 = smov 26  }
  0x1f   :  { %2712 = sst [smem:[#allocation11_spill]] %s2392_s20 }
  0x20   :  { %2713 = sst [smem:[#allocation12_spill]] %s2397_s27 }
  0x21   :  { %s2412_s20 = sld [smem:[%s2696_s0 + %s2267_s15]]   ;;  %s2271_s15 = smov 27  }
  0x22   :  { %2714 = sst [smem:[#allocation13_spill]] %s2402_s4 }
  0x23   :  { %2715 = sst [smem:[#allocation14_spill]] %s2407_s6 }
  0x24   :  { %s2417_s27 = sld [smem:[%s2696_s0 + %s2268_s22]]   ;;  %s2272_s22 = smov 28  }
  0x25   :  { %s2422_s4 = sld [smem:[%s2696_s0 + %s2269_s28]]   ;;  %s2273_s28 = smov 29  }
  0x26   :  { %s2427_s6 = sld [smem:[%s2696_s0 + %s2270_s7]]   ;;  %s2274_s7 = smov 30  }
  0x27   :  { %2716 = sst [smem:[#allocation15_spill]] %s2412_s20 }
  0x28   :  { %s2432_s20 = sld [smem:[%s2696_s0 + %s2271_s15]]   ;;  %s2275_s15 = smov 31  }
  0x2a   :  { %2717 = sst [smem:[#allocation16_spill]] %s2417_s27 }
  0x2b   :  { %2718 = sst [smem:[#allocation17_spill]] %s2422_s4 }
  0x2c   :  { %2719 = sst [smem:[#allocation18_spill]] %s2427_s6 }
  0x2d   :  { %s2437_s27 = sld [smem:[%s2696_s0 + %s2272_s22]]   ;;  %s2276_s22 = smov 32  }
  0x2e   :  { %2720 = sst [smem:[#allocation19_spill]] %s2432_s20 }
  0x2f   :  { %s2442_s4 = sld [smem:[%s2696_s0 + %s2273_s28]]   ;;  %s2277_s28 = smov 33  }
  0x30   :  { %s2447_s6 = sld [smem:[%s2696_s0 + %s2274_s7]]   ;;  %s2278_s7 = smov 34  }
  0x31   :  { %s2452_s20 = sld [smem:[%s2696_s0 + %s2275_s15]]   ;;  %s2279_s15 = smov 35  }
  0x32   :  { %s2457_s1 = sld [smem:[%s2696_s0 + %s2276_s22]]   ;;  %s2280_s22 = smov 36  }
  0x33   :  { %2721 = sst [smem:[#allocation20_spill]] %s2437_s27 }
  0x34   :  { %s2462_s10 = sld [smem:[%s2696_s0 + %s2277_s28]]  }
  0x35   :  { %2722 = sst [smem:[#allocation21_spill]] %s2442_s4  ;;  %s2281_s4 = smov 37  }
  0x36   :  { %2723 = sst [smem:[#allocation22_spill]] %s2447_s6  ;;  %s2282_s6 = smov 38  }
  0x37   :  { %2724 = sst [smem:[#allocation23_spill]] %s2452_s20  ;;  %s2283_s20 = smov 40  }
  0x38   :  { %2725 = sst [smem:[#allocation24_spill]] %s2457_s1  ;;  %s86_s1 = sshll.u32 %s2297_s5, 4  ;;  %s87_s1 = int_to_ptr.vmem [resolvable:$true] %s86_s1 }
  0x39   :  { %s2467_s16 = sld [smem:[%s2696_s0 + %s2278_s7]]   ;;  %p2236_p1 = scmp.lt.s32.totalorder %s87_s1, %s87_s1 }
  0x3a   :  { %2726 = sst [smem:[#allocation25_spill]] %s2462_s10 }
  0x3b   :  { %s2472_s23 = sld [smem:[%s2696_s0 + %s2279_s15]]  }
  0x3c   :  { %s2477_s27 = sld [smem:[%s2696_s0 + %s2280_s22]]   ;;  %s2231_s22 = scalar_lea.vmem %s87_s1, 16 }
  0x3d   :  { %s2482_s10 = sld [smem:[%s2696_s0 + %s2281_s4]]   ;;  %p2232_p0 = scmp.ne.s32.totalorder %s87_s1, %s2231_s22 }
  0x3e   :  { %p2237_p2 = scmp.lt.s32.totalorder %s2231_s22, %s2231_s22 }
  0x3f   :  { %2727 = sst [smem:[#allocation26_spill]] %s2467_s16 }
  0x40   :  { %s2487_s16 = sld [smem:[%s2696_s0 + %s2282_s6]]   ;;  %p2238_p3 = por %p2237_p2, %p2236_p1 }
  0x41   :  { %2728 = sst [smem:[#allocation27_spill]] %s2472_s23 }
  0x42   :  { %s2492_s23 = sld [smem:[%s2696_s0 + %s2283_s20]]   ;;  %p2239_p4 = pnand %p2238_p3, %p2232_p0 }
  0x44   :  { %2242 = shalt.err (!%p2239_p4)  }
  0x45   :  { %s2284_s26 = smov [#allocation3]   ;;  %s2285_s4 = smov 39  }
  0x46   :  { %89 = dma.vmem_to_smem %s87_s1, 16, %s2284_s26, [#allocation2] }
  0x47   :  { %s1737_s6 = sld [smem:[%s2696_s0 + %s2285_s4]]  }
  0x4d   :  { %v90_v0 = vstv %s1737_s6 }
  0x4e   :  { %91 = vst [vmem:[#allocation4] sm:$0x1] %v90_v0 }
  0x4f   :  { %2243 = dma.done.wait [#allocation2], 16 }
  0x50   :  { %2244 = vsyncadd [#allocation2], 4294967280 }
  0x51   :  { %93 = sfence }
  0x52   :  { %v2170_v1 = vld [vmem:[%s2307_s13] sm:$0xff]   ;;  %v2286_v2 = vmov 0.0   ;;  %v2171_v3 = vld [vmem:[%s2307_s13 + $0x8] sm:$0xff]   ;;  %vm205_vm0 = vcmask 1042432   ;;  %v2172_v4 = vld [vmem:[%s2307_s13 + $0x10] ss:$0 sps:$4 sm:$0xff]  }
  0x53   :  { %1928 = vmatprep.subr.bf16.mxu0 %v2286_v2  ;;  %1938 = vmatprep.subr.bf16.mxu1 %v2286_v2  ;;  %vm206_vm1 = vcmask 1043456   ;;  %v2287_v5 = vmov 65535   ;;  %v2173_v7 = vld [vmem:[%s2317_s21] sm:$0xff]   ;;  %vm2288_vm2 = vmmov 0   ;;  %vm201_vm3 = vcmask 318464   ;;  %v2174_v9 = vld [vmem:[%s2317_s21 + $0x8] sm:$0xff]  }
  0x54   :  { %1929 = vmatpush3.bf16.msra.mxu0 %v2170_v1  ;;  %v207_v6 = vsel %vm205_vm0, 4294967295, %v2287_v5  ;;  %1934 = vmatprep.mubr.msk.bf16.mxu0 %vm2288_vm2, %v2286_v2  ;;  %v173_v11 = vld [vmem:[%s2302_s9] sm:$0xf]  ;;  %v2175_v12 = vld [vmem:[%s2317_s21 + $0x10] sm:$0xff]   ;;  %v2176_v13 = vld [vmem:[%s2317_s21 + $0x18] sm:$0xff]   ;;  %s252_s0 = sld [smem:[#allocation3]] }
  0x55   :  { %1930 = vmatprep.subr.bf16.mxu0 %v2286_v2  ;;  %v208_v8 = vsel %vm206_vm1, %v207_v6, 0  ;;  %1946 = vmatprep.mubr.msk.bf16.mxu1 %vm2288_vm2, %v2286_v2  ;;  %v2177_v14 = vld [vmem:[%s2327_s29] sm:$0xff]   ;;  %v2178_v15 = vld [vmem:[%s2327_s29 + $0x8] sm:$0xff]   ;;  %vm297_vm5 = vcmask 523264   ;;  %v2179_v26 = vld [vmem:[%s2327_s29 + $0x10] sm:$0xff]   ;;  %s1750_s5 = sld [smem:[#allocation3 + $0x1]] }
  0x56   :  { %1939 = vmatpush3.bf16.msra.mxu1 %v2173_v7  ;;  %v210_v10 = vand.u32 %v2172_v4, %v208_v8  ;;  %v1739_v16 = vld [vmem:[%s2312_s17] ss:$0 sm:$0xff]  ;;  %v2180_v27 = vld [vmem:[%s2327_s29 + $0x18] sm:$0xff]   ;;  %v2182_v39 = vld [vmem:[%s2337_s8 + $0x8] sm:$0xff]   ;;  %vm453_vm7 = vcmask 261120   ;;  %s1761_s9 = sld [smem:[#allocation3 + $0x2]] }
  0x57   :  { %1940 = vmatprep.subr.bf16.mxu1 %v2286_v2  ;;  %v2181_v28 = vld [vmem:[%s2337_s8] sm:$0xff]   ;;  %v2184_v48 = vld [vmem:[%s2347_s19 + $0x8] sm:$0xff]   ;;  %v2185_v49 = vld [vmem:[%s2347_s19 + $0x10] sm:$0xff]   ;;  %s1768_s13 = sld [smem:[#allocation3 + $0x3]]  ;;  %s2729_s17 = sld [smem:[#allocation8_spill]]  ;;  %vm1693_vm1 = vcmask 7168  }
  0x58   :  { %1931 = vmatpush3.bf16.msra.mxu0 %v2171_v3  ;;  %v1744_v29 = vld [vmem:[%s2322_s25] ss:$0 sm:$0xff]  ;;  %v2186_v50 = vld [vmem:[%s2347_s19 + $0x18] sm:$0xff]   ;;  %v2188_v52 = vld [vmem:[%s2357_s30 + $0x8] sm:$0xff]   ;;  %s2730_s21 = sld [smem:[#allocation6_spill]]  ;;  %s2731_s25 = sld [smem:[#allocation10_spill]] }
  0x59   :  { %1932 = vmatprep.subr.bf16.mxu0 %v2286_v2  ;;  %v1751_v40 = vld [vmem:[%s2332_s3] ss:$0 sm:$0xff]  ;;  %v2189_v63 = vld [vmem:[%s2357_s30 + $0x10] sm:$0xff]   ;;  %v2190_v0 = vld [vmem:[%s2357_s30 + $0x18] sm:$0xff]   ;;  %s2732_s29 = sld [smem:[#allocation7_spill]]  ;;  %s1779_s3 = sld [smem:[#allocation3 + $0x4]] }
  0x5a   :  { %1941 = vmatpush3.bf16.msra.mxu1 %v2174_v9  ;;  %v254_v18 = vstv %s252_s0  ;;  %v2183_v45 = vld [vmem:[%s2347_s19] sm:$0xff]   ;;  %s2733_s8 = sld [smem:[#allocation9_spill]]  ;;  %s2735_s19 = sld [smem:[#allocation14_spill]] }
  0x5b   :  { %1942 = vmatprep.subr.bf16.mxu1 %v2286_v2  ;;  %v343_v31 = vstv %s1750_s5  ;;  %v2187_v51 = vld [vmem:[%s2357_s30] sm:$0xff]   ;;  %s1790_s30 = sld [smem:[#allocation3 + $0x5]]  ;;  %s2738_s7 = sld [smem:[#allocation16_spill]] }
  0x5c   :  { %1933 = vmatpush3.bf16.msra.mxu0 %v210_v10  ;;  %v1757_v53 = vld [vmem:[%s2342_s14] ss:$0 sm:$0xff]  ;;  %v499_v55 = vstv %s1761_s9  ;;  %s2734_s14 = sld [smem:[#allocation12_spill]]  ;;  %s2739_s11 = sld [smem:[#allocation18_spill]] }
  0x5d   :  { %1950 = vmatprep.subr.bf16.mxu0 %v2286_v2  ;;  %v2191_v1 = vld [vmem:[%s2367_s12] sm:$0xff]   ;;  %v587_v5 = vstv %s1768_s13  ;;  %s2740_s20 = sld [smem:[#allocation15_spill]]  ;;  %s1801_s15 = sld [smem:[#allocation3 + $0x6]] }
  0x5e   :  { %1943 = vmatpush3.bf16.msra.mxu1 %v2175_v12  ;;  %v1762_v3 = vld [vmem:[%s2352_s24] ss:$0 sm:$0xff]  ;;  %s2736_s24 = sld [smem:[#allocation11_spill]]  ;;  %s2741_s18 = sld [smem:[#allocation20_spill]] }
  0x5f   :  { %1935 = vmatmul.mubr.msk.bf16.vlgmr.msra.gmra.mrb[0].mxu0 %vm201_vm3, %v173_v11  ;;  %1944 = vmatprep.subr.bf16.mxu1 %v2286_v2  ;;  %s2742_s1 = sld [smem:[#allocation17_spill]]  ;;  %s1808_s22 = sld [smem:[#allocation3 + $0x7]] }
  0x60   :  { %1958 = vmatprep.mubr.msk.bf16.mxu0 %vm2288_vm2, %v2286_v2  ;;  %1951 = vmatpush3.bf16.msra.mxu0 %v2177_v14  ;;  %v2193_v14 = vld [vmem:[%s2729_s17] sm:$0xff]   ;;  %s2743_s26 = sld [smem:[#allocation22_spill]]  ;;  %s2744_s4 = sld [smem:[#allocation19_spill]] }
  0x61   :  { %1952 = vmatprep.subr.bf16.mxu0 %v2286_v2  ;;  %s2745_s28 = sld [smem:[#allocation24_spill]]  ;;  %s2746_s2 = sld [smem:[#allocation21_spill]] }
  0x62   :  { %1945 = vmatpush3.bf16.msra.mxu1 %v2176_v13  ;;  %v2192_v13 = vld [vmem:[%s2367_s12 + $0x8] sm:$0xff]   ;;  %s2737_s12 = sld [smem:[#allocation13_spill]]  ;;  %s1819_s6 = sld [smem:[#allocation3 + $0x8]] }
  0x63   :  { %1962 = vmatprep.subr.bf16.mxu1 %v2286_v2  ;;  %s2747_s0 = sld [smem:[#allocation23_spill]]  ;;  %s2748_s5 = sld [smem:[#allocation26_spill]] }
  0x64   :  { %1953 = vmatpush3.bf16.msra.mxu0 %v2178_v15  ;;  %v2194_v15 = vld [vmem:[%s2729_s17 + $0x8] sm:$0xff]   ;;  %s2749_s9 = sld [smem:[#allocation25_spill]]  ;;  %s1830_s13 = sld [smem:[#allocation3 + $0x9]] }
  0x65   :  { %1954 = vmatprep.subr.bf16.mxu0 %v2286_v2 }
  0x68   :  { %1955 = vmatpush3.bf16.msra.mxu0 %v2179_v26  ;;  %v1775_v26 = vld [vmem:[%s2732_s29] ss:$0 sm:$0xff] }
  0x69   :  { %1956 = vmatprep.subr.bf16.mxu0 %v2286_v2 }
  0x6c   :  { %1957 = vmatpush3.bf16.msra.mxu0 %v2180_v27 }
  0x6d   :  { %1982 = vmatprep.subr.bf16.mxu0 %v2286_v2 }
 0x132   :  { %v246_v17 = vpop.f32.mrb[0].mxu0 }
 0x133   :  { %v247_v19 = vadd.f32 %v1739_v16, %v246_v17  ;;  %v1936_v20 = vpop.f32.mrb[1].mxu0  ;;  %v1769_v16 = vld [vmem:[%s2730_s21] ss:$0 sm:$0xff]  ;;  %s1837_s21 = sld [smem:[#allocation3 + $0xa]] }
 0x134   :  { %v249_v21 = vpop.f32.mrb[2].mxu0 }
 0x135   :  { %vm253_vm4 = vcmp.ge.f32.partialorder %v247_v19, 0.0  ;;  %v255_v22 = vmul.f32 %v254_v18, %v247_v19  ;;  %v1937_v23 = vpop.f32.mrb[3].mxu0 }
 0x136   :  { %v2195_v23 = vld [vmem:[%s2729_s17 + $0x10] sm:$0xff]  }
 0x137   :  { %v256_v24 = vsel %vm253_vm4, %v247_v19, %v255_v22 }
 0x138   :  { %v257_v25 = vpack.c.bf16 %v256_v24, %v256_v24  ;;  %v2196_v24 = vld [vmem:[%s2729_s17 + $0x18] sm:$0xff]   ;;  %s2750_s17 = sld [smem:[#allocation27_spill]] }
 0x13a   :  { %1947 = vmatmul.mubr.msk.bf16.vlgmr.msra.gmra.mrb[0].mxu1 %vm297_vm5, %v257_v25  ;;  %v2197_v25 = vld [vmem:[%s2731_s25] sm:$0xff]  }
 0x13b   :  { %1966 = vmatprep.mubr.msk.bf16.mxu1 %vm2288_vm2, %v2286_v2  ;;  %1963 = vmatpush3.bf16.msra.mxu1 %v2181_v28  ;;  %v742_v28 = vstv %s1779_s3 }
 0x13c   :  { %1964 = vmatprep.subr.bf16.mxu1 %v2286_v2 }
 0x13f   :  { %1965 = vmatpush3.bf16.msra.mxu1 %v2182_v39 }
 0x140   :  { %1970 = vmatprep.subr.bf16.mxu1 %v2286_v2 }
 0x20d   :  { %v335_v30 = vpop.f32.mrb[0].mxu1 }
 0x20e   :  { %v336_v32 = vadd.f32 %v1744_v29, %v335_v30  ;;  %v1948_v33 = vpop.f32.mrb[1].mxu1 }
 0x20f   :  { %v338_v34 = vpop.f32.mrb[2].mxu1 }
 0x210   :  { %vm342_vm6 = vcmp.ge.f32.partialorder %v336_v32, 0.0  ;;  %v344_v35 = vmul.f32 %v343_v31, %v336_v32  ;;  %v1949_v36 = vpop.f32.mrb[3].mxu1 }
 0x211   :  { %v2198_v36 = vld [vmem:[%s2731_s25 + $0x8] sm:$0xff]  }
 0x212   :  { %v345_v37 = vsel %vm342_vm6, %v336_v32, %v344_v35 }
 0x213   :  { %v346_v38 = vpack.c.bf16 %v345_v37, %v345_v37  ;;  %v1780_v37 = vld [vmem:[%s2733_s8] ss:$0 sm:$0xff] }
 0x215   :  { %1959 = vmatmul.mubr.msk.bf16.vlgmr.msra.gmra.mrb[4].mxu0 %vm297_vm5, %v346_v38 }
 0x216   :  { %1990 = vmatprep.mubr.msk.bf16.mxu0 %vm2288_vm2, %v2286_v2  ;;  %1983 = vmatpush3.bf16.msra.mxu0 %v2187_v51 }
 0x217   :  { %1984 = vmatprep.subr.bf16.mxu0 %v2286_v2 }
 0x21a   :  { %1985 = vmatpush3.bf16.msra.mxu0 %v2188_v52  ;;  %v898_v52 = vstv %s1790_s30 }
 0x21b   :  { %1986 = vmatprep.subr.bf16.mxu0 %v2286_v2 }
 0x21e   :  { %1987 = vmatpush3.bf16.msra.mxu0 %v2189_v63 }
 0x21f   :  { %1988 = vmatprep.subr.bf16.mxu0 %v2286_v2 }
 0x222   :  { %1989 = vmatpush3.bf16.msra.mxu0 %v2190_v0 }
 0x223   :  { %2002 = vmatprep.subr.bf16.mxu0 %v2286_v2 }
 0x2e8   :  { %v423_v41 = vpop.f32.mrb[4].mxu0 }
 0x2e9   :  { %v424_v42 = vadd.f32 %v1751_v40, %v423_v41  ;;  %v1960_v43 = vpop.f32.mrb[5].mxu0 }
 0x2ea   :  { %v426_v44 = vpop.f32.mrb[6].mxu0 }
 0x2eb   :  { %v434_v46 = vpack.c.bf16 %v424_v42, %v424_v42  ;;  %v1961_v47 = vpop.f32.mrb[7].mxu0  ;;  %v2199_v44 = vld [vmem:[%s2734_s14] sm:$0xff]  }
 0x2ec   :  { %v2201_v47 = vld [vmem:[%s2734_s14 + $0x10] sm:$0xff]  }
 0x2ed   :  { %1967 = vmatmul.mubr.msk.bf16.vlgmr.msra.gmra.mrb[4].mxu1 %vm453_vm7, %v434_v46  ;;  %v2200_v46 = vld [vmem:[%s2734_s14 + $0x8] sm:$0xff]  }
 0x2ee   :  { %1971 = vmatpush3.bf16.msra.mxu1 %v2183_v45  ;;  %1978 = vmatprep.mubr.msk.bf16.mxu1 %vm2288_vm2, %v2286_v2 }
 0x2ef   :  { %1972 = vmatprep.subr.bf16.mxu1 %v2286_v2 }
 0x2f2   :  { %1973 = vmatpush3.bf16.msra.mxu1 %v2184_v48  ;;  %v2202_v48 = vld [vmem:[%s2734_s14 + $0x18] sm:$0xff]  }
 0x2f3   :  { %1974 = vmatprep.subr.bf16.mxu1 %v2286_v2 }
 0x2f6   :  { %1975 = vmatpush3.bf16.msra.mxu1 %v2185_v49  ;;  %v2203_v49 = vld [vmem:[%s2735_s19] sm:$0xff]  }
 0x2f7   :  { %1976 = vmatprep.subr.bf16.mxu1 %v2286_v2 }
 0x2fa   :  { %1977 = vmatpush3.bf16.msra.mxu1 %v2186_v50  ;;  %v1786_v50 = vld [vmem:[%s2736_s24] ss:$0 sm:$0xff] }
 0x2fb   :  { %1994 = vmatprep.subr.bf16.mxu1 %v2286_v2 }
 0x3c0   :  { %v491_v54 = vpop.f32.mrb[4].mxu1 }
 0x3c1   :  { %v492_v56 = vadd.f32 %v1757_v53, %v491_v54  ;;  %v1968_v57 = vpop.f32.mrb[5].mxu1 }
 0x3c2   :  { %v494_v58 = vpop.f32.mrb[6].mxu1 }
 0x3c3   :  { %vm498_vm8 = vcmp.ge.f32.partialorder %v492_v56, 0.0  ;;  %v500_v59 = vmul.f32 %v499_v55, %v492_v56  ;;  %v1969_v60 = vpop.f32.mrb[7].mxu1 }
 0x3c4   :  { %v2204_v60 = vld [vmem:[%s2735_s19 + $0x8] sm:$0xff]  }
 0x3c5   :  { %v501_v61 = vsel %vm498_vm8, %v492_v56, %v500_v59 }
 0x3c6   :  { %v502_v62 = vpack.c.bf16 %v501_v61, %v501_v61  ;;  %v1791_v61 = vld [vmem:[%s2737_s12] ss:$0 sm:$0xff] }
 0x3c8   :  { %1979 = vmatmul.mubr.msk.bf16.vlgmr.msra.gmra.mrb[8].mxu1 %vm297_vm5, %v502_v62 }
 0x3c9   :  { %1998 = vmatprep.mubr.msk.bf16.mxu1 %vm2288_vm2, %v2286_v2  ;;  %1995 = vmatpush3.bf16.msra.mxu1 %v2191_v1 }
 0x3ca   :  { %1996 = vmatprep.subr.bf16.mxu1 %v2286_v2 }
 0x3cd   :  { %1997 = vmatpush3.bf16.msra.mxu1 %v2192_v13  ;;  %v1053_v13 = vstv %s1801_s15 }
 0x3ce   :  { %2014 = vmatprep.subr.bf16.mxu1 %v2286_v2 }
 0x49b   :  { %v579_v4 = vpop.f32.mrb[8].mxu1 }
 0x49c   :  { %v580_v6 = vadd.f32 %v1762_v3, %v579_v4  ;;  %v1980_v7 = vpop.f32.mrb[9].mxu1  ;;  %v2205_v3 = vld [vmem:[%s2738_s7] sm:$0xff]  }
 0x49d   :  { %v582_v8 = vpop.f32.mrb[10].mxu1  ;;  %v2207_v7 = vld [vmem:[%s2738_s7 + $0x10] sm:$0xff]  }
 0x49e   :  { %vm586_vm9 = vcmp.ge.f32.partialorder %v580_v6, 0.0  ;;  %v588_v9 = vmul.f32 %v587_v5, %v580_v6  ;;  %v1981_v10 = vpop.f32.mrb[11].mxu1  ;;  %v2208_v8 = vld [vmem:[%s2738_s7 + $0x18] sm:$0xff]  }
 0x49f   :  { %v2210_v10 = vld [vmem:[%s2739_s11 + $0x8] sm:$0xff]  }
 0x4a0   :  { %v589_v11 = vsel %vm586_vm9, %v580_v6, %v588_v9  ;;  %v2206_v6 = vld [vmem:[%s2738_s7 + $0x8] sm:$0xff]   ;;  %v2209_v9 = vld [vmem:[%s2739_s11] sm:$0xff]  }
 0x4a1   :  { %v590_v12 = vpack.c.bf16 %v589_v11, %v589_v11  ;;  %v1797_v11 = vld [vmem:[%s2740_s20] ss:$0 sm:$0xff] }
 0x4a3   :  { %1991 = vmatmul.mubr.msk.bf16.vlgmr.msra.gmra.mrb[8].mxu0 %vm297_vm5, %v590_v12 }
 0x4a4   :  { %2010 = vmatprep.mubr.msk.bf16.mxu0 %vm2288_vm2, %v2286_v2  ;;  %2003 = vmatpush3.bf16.msra.mxu0 %v2193_v14 }
 0x4a5   :  { %2004 = vmatprep.subr.bf16.mxu0 %v2286_v2 }
 0x4a8   :  { %2005 = vmatpush3.bf16.msra.mxu0 %v2194_v15 }
 0x4a9   :  { %2006 = vmatprep.subr.bf16.mxu0 %v2286_v2 }
 0x4ac   :  { %2007 = vmatpush3.bf16.msra.mxu0 %v2195_v23  ;;  %v2213_v23 = vld [vmem:[%s2741_s18] sm:$0xff]  }
 0x4ad   :  { %2008 = vmatprep.subr.bf16.mxu0 %v2286_v2 }
 0x4b0   :  { %2009 = vmatpush3.bf16.msra.mxu0 %v2196_v24  ;;  %v1802_v24 = vld [vmem:[%s2742_s1] ss:$0 sm:$0xff] }
 0x4b1   :  { %2034 = vmatprep.subr.bf16.mxu0 %v2286_v2 }
 0x576   :  { %v667_v17 = vpop.f32.mrb[8].mxu0 }
 0x577   :  { %v668_v18 = vadd.f32 %v1769_v16, %v667_v17  ;;  %v1992_v19 = vpop.f32.mrb[9].mxu0 }
 0x578   :  { %v670_v20 = vpop.f32.mrb[10].mxu0 }
 0x579   :  { %v678_v21 = vpack.c.bf16 %v668_v18, %v668_v18  ;;  %v1993_v22 = vpop.f32.mrb[11].mxu0 }
 0x57a   :  { %v2212_v22 = vld [vmem:[%s2739_s11 + $0x18] sm:$0xff]  }
 0x57b   :  { %1999 = vmatmul.mubr.msk.bf16.vlgmr.msra.gmra.mrb[12].mxu1 %vm453_vm7, %v678_v21  ;;  %v2211_v21 = vld [vmem:[%s2739_s11 + $0x10] sm:$0xff]  }
 0x57c   :  { %2018 = vmatprep.mubr.msk.bf16.mxu1 %vm2288_vm2, %v2286_v2  ;;  %2015 = vmatpush3.bf16.msra.mxu1 %v2197_v25 }
 0x57d   :  { %2016 = vmatprep.subr.bf16.mxu1 %v2286_v2 }
 0x580   :  { %2017 = vmatpush3.bf16.msra.mxu1 %v2198_v36  ;;  %v2216_v36 = vld [vmem:[%s2743_s26 + $0x8] sm:$0xff]  }
 0x581   :  { %2022 = vmatprep.subr.bf16.mxu1 %v2286_v2 }
 0x64e   :  { %v734_v27 = vpop.f32.mrb[12].mxu1 }
 0x64f   :  { %v735_v29 = vadd.f32 %v1775_v26, %v734_v27  ;;  %v2000_v30 = vpop.f32.mrb[13].mxu1  ;;  %v1141_v26 = vstv %s1808_s22 }
 0x650   :  { %v737_v31 = vpop.f32.mrb[14].mxu1 }
 0x651   :  { %vm741_vm10 = vcmp.ge.f32.partialorder %v735_v29, 0.0  ;;  %v743_v32 = vmul.f32 %v742_v28, %v735_v29  ;;  %v2001_v33 = vpop.f32.mrb[15].mxu1 }
 0x653   :  { %v744_v34 = vsel %vm741_vm10, %v735_v29, %v743_v32 }
 0x654   :  { %v745_v35 = vpack.c.bf16 %v744_v34, %v744_v34  ;;  %v2214_v34 = vld [vmem:[%s2741_s18 + $0x8] sm:$0xff]  }
 0x656   :  { %2011 = vmatmul.mubr.msk.bf16.vlgmr.msra.gmra.mrb[12].mxu0 %vm297_vm5, %v745_v35  ;;  %v2215_v35 = vld [vmem:[%s2743_s26] sm:$0xff]  }
 0x657   :  { %2038 = vmatprep.mubr.msk.bf16.mxu0 %vm2288_vm2, %v2286_v2  ;;  %2035 = vmatpush3.bf16.msra.mxu0 %v2203_v49  ;;  %v1296_v49 = vstv %s1819_s6 }
 0x658   :  { %2036 = vmatprep.subr.bf16.mxu0 %v2286_v2 }
 0x65b   :  { %2037 = vmatpush3.bf16.msra.mxu0 %v2204_v60 }
 0x65c   :  { %2042 = vmatprep.subr.bf16.mxu0 %v2286_v2 }
 0x729   :  { %v822_v38 = vpop.f32.mrb[12].mxu0 }
 0x72a   :  { %v823_v39 = vadd.f32 %v1780_v37, %v822_v38  ;;  %v2012_v40 = vpop.f32.mrb[13].mxu0  ;;  %v1809_v37 = vld [vmem:[%s2744_s4] ss:$0 sm:$0xff] }
 0x72b   :  { %v825_v41 = vpop.f32.mrb[14].mxu0 }
 0x72c   :  { %v828_v42 = vadd.f32 %v823_v39, %v668_v18  ;;  %v2013_v43 = vpop.f32.mrb[15].mxu0 }
 0x72e   :  { %v834_v45 = vpack.c.bf16 %v828_v42, %v828_v42 }
 0x730   :  { %2019 = vmatmul.mubr.msk.bf16.vlgmr.msra.gmra.mrb[16].mxu1 %vm453_vm7, %v834_v45  ;;  %v2218_v45 = vld [vmem:[%s2743_s26 + $0x18] sm:$0xff]  }
 0x731   :  { %2023 = vmatpush3.bf16.msra.mxu1 %v2199_v44  ;;  %2030 = vmatprep.mubr.msk.bf16.mxu1 %vm2288_vm2, %v2286_v2  ;;  %v2217_v44 = vld [vmem:[%s2743_s26 + $0x10] sm:$0xff]  }
 0x732   :  { %2024 = vmatprep.subr.bf16.mxu1 %v2286_v2 }
 0x735   :  { %2025 = vmatpush3.bf16.msra.mxu1 %v2200_v46  ;;  %v2219_v46 = vld [vmem:[%s2745_s28] sm:$0xff]  }
 0x736   :  { %2026 = vmatprep.subr.bf16.mxu1 %v2286_v2 }
 0x739   :  { %2027 = vmatpush3.bf16.msra.mxu1 %v2201_v47  ;;  %v1815_v47 = vld [vmem:[%s2746_s2] ss:$0 sm:$0xff] }
 0x73a   :  { %2028 = vmatprep.subr.bf16.mxu1 %v2286_v2 }
 0x73d   :  { %2029 = vmatpush3.bf16.msra.mxu1 %v2202_v48 }
 0x73e   :  { %2054 = vmatprep.subr.bf16.mxu1 %v2286_v2 }
 0x803   :  { %v890_v51 = vpop.f32.mrb[16].mxu1 }
 0x804   :  { %v891_v53 = vadd.f32 %v1786_v50, %v890_v51  ;;  %v2020_v54 = vpop.f32.mrb[17].mxu1 }
 0x805   :  { %v893_v55 = vpop.f32.mrb[18].mxu1 }
 0x806   :  { %vm897_vm11 = vcmp.ge.f32.partialorder %v891_v53, 0.0  ;;  %v899_v56 = vmul.f32 %v898_v52, %v891_v53  ;;  %v2021_v57 = vpop.f32.mrb[19].mxu1 }
 0x807   :  { %v2220_v57 = vld [vmem:[%s2745_s28 + $0x8] sm:$0xff]  }
 0x808   :  { %v900_v58 = vsel %vm897_vm11, %v891_v53, %v899_v56 }
 0x809   :  { %v901_v59 = vpack.c.bf16 %v900_v58, %v900_v58  ;;  %v1820_v58 = vld [vmem:[%s2747_s0] ss:$0 sm:$0xff] }
 0x80b   :  { %2031 = vmatmul.mubr.msk.bf16.vlgmr.msra.gmra.mrb[20].mxu1 %vm297_vm5, %v901_v59 }
 0x80c   :  { %2062 = vmatprep.mubr.msk.bf16.mxu1 %vm2288_vm2, %v2286_v2  ;;  %2055 = vmatpush3.bf16.msra.mxu1 %v2209_v9  ;;  %v1826_v9 = vld [vmem:[%s2749_s9] ss:$0 sm:$0xff] }
 0x80d   :  { %2056 = vmatprep.subr.bf16.mxu1 %v2286_v2 }
 0x810   :  { %2057 = vmatpush3.bf16.msra.mxu1 %v2210_v10 }
 0x811   :  { %2058 = vmatprep.subr.bf16.mxu1 %v2286_v2 }
 0x814   :  { %2059 = vmatpush3.bf16.msra.mxu1 %v2211_v21  ;;  %v2229_v21 = vld [vmem:[%s2487_s16] sm:$0xff]  }
 0x815   :  { %2060 = vmatprep.subr.bf16.mxu1 %v2286_v2 }
 0x818   :  { %2061 = vmatpush3.bf16.msra.mxu1 %v2212_v22  ;;  %v1831_v22 = vld [vmem:[%s2750_s17] ss:$0 sm:$0xff] }
 0x819   :  { %2074 = vmatprep.subr.bf16.mxu1 %v2286_v2 }
 0x8de   :  { %v978_v62 = vpop.f32.mrb[20].mxu1 }
 0x8df   :  { %v979_v63 = vadd.f32 %v1791_v61, %v978_v62  ;;  %v2032_v0 = vpop.f32.mrb[21].mxu1 }
 0x8e0   :  { %v981_v1 = vpop.f32.mrb[22].mxu1 }
 0x8e1   :  { %v989_v4 = vpack.c.bf16 %v979_v63, %v979_v63  ;;  %v2033_v5 = vpop.f32.mrb[23].mxu1  ;;  %v2221_v1 = vld [vmem:[%s2748_s5] sm:$0xff]  }
 0x8e2   :  { %v2223_v5 = vld [vmem:[%s2748_s5 + $0x10] sm:$0xff]  }
 0x8e3   :  { %2039 = vmatmul.mubr.msk.bf16.vlgmr.msra.gmra.mrb[16].mxu0 %vm453_vm7, %v989_v4  ;;  %v2222_v4 = vld [vmem:[%s2748_s5 + $0x8] sm:$0xff]  }
 0x8e4   :  { %2043 = vmatpush3.bf16.msra.mxu0 %v2205_v3  ;;  %2050 = vmatprep.mubr.msk.bf16.mxu0 %vm2288_vm2, %v2286_v2 }
 0x8e5   :  { %2044 = vmatprep.subr.bf16.mxu0 %v2286_v2 }
 0x8e8   :  { %2045 = vmatpush3.bf16.msra.mxu0 %v2206_v6  ;;  %v2224_v6 = vld [vmem:[%s2748_s5 + $0x18] sm:$0xff]  }
 0x8e9   :  { %2046 = vmatprep.subr.bf16.mxu0 %v2286_v2 }
 0x8ec   :  { %2047 = vmatpush3.bf16.msra.mxu0 %v2207_v7  ;;  %v2225_v7 = vld [vmem:[%s2477_s27] sm:$0xff]  }
 0x8ed   :  { %2048 = vmatprep.subr.bf16.mxu0 %v2286_v2 }
 0x8f0   :  { %2049 = vmatpush3.bf16.msra.mxu0 %v2208_v8  ;;  %v2226_v8 = vld [vmem:[%s2477_s27 + $0x8] sm:$0xff]  }
 0x8f1   :  { %2066 = vmatprep.subr.bf16.mxu0 %v2286_v2 }
 0x9b6   :  { %v1045_v12 = vpop.f32.mrb[16].mxu0 }
 0x9b7   :  { %v1046_v14 = vadd.f32 %v1797_v11, %v1045_v12  ;;  %v2040_v15 = vpop.f32.mrb[17].mxu0  ;;  %v1452_v11 = vstv %s1830_s13 }
 0x9b8   :  { %v1048_v16 = vpop.f32.mrb[18].mxu0 }
 0x9b9   :  { %vm1052_vm12 = vcmp.ge.f32.partialorder %v1046_v14, 0.0  ;;  %v1054_v17 = vmul.f32 %v1053_v13, %v1046_v14  ;;  %v2041_v18 = vpop.f32.mrb[19].mxu0 }
 0x9bb   :  { %v1055_v19 = vsel %vm1052_vm12, %v1046_v14, %v1054_v17 }
 0x9bc   :  { %v1056_v20 = vpack.c.bf16 %v1055_v19, %v1055_v19  ;;  %v2227_v19 = vld [vmem:[%s2477_s27 + $0x10] sm:$0xff]  }
 0x9be   :  { %2051 = vmatmul.mubr.msk.bf16.vlgmr.msra.gmra.mrb[20].mxu0 %vm297_vm5, %v1056_v20  ;;  %v2228_v20 = vld [vmem:[%s2477_s27 + $0x18] sm:$0xff]  }
 0x9bf   :  { %2070 = vmatprep.mubr.msk.bf16.mxu0 %vm2288_vm2, %v2286_v2  ;;  %2067 = vmatpush3.bf16.msra.mxu0 %v2213_v23 }
 0x9c0   :  { %2068 = vmatprep.subr.bf16.mxu0 %v2286_v2 }
 0x9c3   :  { %2069 = vmatpush3.bf16.msra.mxu0 %v2214_v34 }
 0x9c4   :  { %2086 = vmatprep.subr.bf16.mxu0 %v2286_v2 }
 0xa91   :  { %v1133_v25 = vpop.f32.mrb[20].mxu0 }
 0xa92   :  { %v1134_v27 = vadd.f32 %v1802_v24, %v1133_v25  ;;  %v2052_v28 = vpop.f32.mrb[21].mxu0  ;;  %v1540_v24 = vstv %s1837_s21 }
 0xa93   :  { %v1136_v29 = vpop.f32.mrb[22].mxu0 }
 0xa94   :  { %vm1140_vm13 = vcmp.ge.f32.partialorder %v1134_v27, 0.0  ;;  %v1142_v30 = vmul.f32 %v1141_v26, %v1134_v27  ;;  %v2053_v31 = vpop.f32.mrb[23].mxu0 }
 0xa96   :  { %v1143_v32 = vsel %vm1140_vm13, %v1134_v27, %v1142_v30 }
 0xa97   :  { %v1144_v33 = vpack.c.bf16 %v1143_v32, %v1143_v32  ;;  %v2230_v32 = vld [vmem:[%s2487_s16 + $0x8] sm:$0xff]  }
 0xa99   :  { %2063 = vmatmul.mubr.msk.bf16.vlgmr.msra.gmra.mrb[24].mxu1 %vm297_vm5, %v1144_v33  ;;  %v1838_v33 = vld [vmem:[%s2482_s10] ss:$0 sm:$0xff] }
 0xa9a   :  { %2082 = vmatprep.mubr.msk.bf16.mxu1 %vm2288_vm2, %v2286_v2  ;;  %2075 = vmatpush3.bf16.msra.mxu1 %v2215_v35 }
 0xa9b   :  { %2076 = vmatprep.subr.bf16.mxu1 %v2286_v2 }
 0xa9e   :  { %2077 = vmatpush3.bf16.msra.mxu1 %v2216_v36 }
 0xa9f   :  { %2078 = vmatprep.subr.bf16.mxu1 %v2286_v2 }
 0xaa2   :  { %2079 = vmatpush3.bf16.msra.mxu1 %v2217_v44 }
 0xaa3   :  { %2080 = vmatprep.subr.bf16.mxu1 %v2286_v2 }
 0xaa6   :  { %2081 = vmatpush3.bf16.msra.mxu1 %v2218_v45 }
 0xaa7   :  { %2106 = vmatprep.subr.bf16.mxu1 %v2286_v2 }
 0xb6c   :  { %v1221_v38 = vpop.f32.mrb[24].mxu1 }
 0xb6d   :  { %v1222_v39 = vadd.f32 %v1809_v37, %v1221_v38  ;;  %v2064_v40 = vpop.f32.mrb[25].mxu1 }
 0xb6e   :  { %v1224_v41 = vpop.f32.mrb[26].mxu1 }
 0xb6f   :  { %v1232_v42 = vpack.c.bf16 %v1222_v39, %v1222_v39  ;;  %v2065_v43 = vpop.f32.mrb[27].mxu1 }
 0xb71   :  { %2071 = vmatmul.mubr.msk.bf16.vlgmr.msra.gmra.mrb[24].mxu0 %vm453_vm7, %v1232_v42 }
 0xb72   :  { %2090 = vmatprep.mubr.msk.bf16.mxu0 %vm2288_vm2, %v2286_v2  ;;  %2087 = vmatpush3.bf16.msra.mxu0 %v2219_v46 }
 0xb73   :  { %2088 = vmatprep.subr.bf16.mxu0 %v2286_v2 }
 0xb76   :  { %2089 = vmatpush3.bf16.msra.mxu0 %v2220_v57 }
 0xb77   :  { %2094 = vmatprep.subr.bf16.mxu0 %v2286_v2 }
 0xc44   :  { %v1288_v48 = vpop.f32.mrb[24].mxu0 }
 0xc45   :  { %v1289_v50 = vadd.f32 %v1815_v47, %v1288_v48  ;;  %v2072_v51 = vpop.f32.mrb[25].mxu0 }
 0xc46   :  { %v1291_v52 = vpop.f32.mrb[26].mxu0 }
 0xc47   :  { %vm1295_vm14 = vcmp.ge.f32.partialorder %v1289_v50, 0.0  ;;  %v1297_v53 = vmul.f32 %v1296_v49, %v1289_v50  ;;  %v2073_v54 = vpop.f32.mrb[27].mxu0 }
 0xc49   :  { %v1298_v55 = vsel %vm1295_vm14, %v1289_v50, %v1297_v53 }
 0xc4a   :  { %v1299_v56 = vpack.c.bf16 %v1298_v55, %v1298_v55 }
 0xc4c   :  { %2083 = vmatmul.mubr.msk.bf16.vlgmr.msra.gmra.mrb[28].mxu1 %vm297_vm5, %v1299_v56 }
 0xc4d   :  { %2114 = vmatprep.mubr.msk.bf16.mxu1 %vm2288_vm2, %v2286_v2  ;;  %2107 = vmatpush3.bf16.msra.mxu1 %v2225_v7 }
 0xc4e   :  { %2108 = vmatprep.subr.bf16.mxu1 %v2286_v2 }
 0xc51   :  { %2109 = vmatpush3.bf16.msra.mxu1 %v2226_v8 }
 0xc52   :  { %2110 = vmatprep.subr.bf16.mxu1 %v2286_v2 }
 0xc55   :  { %2111 = vmatpush3.bf16.msra.mxu1 %v2227_v19 }
 0xc56   :  { %2112 = vmatprep.subr.bf16.mxu1 %v2286_v2 }
 0xc59   :  { %2113 = vmatpush3.bf16.msra.mxu1 %v2228_v20 }
 0xd1f   :  { %v1376_v59 = vpop.f32.mrb[28].mxu1 }
 0xd20   :  { %v1377_v60 = vadd.f32 %v1820_v58, %v1376_v59  ;;  %v2084_v61 = vpop.f32.mrb[29].mxu1 }
 0xd21   :  { %v1379_v62 = vpop.f32.mrb[30].mxu1 }
 0xd22   :  { %v1382_v63 = vadd.f32 %v1377_v60, %v1222_v39  ;;  %v2085_v0 = vpop.f32.mrb[31].mxu1  ;;  %v1844_v39 = vld [vmem:[#allocation4] ss:$0 sm:$0xff] }
 0xd24   :  { %v1388_v3 = vpack.c.bf16 %v1382_v63, %v1382_v63 }
 0xd26   :  { %2091 = vmatmul.mubr.msk.bf16.vlgmr.msra.gmra.mrb[28].mxu0 %vm453_vm7, %v1388_v3 }
 0xd27   :  { %2095 = vmatpush3.bf16.msra.mxu0 %v2221_v1  ;;  %2102 = vmatprep.mubr.msk.bf16.mxu0 %vm2288_vm2, %v2286_v2 }
 0xd28   :  { %2096 = vmatprep.subr.bf16.mxu0 %v2286_v2 }
 0xd2b   :  { %2097 = vmatpush3.bf16.msra.mxu0 %v2222_v4 }
 0xd2c   :  { %2098 = vmatprep.subr.bf16.mxu0 %v2286_v2 }
 0xd2f   :  { %2099 = vmatpush3.bf16.msra.mxu0 %v2223_v5 }
 0xd30   :  { %2100 = vmatprep.subr.bf16.mxu0 %v2286_v2 }
 0xd33   :  { %2101 = vmatpush3.bf16.msra.mxu0 %v2224_v6 }
 0xd34   :  { %2118 = vmatprep.subr.bf16.mxu0 %v2286_v2 }
 0xdf9   :  { %v1444_v10 = vpop.f32.mrb[28].mxu0 }
 0xdfa   :  { %v1445_v12 = vadd.f32 %v1826_v9, %v1444_v10  ;;  %v2092_v13 = vpop.f32.mrb[29].mxu0 }
 0xdfb   :  { %v1447_v14 = vpop.f32.mrb[30].mxu0 }
 0xdfc   :  { %vm1451_vm15 = vcmp.ge.f32.partialorder %v1445_v12, 0.0  ;;  %v1453_v15 = vmul.f32 %v1452_v11, %v1445_v12  ;;  %v2093_v16 = vpop.f32.mrb[31].mxu0 }
 0xdfe   :  { %v1454_v17 = vsel %vm1451_vm15, %v1445_v12, %v1453_v15 }
 0xdff   :  { %v1455_v18 = vpack.c.bf16 %v1454_v17, %v1454_v17 }
 0xe01   :  { %2103 = vmatmul.mubr.msk.bf16.vlgmr.msra.gmra.mrb[32].mxu0 %vm297_vm5, %v1455_v18 }
 0xe02   :  { %2122 = vmatprep.mubr.msk.bf16.mxu0 %vm2288_vm2, %v2286_v2  ;;  %2119 = vmatpush3.bf16.msra.mxu0 %v2229_v21 }
 0xe03   :  { %2120 = vmatprep.subr.bf16.mxu0 %v2286_v2 }
 0xe06   :  { %2121 = vmatpush3.bf16.msra.mxu0 %v2230_v32 }
 0xed4   :  { %v1532_v23 = vpop.f32.mrb[32].mxu0 }
 0xed5   :  { %v1533_v25 = vadd.f32 %v1831_v22, %v1532_v23  ;;  %v2104_v26 = vpop.f32.mrb[33].mxu0 }
 0xed6   :  { %v1535_v27 = vpop.f32.mrb[34].mxu0 }
 0xed7   :  { %vm1539_vm0 = vcmp.ge.f32.partialorder %v1533_v25, 0.0  ;;  %v1541_v28 = vmul.f32 %v1540_v24, %v1533_v25  ;;  %v2105_v29 = vpop.f32.mrb[35].mxu0 }
 0xed9   :  { %v1542_v30 = vsel %vm1539_vm0, %v1533_v25, %v1541_v28 }
 0xeda   :  { %v1543_v31 = vpack.c.bf16 %v1542_v30, %v1542_v30 }
 0xedc   :  { %2115 = vmatmul.mubr.msk.bf16.vlgmr.msra.gmra.mrb[32].mxu1 %vm297_vm5, %v1543_v31 }
 0xfaf   :  { %v1620_v2 = vpop.f32.mrb[32].mxu1 }
 0xfb0   :  { %v1621_v34 = vadd.f32 %v1838_v33, %v1620_v2  ;;  %v2116_v35 = vpop.f32.mrb[33].mxu1 }
 0xfb1   :  { %v1623_v36 = vpop.f32.mrb[34].mxu1 }
 0xfb2   :  { %v1631_v37 = vpack.c.bf16 %v1621_v34, %v1621_v34  ;;  %v2117_v38 = vpop.f32.mrb[35].mxu1 }
 0xfb4   :  { %2123 = vmatmul.mubr.msk.bf16.vlgmr.msra.gmra.mrb[36].mxu0 %vm453_vm7, %v1631_v37 }
0x1087   :  { %v1687_v40 = vpop.f32.mrb[36].mxu0 }
0x1088   :  { %v1688_v41 = vadd.f32 %v1844_v39, %v1687_v40  ;;  %v2124_v42 = vpop.f32.mrb[37].mxu0 }
0x1089   :  { %v1690_v43 = vpop.f32.mrb[38].mxu0 }
0x108a   :  { %1694 = vst.msk [vmem:[%s2492_s23] sm:$0xff] %vm1693_vm1, %v1688_v41  ;;  %v2125_v44 = vpop.f32.mrb[39].mxu0 }

</bundles_post_ra>
